<compile_context>
chip_gen: v7x
topology: tpu7x:2x2x1
jax: 0.10.0
libtpu: 0.0.40
codegen_flags: <defaults>
</compile_context>

<pallas_src>
import numpy as np
import jax
import jax.numpy as jnp
from jax import lax
from jax.experimental import pallas as pl
from jax.experimental.pallas import tpu as pltpu  # noqa: F401  (kept for parity; no TPU-specific params needed)

# ---------------- problem sizes (small, consistent with the module) ----------------
BATCH = 2
MAX_SENT = 4       # max_sent_length
MAX_WORD = 6       # max_word_length
EMBED = 32         # word2vec embedding dim
WORD_H = 16        # word_hidden_size
SENT_H = 16        # sent_hidden_size
NUM_CLASSES = 5
VOCAB = 40


# ---------------- in-kernel fused bi-directional GRU cell ----------------
def _bigru_cell(gx, h, whh, bhh, H):
    """One fused forward+backward GRU step (PyTorch nn.GRU math, gate order [r|z|n]).

    Fused lane layout: gate columns [r_f|r_b|z_f|z_b|n_f|n_b]; h = [h_f|h_b] (B, 2H);
    whh is the (2H, 6H) block-diagonal recurrent matrix; bhh is pre-broadcast to (B, 6H).
    """
    gh = jnp.dot(h, whh, preferred_element_type=jnp.float32) + bhh
    rz = jax.nn.sigmoid(gx[:, :4 * H] + gh[:, :4 * H])   # one sigmoid for r & z, both dirs
    r = rz[:, :2 * H]
    z = rz[:, 2 * H:]
    n = jnp.tanh(gx[:, 4 * H:] + r * gh[:, 4 * H:])      # b_hn sits inside gh (PyTorch semantics)
    return (1.0 - z) * n + z * h


# ---------------- trace-time (wrapper-side) weight fusion & packing helpers ----------------
def _fuse_input_weights(w_f, w_b, H):
    """(Din,3H) fwd/bwd mats (cols [r|z|n]) -> (Din,6H) mats for layout [r_f|r_b|z_f|z_b|n_f|n_b]."""
    Z = jnp.zeros((w_f.shape[0], H), jnp.float32)
    wf = jnp.concatenate([w_f[:, :H], Z, w_f[:, H:2 * H], Z, w_f[:, 2 * H:], Z], axis=-1)
    wb = jnp.concatenate([Z, w_b[:, :H], Z, w_b[:, H:2 * H], Z, w_b[:, 2 * H:]], axis=-1)
    return wf, wb


def _fuse_bias(b_f, b_b, H):
    return jnp.concatenate([b_f[:, :H], b_b[:, :H], b_f[:, H:2 * H], b_b[:, H:2 * H],
                            b_f[:, 2 * H:], b_b[:, 2 * H:]], axis=-1)


def _fuse_hidden_weights(whh_f, whh_b, H):
    wf, wb = _fuse_input_weights(whh_f, whh_b, H)     # (H, 6H) each
    return jnp.concatenate([wf, wb], axis=0)          # (2H, 6H) block-diagonal


def _pack_slab(blocks, width):
    """Pack blocks into one (rows, width) f32 slab; each block padded to a multiple of 8 rows."""
    parts, offs, row = [], [], 0
    for b in blocks:
        b = jnp.asarray(b, jnp.float32)
        rpad = -(-b.shape[0] // 8) * 8
        parts.append(jnp.pad(b, ((0, rpad - b.shape[0]), (0, width - b.shape[1]))))
        offs.append(row)
        row += rpad
    return jnp.concatenate(parts, axis=0), offs


# ---------------- wrapper + fused kernel ----------------
def hier_att_net(x_idx, emb_table, wp, sp):
    B, S, T = x_idx.shape
    V, E = emb_table.shape
    Hw = wp["whh_f"].shape[0]
    Hs = sp["whh_f"].shape[0]
    C = sp["fc_w"].shape[1]
    N = S * T * B                        # word rows, ordered (sentence, word, batch)
    WW, SW = 6 * Hw, 6 * Hs
    width = max(WW, SW, N, 2 * Hw, 2 * Hs, C)

    # Token ids in (sentence, word, batch) order, plus a word-reversed copy so the backward
    # direction's hoisted input projection needs no in-kernel permutation.
    ids_f = jnp.transpose(x_idx, (1, 2, 0))                                   # (S, T, B)
    ids_all = jnp.concatenate([ids_f, jnp.flip(ids_f, axis=1)], axis=0)       # (2S, T, B)
    ids_all = ids_all.reshape(2 * N, 1).astype(jnp.int32)

    # Compile-time group-sum matrices: softmax pooling over words / sentences per (s, b).
    wsum = np.zeros((S * B, N), np.float32)
    for s in range(S):
        for t in range(T):
            for b in range(B):
                wsum[s * B + b, (s * T + t) * B + b] = 1.0
    ssum = np.zeros((B, S * B), np.float32)
    for s in range(S):
        for b in range(B):
            ssum[b, s * B + b] = 1.0

    # Fuse both GRU directions into single block weights (trace time, outside the kernel).
    w_xf, w_xb = _fuse_input_weights(wp["wih_f"], wp["wih_b"], Hw)
    w_hh = _fuse_hidden_weights(wp["whh_f"], wp["whh_b"], Hw)
    w_bx = _fuse_bias(wp["bih_f"], wp["bih_b"], Hw)
    w_bh = _fuse_bias(wp["bhh_f"], wp["bhh_b"], Hw)
    s_xf, s_xb = _fuse_input_weights(sp["wih_f"], sp["wih_b"], Hs)
    s_hh = _fuse_hidden_weights(sp["whh_f"], sp["whh_b"], Hs)
    s_bx = _fuse_bias(sp["bih_f"], sp["bih_b"], Hs)
    s_bh = _fuse_bias(sp["bhh_f"], sp["bhh_b"], Hs)

    # Pack everything into 2 slabs -> 4 input DMAs total.
    wslab, (o_wxf, o_wxb, o_whh, o_wbx, o_wbh, o_waw, o_wab, o_wcx, o_wsm) = _pack_slab(
        [w_xf, w_xb, w_hh, w_bx, w_bh,
         wp["att_w"], wp["att_b"], wp["ctx_w"].reshape(1, 2 * Hw), wsum], width)
    sslab, (o_sxf, o_sxb, o_shh, o_sbx, o_sbh, o_saw, o_sab, o_scx, o_ssm, o_fcw, o_fcb) = _pack_slab(
        [s_xf, s_xb, s_hh, s_bx, s_bh,
         sp["att_w"], sp["att_b"], sp["ctx_w"].reshape(1, 2 * Hs), ssum,
         sp["fc_w"], sp["fc_b"]], width)

    f32 = jnp.float32

    def kernel(ids_ref, emb_ref, wslab_ref, sslab_ref, out_ref):
        def sect(ref, off, rows, cols):
            rpad = -(-rows // 8) * 8              # all sections are 8-row aligned & padded
            return ref[off:off + rpad, :][:rows, :cols]

        # ---- 1) fused embedding gather: one-hot(ids) @ emb (fwd rows + word-reversed rows) ----
        ids = ids_ref[...]                                                    # (2N, 1) int32
        onehot = (ids == lax.broadcasted_iota(jnp.int32, (2 * N, V), 1)).astype(f32)
        x_all = jnp.dot(onehot, emb_ref[...], preferred_element_type=f32)     # (2N, E)
        x_fwd, x_rev = x_all[:N, :], x_all[N:, :]

        # ---- 2) word level: hoisted fused-direction input projections ----
        gx = (jnp.dot(x_fwd, sect(wslab_ref, o_wxf, E, WW), preferred_element_type=f32)
              + jnp.dot(x_rev, sect(wslab_ref, o_wxb, E, WW), preferred_element_type=f32)
              + sect(wslab_ref, o_wbx, 1, WW))                                # (N, 6Hw)
        whh = sect(wslab_ref, o_whh, 2 * Hw, WW)
        bhh = jnp.broadcast_to(sect(wslab_ref, o_wbh, 1, WW), (B, WW))        # hoisted broadcast

        # ---- 3) word bi-GRU, both directions fused per step; h carried across sentences ----
        h = jnp.zeros((B, 2 * Hw), f32)                                       # [h_f | h_b]
        fwd_o = [None] * (S * T)
        bwd_o = [None] * (S * T)
        for s in range(S):
            for i in range(T):                 # fwd word i and bwd word T-1-i in one fused step
                r0 = (s * T + i) * B
                h = _bigru_cell(gx[r0:r0 + B, :], h, whh, bhh, Hw)
                fwd_o[s * T + i] = h[:, :Hw]
                bwd_o[s * T + (T - 1 - i)] = h[:, Hw:]
        fwf = jnp.concatenate(fwd_o, axis=0)                                  # (N, Hw)
        fwb = jnp.concatenate(bwd_o, axis=0)

        # ---- 4) word attention + pooling (one fused group-sum matmul) ----
        attw = sect(wslab_ref, o_waw, 2 * Hw, 2 * Hw)
        u = jnp.tanh(jnp.dot(fwf, attw[:Hw, :], preferred_element_type=f32)
                     + jnp.dot(fwb, attw[Hw:, :], preferred_element_type=f32)
                     + sect(wslab_ref, o_wab, 1, 2 * Hw))
        e = jnp.exp(jnp.tanh(jnp.sum(u * sect(wslab_ref, o_wcx, 1, 2 * Hw),
                                     axis=-1, keepdims=True)))                # (N, 1); tanh-bounded
        pool = jnp.concatenate([fwf * e, fwb * e, e], axis=-1)                # (N, 2Hw+1)
        red = jnp.dot(sect(wslab_ref, o_wsm, S * B, N), pool,
                      preferred_element_type=f32)                             # (S*B, 2Hw+1)
        sv = red[:, :2 * Hw] * pl.reciprocal(red[:, 2 * Hw:2 * Hw + 1], approx=True)

        # Sentence-reversed copy of sv for the backward direction's input projection.
        sv_rev = jnp.concatenate([sv[(S - 1 - s) * B:(S - s) * B, :] for s in range(S)], axis=0)

        # ---- 5) sentence level: hoisted fused-direction input projections ----
        gs = (jnp.dot(sv, sect(sslab_ref, o_sxf, 2 * Hw, SW), preferred_element_type=f32)
              + jnp.dot(sv_rev, sect(sslab_ref, o_sxb, 2 * Hw, SW), preferred_element_type=f32)
              + sect(sslab_ref, o_sbx, 1, SW))                                # (S*B, 6Hs)
        shh = sect(sslab_ref, o_shh, 2 * Hs, SW)
        sbh = jnp.broadcast_to(sect(sslab_ref, o_sbh, 1, SW), (B, SW))

        # ---- 6) sentence bi-GRU (zero-initialized hidden, as in the torch module) ----
        hs = jnp.zeros((B, 2 * Hs), f32)
        sf_o = [None] * S
        sb_o = [None] * S
        for s in range(S):
            hs = _bigru_cell(gs[s * B:(s + 1) * B, :], hs, shh, sbh, Hs)
            sf_o[s] = hs[:, :Hs]
            sb_o[S - 1 - s] = hs[:, Hs:]
        sff = jnp.concatenate(sf_o, axis=0)                                   # (S*B, Hs)
        sfb = jnp.concatenate(sb_o, axis=0)

        # ---- 7) sentence attention + pooling + final FC ----
        sattw = sect(sslab_ref, o_saw, 2 * Hs, 2 * Hs)
        us = jnp.tanh(jnp.dot(sff, sattw[:Hs, :], preferred_element_type=f32)
                      + jnp.dot(sfb, sattw[Hs:, :], preferred_element_type=f32)
                      + sect(sslab_ref, o_sab, 1, 2 * Hs))
        es = jnp.exp(jnp.tanh(jnp.sum(us * sect(sslab_ref, o_scx, 1, 2 * Hs),
                                      axis=-1, keepdims=True)))               # (S*B, 1)
        spool = jnp.concatenate([sff * es, sfb * es, es], axis=-1)            # (S*B, 2Hs+1)
        sred = jnp.dot(sect(sslab_ref, o_ssm, B, S * B), spool,
                       preferred_element_type=f32)                            # (B, 2Hs+1)
        pooled = sred[:, :2 * Hs] * pl.reciprocal(sred[:, 2 * Hs:2 * Hs + 1], approx=True)

        out_ref[...] = (jnp.dot(pooled, sect(sslab_ref, o_fcw, 2 * Hs, C),
                                preferred_element_type=f32)
                        + sect(sslab_ref, o_fcb, 1, C))

    # TODO(synk): for batch >> 2 add a "parallel" grid axis over batch (uses v7x's 2nd TensorCore);
    # at B=2 a single gridless invocation is faster than paying per-step grid overhead.
    return pl.pallas_call(
        kernel,
        out_shape=jax.ShapeDtypeStruct((B, C), jnp.float32),
    )(ids_all, emb_table.astype(jnp.float32), wslab, sslab)


# ---------------- pure-JAX reference (same math, no Pallas) ----------------
def _ref_gru_step(x_t, h, wih, whh, bih, bhh):
    H = h.shape[-1]
    gx = x_t @ wih + bih
    gh = h @ whh + bhh
    r = jax.nn.sigmoid(gx[:, :H] + gh[:, :H])
    z = jax.nn.sigmoid(gx[:, H:2 * H] + gh[:, H:2 * H])
    n = jnp.tanh(gx[:, 2 * H:] + r * gh[:, 2 * H:])
    return (1.0 - z) * n + z * h


def _ref_bigru(x, h_f, h_b, p):
    T = x.shape[0]
    of, ob = [], [None] * T
    for t in range(T):
        h_f = _ref_gru_step(x[t], h_f, p["wih_f"], p["whh_f"], p["bih_f"], p["bhh_f"])
        of.append(h_f)
    for i in range(T):
        t = T - 1 - i
        h_b = _ref_gru_step(x[t], h_b, p["wih_b"], p["whh_b"], p["bih_b"], p["bhh_b"])
        ob[t] = h_b
    fo = jnp.concatenate([jnp.stack(of), jnp.stack(ob)], axis=-1)   # (T, B, 2H)
    return fo, h_f, h_b


def _ref_att(fo, att_w, att_b, ctx_w):
    u = jnp.tanh(fo @ att_w + att_b)
    sc = jnp.tanh(u @ ctx_w)[..., 0]            # (T, B)
    alpha = jax.nn.softmax(sc, axis=0)          # softmax over time
    return jnp.sum(fo * alpha[:, :, None], axis=0)


def ref_forward(x_idx, emb, wp, sp):
    B = x_idx.shape[0]
    x = jnp.transpose(emb[x_idx], (1, 2, 0, 3))   # (S, T, B, E)
    Hw = wp["whh_f"].shape[0]
    h_f = jnp.zeros((B, Hw), jnp.float32)
    h_b = jnp.zeros((B, Hw), jnp.float32)
    svecs = []
    for s in range(x.shape[0]):
        fo, h_f, h_b = _ref_bigru(x[s], h_f, h_b, wp)
        svecs.append(_ref_att(fo, wp["att_w"], wp["att_b"], wp["ctx_w"]))
    sv = jnp.stack(svecs)                          # (S, B, 2Hw)
    Hs = sp["whh_f"].shape[0]
    fo, _, _ = _ref_bigru(sv, jnp.zeros((B, Hs), jnp.float32),
                          jnp.zeros((B, Hs), jnp.float32), sp)
    pooled = _ref_att(fo, sp["att_w"], sp["att_b"], sp["ctx_w"])
    return pooled @ sp["fc_w"] + sp["fc_b"]


# ---------------- main ----------------
if __name__ == "__main__":
    key = jax.random.PRNGKey(0)
    keys = iter(jax.random.split(key, 40))

    def nrm(shape, std=0.05):
        return jax.random.normal(next(keys), shape, dtype=jnp.float32) * std

    emb_table = nrm((VOCAB, EMBED), std=0.1)

    word_params = dict(
        wih_f=nrm((EMBED, 3 * WORD_H)), whh_f=nrm((WORD_H, 3 * WORD_H)),
        bih_f=nrm((1, 3 * WORD_H)), bhh_f=nrm((1, 3 * WORD_H)),
        wih_b=nrm((EMBED, 3 * WORD_H)), whh_b=nrm((WORD_H, 3 * WORD_H)),
        bih_b=nrm((1, 3 * WORD_H)), bhh_b=nrm((1, 3 * WORD_H)),
        att_w=nrm((2 * WORD_H, 2 * WORD_H)), att_b=nrm((1, 2 * WORD_H)),
        ctx_w=nrm((2 * WORD_H, 1)),
    )
    sent_params = dict(
        wih_f=nrm((2 * WORD_H, 3 * SENT_H)), whh_f=nrm((SENT_H, 3 * SENT_H)),
        bih_f=nrm((1, 3 * SENT_H)), bhh_f=nrm((1, 3 * SENT_H)),
        wih_b=nrm((2 * WORD_H, 3 * SENT_H)), whh_b=nrm((SENT_H, 3 * SENT_H)),
        bih_b=nrm((1, 3 * SENT_H)), bhh_b=nrm((1, 3 * SENT_H)),
        att_w=nrm((2 * SENT_H, 2 * SENT_H)), att_b=nrm((1, 2 * SENT_H)),
        ctx_w=nrm((2 * SENT_H, 1)),
        fc_w=nrm((2 * SENT_H, NUM_CLASSES)), fc_b=nrm((1, NUM_CLASSES)),
    )

    x_idx = jax.random.randint(next(keys), (BATCH, MAX_SENT, MAX_WORD), 0, VOCAB)

    logits = jax.jit(hier_att_net)(x_idx, emb_table, word_params, sent_params)
    logits = jax.block_until_ready(logits)

    ref = ref_forward(x_idx, emb_table, word_params, sent_params)
    err = float(jnp.max(jnp.abs(logits - ref)))
    assert logits.shape == (BATCH, NUM_CLASSES), logits.shape
    assert err < 5e-3, f"max abs diff vs reference: {err}"
    print("KERNEL_OK")
</pallas_src>

<mosaic_0001>
module attributes {stable_mosaic.version = 11 : i64} {
  func.func @kernel(%arg0: memref<96x1xi32, #tpu.memory_space<vmem>>, %arg1: memref<40x32xf32, #tpu.memory_space<vmem>>, %arg2: memref<168x96xf32, #tpu.memory_space<vmem>>, %arg3: memref<208x96xf32, #tpu.memory_space<vmem>>, %arg4: memref<2x5xf32, #tpu.memory_space<vmem>>) attributes {dimension_semantics = [], scalar_prefetch = 0 : i64, scratch_operands = 0 : i64, tpu.core_type = #tpu.core_type<tc>} {
    %c0 = arith.constant 0 : index
    %c0_0 = arith.constant 0 : index
    %0 = vector.load %arg0[%c0, %c0_0] : memref<96x1xi32, #tpu.memory_space<vmem>>, vector<96x1xi32>
    %1 = tpu.iota {dimensions = array<i32: 1>} : vector<96x40xi32>
    %2 = vector.broadcast %0 : vector<96x1xi32> to vector<96x40xi32>
    %3 = arith.cmpi eq, %2, %1 : vector<96x40xi32>
    %4 = arith.extui %3 : vector<96x40xi1> to vector<96x40xi32>
    %5 = arith.sitofp %4 : vector<96x40xi32> to vector<96x40xf32>
    %c0_1 = arith.constant 0 : index
    %c0_2 = arith.constant 0 : index
    %6 = vector.load %arg1[%c0_1, %c0_2] : memref<40x32xf32, #tpu.memory_space<vmem>>, vector<40x32xf32>
    %cst = arith.constant dense<0.000000e+00> : vector<96x32xf32>
    %7 = tpu.matmul %5, %6, %cst {dimension_numbers = #tpu.dot_dimension_numbers<[1], [0], [0], [1], [0, 0, 1, 1], [], []>} : vector<96x40xf32>, vector<40x32xf32>, vector<96x32xf32> -> vector<96x32xf32>
    %8 = vector.extract_strided_slice %7 {offsets = [0, 0], sizes = [48, 32], strides = [1, 1]} : vector<96x32xf32> to vector<48x32xf32>
    %9 = vector.extract_strided_slice %7 {offsets = [48, 0], sizes = [48, 32], strides = [1, 1]} : vector<96x32xf32> to vector<48x32xf32>
    %c0_3 = arith.constant 0 : index
    %c0_4 = arith.constant 0 : index
    %10 = vector.load %arg2[%c0_3, %c0_4] : memref<168x96xf32, #tpu.memory_space<vmem>>, vector<32x96xf32>
    %cst_5 = arith.constant dense<0.000000e+00> : vector<48x96xf32>
    %11 = tpu.matmul %8, %10, %cst_5 {dimension_numbers = #tpu.dot_dimension_numbers<[1], [0], [0], [1], [0, 0, 1, 1], [], []>} : vector<48x32xf32>, vector<32x96xf32>, vector<48x96xf32> -> vector<48x96xf32>
    %c32 = arith.constant 32 : index
    %c0_6 = arith.constant 0 : index
    %12 = vector.load %arg2[%c32, %c0_6] : memref<168x96xf32, #tpu.memory_space<vmem>>, vector<32x96xf32>
    %cst_7 = arith.constant dense<0.000000e+00> : vector<48x96xf32>
    %13 = tpu.matmul %9, %12, %cst_7 {dimension_numbers = #tpu.dot_dimension_numbers<[1], [0], [0], [1], [0, 0, 1, 1], [], []>} : vector<48x32xf32>, vector<32x96xf32>, vector<48x96xf32> -> vector<48x96xf32>
    %14 = arith.addf %11, %13 : vector<48x96xf32>
    %c96 = arith.constant 96 : index
    %c0_8 = arith.constant 0 : index
    %15 = vector.load %arg2[%c96, %c0_8] : memref<168x96xf32, #tpu.memory_space<vmem>>, vector<8x96xf32>
    %16 = vector.extract_strided_slice %15 {offsets = [0, 0], sizes = [1, 96], strides = [1, 1]} : vector<8x96xf32> to vector<1x96xf32>
    %17 = vector.broadcast %16 : vector<1x96xf32> to vector<48x96xf32>
    %18 = arith.addf %14, %17 : vector<48x96xf32>
    %c64 = arith.constant 64 : index
    %c0_9 = arith.constant 0 : index
    %19 = vector.load %arg2[%c64, %c0_9] : memref<168x96xf32, #tpu.memory_space<vmem>>, vector<32x96xf32>
    %c104 = arith.constant 104 : index
    %c0_10 = arith.constant 0 : index
    %20 = vector.load %arg2[%c104, %c0_10] : memref<168x96xf32, #tpu.memory_space<vmem>>, vector<8x96xf32>
    %21 = vector.extract_strided_slice %20 {offsets = [0, 0], sizes = [1, 96], strides = [1, 1]} : vector<8x96xf32> to vector<1x96xf32>
    %22 = vector.shape_cast %21 : vector<1x96xf32> to vector<1x96xf32>
    %23 = vector.broadcast %22 : vector<1x96xf32> to vector<2x96xf32>
    %cst_11 = arith.constant 0.000000e+00 : f32
    %24 = vector.broadcast %cst_11 : f32 to vector<2x32xf32>
    %25 = vector.extract_strided_slice %18 {offsets = [0, 0], sizes = [2, 96], strides = [1, 1]} : vector<48x96xf32> to vector<2x96xf32>
    %cst_12 = arith.constant dense<0.000000e+00> : vector<2x96xf32>
    %26 = tpu.matmul %24, %19, %cst_12 {dimension_numbers = #tpu.dot_dimension_numbers<[1], [0], [0], [1], [0, 0, 1, 1], [], []>} : vector<2x32xf32>, vector<32x96xf32>, vector<2x96xf32> -> vector<2x96xf32>
    %27 = arith.addf %26, %23 : vector<2x96xf32>
    %28 = vector.extract_strided_slice %25 {offsets = [0, 0], sizes = [2, 64], strides = [1, 1]} : vector<2x96xf32> to vector<2x64xf32>
    %29 = vector.extract_strided_slice %27 {offsets = [0, 0], sizes = [2, 64], strides = [1, 1]} : vector<2x96xf32> to vector<2x64xf32>
    %30 = arith.addf %28, %29 : vector<2x64xf32>
    %31 = arith.negf %30 : vector<2x64xf32>
    %32 = math.exp %31 : vector<2x64xf32>
    %cst_13 = arith.constant 1.000000e+00 : f32
    %33 = vector.broadcast %cst_13 : f32 to vector<2x64xf32>
    %34 = arith.addf %33, %32 : vector<2x64xf32>
    %35 = arith.divf %33, %34 : vector<2x64xf32>
    %36 = vector.extract_strided_slice %35 {offsets = [0, 0], sizes = [2, 32], strides = [1, 1]} : vector<2x64xf32> to vector<2x32xf32>
    %37 = vector.extract_strided_slice %35 {offsets = [0, 32], sizes = [2, 32], strides = [1, 1]} : vector<2x64xf32> to vector<2x32xf32>
    %38 = vector.extract_strided_slice %25 {offsets = [0, 64], sizes = [2, 32], strides = [1, 1]} : vector<2x96xf32> to vector<2x32xf32>
    %39 = vector.extract_strided_slice %27 {offsets = [0, 64], sizes = [2, 32], strides = [1, 1]} : vector<2x96xf32> to vector<2x32xf32>
    %40 = arith.mulf %36, %39 : vector<2x32xf32>
    %41 = arith.addf %38, %40 : vector<2x32xf32>
    %42 = math.tanh %41 : vector<2x32xf32>
    %cst_14 = arith.constant 1.000000e+00 : f32
    %43 = vector.broadcast %cst_14 : f32 to vector<2x32xf32>
    %44 = arith.subf %43, %37 : vector<2x32xf32>
    %45 = arith.mulf %44, %42 : vector<2x32xf32>
    %46 = arith.mulf %37, %24 : vector<2x32xf32>
    %47 = arith.addf %45, %46 : vector<2x32xf32>
    %48 = vector.extract_strided_slice %47 {offsets = [0, 0], sizes = [2, 16], strides = [1, 1]} : vector<2x32xf32> to vector<2x16xf32>
    %49 = vector.extract_strided_slice %47 {offsets = [0, 16], sizes = [2, 16], strides = [1, 1]} : vector<2x32xf32> to vector<2x16xf32>
    %50 = vector.extract_strided_slice %18 {offsets = [2, 0], sizes = [2, 96], strides = [1, 1]} : vector<48x96xf32> to vector<2x96xf32>
    %cst_15 = arith.constant dense<0.000000e+00> : vector<2x96xf32>
    %51 = tpu.matmul %47, %19, %cst_15 {dimension_numbers = #tpu.dot_dimension_numbers<[1], [0], [0], [1], [0, 0, 1, 1], [], []>} : vector<2x32xf32>, vector<32x96xf32>, vector<2x96xf32> -> vector<2x96xf32>
    %52 = arith.addf %51, %23 : vector<2x96xf32>
    %53 = vector.extract_strided_slice %50 {offsets = [0, 0], sizes = [2, 64], strides = [1, 1]} : vector<2x96xf32> to vector<2x64xf32>
    %54 = vector.extract_strided_slice %52 {offsets = [0, 0], sizes = [2, 64], strides = [1, 1]} : vector<2x96xf32> to vector<2x64xf32>
    %55 = arith.addf %53, %54 : vector<2x64xf32>
    %56 = arith.negf %55 : vector<2x64xf32>
    %57 = math.exp %56 : vector<2x64xf32>
    %cst_16 = arith.constant 1.000000e+00 : f32
    %58 = vector.broadcast %cst_16 : f32 to vector<2x64xf32>
    %59 = arith.addf %58, %57 : vector<2x64xf32>
    %60 = arith.divf %58, %59 : vector<2x64xf32>
    %61 = vector.extract_strided_slice %60 {offsets = [0, 0], sizes = [2, 32], strides = [1, 1]} : vector<2x64xf32> to vector<2x32xf32>
    %62 = vector.extract_strided_slice %60 {offsets = [0, 32], sizes = [2, 32], strides = [1, 1]} : vector<2x64xf32> to vector<2x32xf32>
    %63 = vector.extract_strided_slice %50 {offsets = [0, 64], sizes = [2, 32], strides = [1, 1]} : vector<2x96xf32> to vector<2x32xf32>
    %64 = vector.extract_strided_slice %52 {offsets = [0, 64], sizes = [2, 32], strides = [1, 1]} : vector<2x96xf32> to vector<2x32xf32>
    %65 = arith.mulf %61, %64 : vector<2x32xf32>
    %66 = arith.addf %63, %65 : vector<2x32xf32>
    %67 = math.tanh %66 : vector<2x32xf32>
    %cst_17 = arith.constant 1.000000e+00 : f32
    %68 = vector.broadcast %cst_17 : f32 to vector<2x32xf32>
    %69 = arith.subf %68, %62 : vector<2x32xf32>
    %70 = arith.mulf %69, %67 : vector<2x32xf32>
    %71 = arith.mulf %62, %47 : vector<2x32xf32>
    %72 = arith.addf %70, %71 : vector<2x32xf32>
    %73 = vector.extract_strided_slice %72 {offsets = [0, 0], sizes = [2, 16], strides = [1, 1]} : vector<2x32xf32> to vector<2x16xf32>
    %74 = vector.extract_strided_slice %72 {offsets = [0, 16], sizes = [2, 16], strides = [1, 1]} : vector<2x32xf32> to vector<2x16xf32>
    %75 = vector.extract_strided_slice %18 {offsets = [4, 0], sizes = [2, 96], strides = [1, 1]} : vector<48x96xf32> to vector<2x96xf32>
    %cst_18 = arith.constant dense<0.000000e+00> : vector<2x96xf32>
    %76 = tpu.matmul %72, %19, %cst_18 {dimension_numbers = #tpu.dot_dimension_numbers<[1], [0], [0], [1], [0, 0, 1, 1], [], []>} : vector<2x32xf32>, vector<32x96xf32>, vector<2x96xf32> -> vector<2x96xf32>
    %77 = arith.addf %76, %23 : vector<2x96xf32>
    %78 = vector.extract_strided_slice %75 {offsets = [0, 0], sizes = [2, 64], strides = [1, 1]} : vector<2x96xf32> to vector<2x64xf32>
    %79 = vector.extract_strided_slice %77 {offsets = [0, 0], sizes = [2, 64], strides = [1, 1]} : vector<2x96xf32> to vector<2x64xf32>
    %80 = arith.addf %78, %79 : vector<2x64xf32>
    %81 = arith.negf %80 : vector<2x64xf32>
    %82 = math.exp %81 : vector<2x64xf32>
    %cst_19 = arith.constant 1.000000e+00 : f32
    %83 = vector.broadcast %cst_19 : f32 to vector<2x64xf32>
    %84 = arith.addf %83, %82 : vector<2x64xf32>
    %85 = arith.divf %83, %84 : vector<2x64xf32>
    %86 = vector.extract_strided_slice %85 {offsets = [0, 0], sizes = [2, 32], strides = [1, 1]} : vector<2x64xf32> to vector<2x32xf32>
    %87 = vector.extract_strided_slice %85 {offsets = [0, 32], sizes = [2, 32], strides = [1, 1]} : vector<2x64xf32> to vector<2x32xf32>
    %88 = vector.extract_strided_slice %75 {offsets = [0, 64], sizes = [2, 32], strides = [1, 1]} : vector<2x96xf32> to vector<2x32xf32>
    %89 = vector.extract_strided_slice %77 {offsets = [0, 64], sizes = [2, 32], strides = [1, 1]} : vector<2x96xf32> to vector<2x32xf32>
    %90 = arith.mulf %86, %89 : vector<2x32xf32>
    %91 = arith.addf %88, %90 : vector<2x32xf32>
    %92 = math.tanh %91 : vector<2x32xf32>
    %cst_20 = arith.constant 1.000000e+00 : f32
    %93 = vector.broadcast %cst_20 : f32 to vector<2x32xf32>
    %94 = arith.subf %93, %87 : vector<2x32xf32>
    %95 = arith.mulf %94, %92 : vector<2x32xf32>
    %96 = arith.mulf %87, %72 : vector<2x32xf32>
    %97 = arith.addf %95, %96 : vector<2x32xf32>
    %98 = vector.extract_strided_slice %97 {offsets = [0, 0], sizes = [2, 16], strides = [1, 1]} : vector<2x32xf32> to vector<2x16xf32>
    %99 = vector.extract_strided_slice %97 {offsets = [0, 16], sizes = [2, 16], strides = [1, 1]} : vector<2x32xf32> to vector<2x16xf32>
    %100 = vector.extract_strided_slice %18 {offsets = [6, 0], sizes = [2, 96], strides = [1, 1]} : vector<48x96xf32> to vector<2x96xf32>
    %cst_21 = arith.constant dense<0.000000e+00> : vector<2x96xf32>
    %101 = tpu.matmul %97, %19, %cst_21 {dimension_numbers = #tpu.dot_dimension_numbers<[1], [0], [0], [1], [0, 0, 1, 1], [], []>} : vector<2x32xf32>, vector<32x96xf32>, vector<2x96xf32> -> vector<2x96xf32>
    %102 = arith.addf %101, %23 : vector<2x96xf32>
    %103 = vector.extract_strided_slice %100 {offsets = [0, 0], sizes = [2, 64], strides = [1, 1]} : vector<2x96xf32> to vector<2x64xf32>
    %104 = vector.extract_strided_slice %102 {offsets = [0, 0], sizes = [2, 64], strides = [1, 1]} : vector<2x96xf32> to vector<2x64xf32>
    %105 = arith.addf %103, %104 : vector<2x64xf32>
    %106 = arith.negf %105 : vector<2x64xf32>
    %107 = math.exp %106 : vector<2x64xf32>
    %cst_22 = arith.constant 1.000000e+00 : f32
    %108 = vector.broadcast %cst_22 : f32 to vector<2x64xf32>
    %109 = arith.addf %108, %107 : vector<2x64xf32>
    %110 = arith.divf %108, %109 : vector<2x64xf32>
    %111 = vector.extract_strided_slice %110 {offsets = [0, 0], sizes = [2, 32], strides = [1, 1]} : vector<2x64xf32> to vector<2x32xf32>
    %112 = vector.extract_strided_slice %110 {offsets = [0, 32], sizes = [2, 32], strides = [1, 1]} : vector<2x64xf32> to vector<2x32xf32>
    %113 = vector.extract_strided_slice %100 {offsets = [0, 64], sizes = [2, 32], strides = [1, 1]} : vector<2x96xf32> to vector<2x32xf32>
    %114 = vector.extract_strided_slice %102 {offsets = [0, 64], sizes = [2, 32], strides = [1, 1]} : vector<2x96xf32> to vector<2x32xf32>
    %115 = arith.mulf %111, %114 : vector<2x32xf32>
    %116 = arith.addf %113, %115 : vector<2x32xf32>
    %117 = math.tanh %116 : vector<2x32xf32>
    %cst_23 = arith.constant 1.000000e+00 : f32
    %118 = vector.broadcast %cst_23 : f32 to vector<2x32xf32>
    %119 = arith.subf %118, %112 : vector<2x32xf32>
    %120 = arith.mulf %119, %117 : vector<2x32xf32>
    %121 = arith.mulf %112, %97 : vector<2x32xf32>
    %122 = arith.addf %120, %121 : vector<2x32xf32>
    %123 = vector.extract_strided_slice %122 {offsets = [0, 0], sizes = [2, 16], strides = [1, 1]} : vector<2x32xf32> to vector<2x16xf32>
    %124 = vector.extract_strided_slice %122 {offsets = [0, 16], sizes = [2, 16], strides = [1, 1]} : vector<2x32xf32> to vector<2x16xf32>
    %125 = vector.extract_strided_slice %18 {offsets = [8, 0], sizes = [2, 96], strides = [1, 1]} : vector<48x96xf32> to vector<2x96xf32>
    %cst_24 = arith.constant dense<0.000000e+00> : vector<2x96xf32>
    %126 = tpu.matmul %122, %19, %cst_24 {dimension_numbers = #tpu.dot_dimension_numbers<[1], [0], [0], [1], [0, 0, 1, 1], [], []>} : vector<2x32xf32>, vector<32x96xf32>, vector<2x96xf32> -> vector<2x96xf32>
    %127 = arith.addf %126, %23 : vector<2x96xf32>
    %128 = vector.extract_strided_slice %125 {offsets = [0, 0], sizes = [2, 64], strides = [1, 1]} : vector<2x96xf32> to vector<2x64xf32>
    %129 = vector.extract_strided_slice %127 {offsets = [0, 0], sizes = [2, 64], strides = [1, 1]} : vector<2x96xf32> to vector<2x64xf32>
    %130 = arith.addf %128, %129 : vector<2x64xf32>
    %131 = arith.negf %130 : vector<2x64xf32>
    %132 = math.exp %131 : vector<2x64xf32>
    %cst_25 = arith.constant 1.000000e+00 : f32
    %133 = vector.broadcast %cst_25 : f32 to vector<2x64xf32>
    %134 = arith.addf %133, %132 : vector<2x64xf32>
    %135 = arith.divf %133, %134 : vector<2x64xf32>
    %136 = vector.extract_strided_slice %135 {offsets = [0, 0], sizes = [2, 32], strides = [1, 1]} : vector<2x64xf32> to vector<2x32xf32>
    %137 = vector.extract_strided_slice %135 {offsets = [0, 32], sizes = [2, 32], strides = [1, 1]} : vector<2x64xf32> to vector<2x32xf32>
    %138 = vector.extract_strided_slice %125 {offsets = [0, 64], sizes = [2, 32], strides = [1, 1]} : vector<2x96xf32> to vector<2x32xf32>
    %139 = vector.extract_strided_slice %127 {offsets = [0, 64], sizes = [2, 32], strides = [1, 1]} : vector<2x96xf32> to vector<2x32xf32>
    %140 = arith.mulf %136, %139 : vector<2x32xf32>
    %141 = arith.addf %138, %140 : vector<2x32xf32>
    %142 = math.tanh %141 : vector<2x32xf32>
    %cst_26 = arith.constant 1.000000e+00 : f32
    %143 = vector.broadcast %cst_26 : f32 to vector<2x32xf32>
    %144 = arith.subf %143, %137 : vector<2x32xf32>
    %145 = arith.mulf %144, %142 : vector<2x32xf32>
    %146 = arith.mulf %137, %122 : vector<2x32xf32>
    %147 = arith.addf %145, %146 : vector<2x32xf32>
    %148 = vector.extract_strided_slice %147 {offsets = [0, 0], sizes = [2, 16], strides = [1, 1]} : vector<2x32xf32> to vector<2x16xf32>
    %149 = vector.extract_strided_slice %147 {offsets = [0, 16], sizes = [2, 16], strides = [1, 1]} : vector<2x32xf32> to vector<2x16xf32>
    %150 = vector.extract_strided_slice %18 {offsets = [10, 0], sizes = [2, 96], strides = [1, 1]} : vector<48x96xf32> to vector<2x96xf32>
    %cst_27 = arith.constant dense<0.000000e+00> : vector<2x96xf32>
    %151 = tpu.matmul %147, %19, %cst_27 {dimension_numbers = #tpu.dot_dimension_numbers<[1], [0], [0], [1], [0, 0, 1, 1], [], []>} : vector<2x32xf32>, vector<32x96xf32>, vector<2x96xf32> -> vector<2x96xf32>
    %152 = arith.addf %151, %23 : vector<2x96xf32>
    %153 = vector.extract_strided_slice %150 {offsets = [0, 0], sizes = [2, 64], strides = [1, 1]} : vector<2x96xf32> to vector<2x64xf32>
    %154 = vector.extract_strided_slice %152 {offsets = [0, 0], sizes = [2, 64], strides = [1, 1]} : vector<2x96xf32> to vector<2x64xf32>
    %155 = arith.addf %153, %154 : vector<2x64xf32>
    %156 = arith.negf %155 : vector<2x64xf32>
    %157 = math.exp %156 : vector<2x64xf32>
    %cst_28 = arith.constant 1.000000e+00 : f32
    %158 = vector.broadcast %cst_28 : f32 to vector<2x64xf32>
    %159 = arith.addf %158, %157 : vector<2x64xf32>
    %160 = arith.divf %158, %159 : vector<2x64xf32>
    %161 = vector.extract_strided_slice %160 {offsets = [0, 0], sizes = [2, 32], strides = [1, 1]} : vector<2x64xf32> to vector<2x32xf32>
    %162 = vector.extract_strided_slice %160 {offsets = [0, 32], sizes = [2, 32], strides = [1, 1]} : vector<2x64xf32> to vector<2x32xf32>
    %163 = vector.extract_strided_slice %150 {offsets = [0, 64], sizes = [2, 32], strides = [1, 1]} : vector<2x96xf32> to vector<2x32xf32>
    %164 = vector.extract_strided_slice %152 {offsets = [0, 64], sizes = [2, 32], strides = [1, 1]} : vector<2x96xf32> to vector<2x32xf32>
    %165 = arith.mulf %161, %164 : vector<2x32xf32>
    %166 = arith.addf %163, %165 : vector<2x32xf32>
    %167 = math.tanh %166 : vector<2x32xf32>
    %cst_29 = arith.constant 1.000000e+00 : f32
    %168 = vector.broadcast %cst_29 : f32 to vector<2x32xf32>
    %169 = arith.subf %168, %162 : vector<2x32xf32>
    %170 = arith.mulf %169, %167 : vector<2x32xf32>
    %171 = arith.mulf %162, %147 : vector<2x32xf32>
    %172 = arith.addf %170, %171 : vector<2x32xf32>
    %173 = vector.extract_strided_slice %172 {offsets = [0, 0], sizes = [2, 16], strides = [1, 1]} : vector<2x32xf32> to vector<2x16xf32>
    %174 = vector.extract_strided_slice %172 {offsets = [0, 16], sizes = [2, 16], strides = [1, 1]} : vector<2x32xf32> to vector<2x16xf32>
    %175 = vector.extract_strided_slice %18 {offsets = [12, 0], sizes = [2, 96], strides = [1, 1]} : vector<48x96xf32> to vector<2x96xf32>
    %cst_30 = arith.constant dense<0.000000e+00> : vector<2x96xf32>
    %176 = tpu.matmul %172, %19, %cst_30 {dimension_numbers = #tpu.dot_dimension_numbers<[1], [0], [0], [1], [0, 0, 1, 1], [], []>} : vector<2x32xf32>, vector<32x96xf32>, vector<2x96xf32> -> vector<2x96xf32>
    %177 = arith.addf %176, %23 : vector<2x96xf32>
    %178 = vector.extract_strided_slice %175 {offsets = [0, 0], sizes = [2, 64], strides = [1, 1]} : vector<2x96xf32> to vector<2x64xf32>
    %179 = vector.extract_strided_slice %177 {offsets = [0, 0], sizes = [2, 64], strides = [1, 1]} : vector<2x96xf32> to vector<2x64xf32>
    %180 = arith.addf %178, %179 : vector<2x64xf32>
    %181 = arith.negf %180 : vector<2x64xf32>
    %182 = math.exp %181 : vector<2x64xf32>
    %cst_31 = arith.constant 1.000000e+00 : f32
    %183 = vector.broadcast %cst_31 : f32 to vector<2x64xf32>
    %184 = arith.addf %183, %182 : vector<2x64xf32>
    %185 = arith.divf %183, %184 : vector<2x64xf32>
    %186 = vector.extract_strided_slice %185 {offsets = [0, 0], sizes = [2, 32], strides = [1, 1]} : vector<2x64xf32> to vector<2x32xf32>
    %187 = vector.extract_strided_slice %185 {offsets = [0, 32], sizes = [2, 32], strides = [1, 1]} : vector<2x64xf32> to vector<2x32xf32>
    %188 = vector.extract_strided_slice %175 {offsets = [0, 64], sizes = [2, 32], strides = [1, 1]} : vector<2x96xf32> to vector<2x32xf32>
    %189 = vector.extract_strided_slice %177 {offsets = [0, 64], sizes = [2, 32], strides = [1, 1]} : vector<2x96xf32> to vector<2x32xf32>
    %190 = arith.mulf %186, %189 : vector<2x32xf32>
    %191 = arith.addf %188, %190 : vector<2x32xf32>
    %192 = math.tanh %191 : vector<2x32xf32>
    %cst_32 = arith.constant 1.000000e+00 : f32
    %193 = vector.broadcast %cst_32 : f32 to vector<2x32xf32>
    %194 = arith.subf %193, %187 : vector<2x32xf32>
    %195 = arith.mulf %194, %192 : vector<2x32xf32>
    %196 = arith.mulf %187, %172 : vector<2x32xf32>
    %197 = arith.addf %195, %196 : vector<2x32xf32>
    %198 = vector.extract_strided_slice %197 {offsets = [0, 0], sizes = [2, 16], strides = [1, 1]} : vector<2x32xf32> to vector<2x16xf32>
    %199 = vector.extract_strided_slice %197 {offsets = [0, 16], sizes = [2, 16], strides = [1, 1]} : vector<2x32xf32> to vector<2x16xf32>
    %200 = vector.extract_strided_slice %18 {offsets = [14, 0], sizes = [2, 96], strides = [1, 1]} : vector<48x96xf32> to vector<2x96xf32>
    %cst_33 = arith.constant dense<0.000000e+00> : vector<2x96xf32>
    %201 = tpu.matmul %197, %19, %cst_33 {dimension_numbers = #tpu.dot_dimension_numbers<[1], [0], [0], [1], [0, 0, 1, 1], [], []>} : vector<2x32xf32>, vector<32x96xf32>, vector<2x96xf32> -> vector<2x96xf32>
    %202 = arith.addf %201, %23 : vector<2x96xf32>
    %203 = vector.extract_strided_slice %200 {offsets = [0, 0], sizes = [2, 64], strides = [1, 1]} : vector<2x96xf32> to vector<2x64xf32>
    %204 = vector.extract_strided_slice %202 {offsets = [0, 0], sizes = [2, 64], strides = [1, 1]} : vector<2x96xf32> to vector<2x64xf32>
    %205 = arith.addf %203, %204 : vector<2x64xf32>
    %206 = arith.negf %205 : vector<2x64xf32>
    %207 = math.exp %206 : vector<2x64xf32>
    %cst_34 = arith.constant 1.000000e+00 : f32
    %208 = vector.broadcast %cst_34 : f32 to vector<2x64xf32>
    %209 = arith.addf %208, %207 : vector<2x64xf32>
    %210 = arith.divf %208, %209 : vector<2x64xf32>
    %211 = vector.extract_strided_slice %210 {offsets = [0, 0], sizes = [2, 32], strides = [1, 1]} : vector<2x64xf32> to vector<2x32xf32>
    %212 = vector.extract_strided_slice %210 {offsets = [0, 32], sizes = [2, 32], strides = [1, 1]} : vector<2x64xf32> to vector<2x32xf32>
    %213 = vector.extract_strided_slice %200 {offsets = [0, 64], sizes = [2, 32], strides = [1, 1]} : vector<2x96xf32> to vector<2x32xf32>
    %214 = vector.extract_strided_slice %202 {offsets = [0, 64], sizes = [2, 32], strides = [1, 1]} : vector<2x96xf32> to vector<2x32xf32>
    %215 = arith.mulf %211, %214 : vector<2x32xf32>
    %216 = arith.addf %213, %215 : vector<2x32xf32>
    %217 = math.tanh %216 : vector<2x32xf32>
    %cst_35 = arith.constant 1.000000e+00 : f32
    %218 = vector.broadcast %cst_35 : f32 to vector<2x32xf32>
    %219 = arith.subf %218, %212 : vector<2x32xf32>
    %220 = arith.mulf %219, %217 : vector<2x32xf32>
    %221 = arith.mulf %212, %197 : vector<2x32xf32>
    %222 = arith.addf %220, %221 : vector<2x32xf32>
    %223 = vector.extract_strided_slice %222 {offsets = [0, 0], sizes = [2, 16], strides = [1, 1]} : vector<2x32xf32> to vector<2x16xf32>
    %224 = vector.extract_strided_slice %222 {offsets = [0, 16], sizes = [2, 16], strides = [1, 1]} : vector<2x32xf32> to vector<2x16xf32>
    %225 = vector.extract_strided_slice %18 {offsets = [16, 0], sizes = [2, 96], strides = [1, 1]} : vector<48x96xf32> to vector<2x96xf32>
    %cst_36 = arith.constant dense<0.000000e+00> : vector<2x96xf32>
    %226 = tpu.matmul %222, %19, %cst_36 {dimension_numbers = #tpu.dot_dimension_numbers<[1], [0], [0], [1], [0, 0, 1, 1], [], []>} : vector<2x32xf32>, vector<32x96xf32>, vector<2x96xf32> -> vector<2x96xf32>
    %227 = arith.addf %226, %23 : vector<2x96xf32>
    %228 = vector.extract_strided_slice %225 {offsets = [0, 0], sizes = [2, 64], strides = [1, 1]} : vector<2x96xf32> to vector<2x64xf32>
    %229 = vector.extract_strided_slice %227 {offsets = [0, 0], sizes = [2, 64], strides = [1, 1]} : vector<2x96xf32> to vector<2x64xf32>
    %230 = arith.addf %228, %229 : vector<2x64xf32>
    %231 = arith.negf %230 : vector<2x64xf32>
    %232 = math.exp %231 : vector<2x64xf32>
    %cst_37 = arith.constant 1.000000e+00 : f32
    %233 = vector.broadcast %cst_37 : f32 to vector<2x64xf32>
    %234 = arith.addf %233, %232 : vector<2x64xf32>
    %235 = arith.divf %233, %234 : vector<2x64xf32>
    %236 = vector.extract_strided_slice %235 {offsets = [0, 0], sizes = [2, 32], strides = [1, 1]} : vector<2x64xf32> to vector<2x32xf32>
    %237 = vector.extract_strided_slice %235 {offsets = [0, 32], sizes = [2, 32], strides = [1, 1]} : vector<2x64xf32> to vector<2x32xf32>
    %238 = vector.extract_strided_slice %225 {offsets = [0, 64], sizes = [2, 32], strides = [1, 1]} : vector<2x96xf32> to vector<2x32xf32>
    %239 = vector.extract_strided_slice %227 {offsets = [0, 64], sizes = [2, 32], strides = [1, 1]} : vector<2x96xf32> to vector<2x32xf32>
    %240 = arith.mulf %236, %239 : vector<2x32xf32>
    %241 = arith.addf %238, %240 : vector<2x32xf32>
    %242 = math.tanh %241 : vector<2x32xf32>
    %cst_38 = arith.constant 1.000000e+00 : f32
    %243 = vector.broadcast %cst_38 : f32 to vector<2x32xf32>
    %244 = arith.subf %243, %237 : vector<2x32xf32>
    %245 = arith.mulf %244, %242 : vector<2x32xf32>
    %246 = arith.mulf %237, %222 : vector<2x32xf32>
    %247 = arith.addf %245, %246 : vector<2x32xf32>
    %248 = vector.extract_strided_slice %247 {offsets = [0, 0], sizes = [2, 16], strides = [1, 1]} : vector<2x32xf32> to vector<2x16xf32>
    %249 = vector.extract_strided_slice %247 {offsets = [0, 16], sizes = [2, 16], strides = [1, 1]} : vector<2x32xf32> to vector<2x16xf32>
    %250 = vector.extract_strided_slice %18 {offsets = [18, 0], sizes = [2, 96], strides = [1, 1]} : vector<48x96xf32> to vector<2x96xf32>
    %cst_39 = arith.constant dense<0.000000e+00> : vector<2x96xf32>
    %251 = tpu.matmul %247, %19, %cst_39 {dimension_numbers = #tpu.dot_dimension_numbers<[1], [0], [0], [1], [0, 0, 1, 1], [], []>} : vector<2x32xf32>, vector<32x96xf32>, vector<2x96xf32> -> vector<2x96xf32>
    %252 = arith.addf %251, %23 : vector<2x96xf32>
    %253 = vector.extract_strided_slice %250 {offsets = [0, 0], sizes = [2, 64], strides = [1, 1]} : vector<2x96xf32> to vector<2x64xf32>
    %254 = vector.extract_strided_slice %252 {offsets = [0, 0], sizes = [2, 64], strides = [1, 1]} : vector<2x96xf32> to vector<2x64xf32>
    %255 = arith.addf %253, %254 : vector<2x64xf32>
    %256 = arith.negf %255 : vector<2x64xf32>
    %257 = math.exp %256 : vector<2x64xf32>
    %cst_40 = arith.constant 1.000000e+00 : f32
    %258 = vector.broadcast %cst_40 : f32 to vector<2x64xf32>
    %259 = arith.addf %258, %257 : vector<2x64xf32>
    %260 = arith.divf %258, %259 : vector<2x64xf32>
    %261 = vector.extract_strided_slice %260 {offsets = [0, 0], sizes = [2, 32], strides = [1, 1]} : vector<2x64xf32> to vector<2x32xf32>
    %262 = vector.extract_strided_slice %260 {offsets = [0, 32], sizes = [2, 32], strides = [1, 1]} : vector<2x64xf32> to vector<2x32xf32>
    %263 = vector.extract_strided_slice %250 {offsets = [0, 64], sizes = [2, 32], strides = [1, 1]} : vector<2x96xf32> to vector<2x32xf32>
    %264 = vector.extract_strided_slice %252 {offsets = [0, 64], sizes = [2, 32], strides = [1, 1]} : vector<2x96xf32> to vector<2x32xf32>
    %265 = arith.mulf %261, %264 : vector<2x32xf32>
    %266 = arith.addf %263, %265 : vector<2x32xf32>
    %267 = math.tanh %266 : vector<2x32xf32>
    %cst_41 = arith.constant 1.000000e+00 : f32
    %268 = vector.broadcast %cst_41 : f32 to vector<2x32xf32>
    %269 = arith.subf %268, %262 : vector<2x32xf32>
    %270 = arith.mulf %269, %267 : vector<2x32xf32>
    %271 = arith.mulf %262, %247 : vector<2x32xf32>
    %272 = arith.addf %270, %271 : vector<2x32xf32>
    %273 = vector.extract_strided_slice %272 {offsets = [0, 0], sizes = [2, 16], strides = [1, 1]} : vector<2x32xf32> to vector<2x16xf32>
    %274 = vector.extract_strided_slice %272 {offsets = [0, 16], sizes = [2, 16], strides = [1, 1]} : vector<2x32xf32> to vector<2x16xf32>
    %275 = vector.extract_strided_slice %18 {offsets = [20, 0], sizes = [2, 96], strides = [1, 1]} : vector<48x96xf32> to vector<2x96xf32>
    %cst_42 = arith.constant dense<0.000000e+00> : vector<2x96xf32>
    %276 = tpu.matmul %272, %19, %cst_42 {dimension_numbers = #tpu.dot_dimension_numbers<[1], [0], [0], [1], [0, 0, 1, 1], [], []>} : vector<2x32xf32>, vector<32x96xf32>, vector<2x96xf32> -> vector<2x96xf32>
    %277 = arith.addf %276, %23 : vector<2x96xf32>
    %278 = vector.extract_strided_slice %275 {offsets = [0, 0], sizes = [2, 64], strides = [1, 1]} : vector<2x96xf32> to vector<2x64xf32>
    %279 = vector.extract_strided_slice %277 {offsets = [0, 0], sizes = [2, 64], strides = [1, 1]} : vector<2x96xf32> to vector<2x64xf32>
    %280 = arith.addf %278, %279 : vector<2x64xf32>
    %281 = arith.negf %280 : vector<2x64xf32>
    %282 = math.exp %281 : vector<2x64xf32>
    %cst_43 = arith.constant 1.000000e+00 : f32
    %283 = vector.broadcast %cst_43 : f32 to vector<2x64xf32>
    %284 = arith.addf %283, %282 : vector<2x64xf32>
    %285 = arith.divf %283, %284 : vector<2x64xf32>
    %286 = vector.extract_strided_slice %285 {offsets = [0, 0], sizes = [2, 32], strides = [1, 1]} : vector<2x64xf32> to vector<2x32xf32>
    %287 = vector.extract_strided_slice %285 {offsets = [0, 32], sizes = [2, 32], strides = [1, 1]} : vector<2x64xf32> to vector<2x32xf32>
    %288 = vector.extract_strided_slice %275 {offsets = [0, 64], sizes = [2, 32], strides = [1, 1]} : vector<2x96xf32> to vector<2x32xf32>
    %289 = vector.extract_strided_slice %277 {offsets = [0, 64], sizes = [2, 32], strides = [1, 1]} : vector<2x96xf32> to vector<2x32xf32>
    %290 = arith.mulf %286, %289 : vector<2x32xf32>
    %291 = arith.addf %288, %290 : vector<2x32xf32>
    %292 = math.tanh %291 : vector<2x32xf32>
    %cst_44 = arith.constant 1.000000e+00 : f32
    %293 = vector.broadcast %cst_44 : f32 to vector<2x32xf32>
    %294 = arith.subf %293, %287 : vector<2x32xf32>
    %295 = arith.mulf %294, %292 : vector<2x32xf32>
    %296 = arith.mulf %287, %272 : vector<2x32xf32>
    %297 = arith.addf %295, %296 : vector<2x32xf32>
    %298 = vector.extract_strided_slice %297 {offsets = [0, 0], sizes = [2, 16], strides = [1, 1]} : vector<2x32xf32> to vector<2x16xf32>
    %299 = vector.extract_strided_slice %297 {offsets = [0, 16], sizes = [2, 16], strides = [1, 1]} : vector<2x32xf32> to vector<2x16xf32>
    %300 = vector.extract_strided_slice %18 {offsets = [22, 0], sizes = [2, 96], strides = [1, 1]} : vector<48x96xf32> to vector<2x96xf32>
    %cst_45 = arith.constant dense<0.000000e+00> : vector<2x96xf32>
    %301 = tpu.matmul %297, %19, %cst_45 {dimension_numbers = #tpu.dot_dimension_numbers<[1], [0], [0], [1], [0, 0, 1, 1], [], []>} : vector<2x32xf32>, vector<32x96xf32>, vector<2x96xf32> -> vector<2x96xf32>
    %302 = arith.addf %301, %23 : vector<2x96xf32>
    %303 = vector.extract_strided_slice %300 {offsets = [0, 0], sizes = [2, 64], strides = [1, 1]} : vector<2x96xf32> to vector<2x64xf32>
    %304 = vector.extract_strided_slice %302 {offsets = [0, 0], sizes = [2, 64], strides = [1, 1]} : vector<2x96xf32> to vector<2x64xf32>
    %305 = arith.addf %303, %304 : vector<2x64xf32>
    %306 = arith.negf %305 : vector<2x64xf32>
    %307 = math.exp %306 : vector<2x64xf32>
    %cst_46 = arith.constant 1.000000e+00 : f32
    %308 = vector.broadcast %cst_46 : f32 to vector<2x64xf32>
    %309 = arith.addf %308, %307 : vector<2x64xf32>
    %310 = arith.divf %308, %309 : vector<2x64xf32>
    %311 = vector.extract_strided_slice %310 {offsets = [0, 0], sizes = [2, 32], strides = [1, 1]} : vector<2x64xf32> to vector<2x32xf32>
    %312 = vector.extract_strided_slice %310 {offsets = [0, 32], sizes = [2, 32], strides = [1, 1]} : vector<2x64xf32> to vector<2x32xf32>
    %313 = vector.extract_strided_slice %300 {offsets = [0, 64], sizes = [2, 32], strides = [1, 1]} : vector<2x96xf32> to vector<2x32xf32>
    %314 = vector.extract_strided_slice %302 {offsets = [0, 64], sizes = [2, 32], strides = [1, 1]} : vector<2x96xf32> to vector<2x32xf32>
    %315 = arith.mulf %311, %314 : vector<2x32xf32>
    %316 = arith.addf %313, %315 : vector<2x32xf32>
    %317 = math.tanh %316 : vector<2x32xf32>
    %cst_47 = arith.constant 1.000000e+00 : f32
    %318 = vector.broadcast %cst_47 : f32 to vector<2x32xf32>
    %319 = arith.subf %318, %312 : vector<2x32xf32>
    %320 = arith.mulf %319, %317 : vector<2x32xf32>
    %321 = arith.mulf %312, %297 : vector<2x32xf32>
    %322 = arith.addf %320, %321 : vector<2x32xf32>
    %323 = vector.extract_strided_slice %322 {offsets = [0, 0], sizes = [2, 16], strides = [1, 1]} : vector<2x32xf32> to vector<2x16xf32>
    %324 = vector.extract_strided_slice %322 {offsets = [0, 16], sizes = [2, 16], strides = [1, 1]} : vector<2x32xf32> to vector<2x16xf32>
    %325 = vector.extract_strided_slice %18 {offsets = [24, 0], sizes = [2, 96], strides = [1, 1]} : vector<48x96xf32> to vector<2x96xf32>
    %cst_48 = arith.constant dense<0.000000e+00> : vector<2x96xf32>
    %326 = tpu.matmul %322, %19, %cst_48 {dimension_numbers = #tpu.dot_dimension_numbers<[1], [0], [0], [1], [0, 0, 1, 1], [], []>} : vector<2x32xf32>, vector<32x96xf32>, vector<2x96xf32> -> vector<2x96xf32>
    %327 = arith.addf %326, %23 : vector<2x96xf32>
    %328 = vector.extract_strided_slice %325 {offsets = [0, 0], sizes = [2, 64], strides = [1, 1]} : vector<2x96xf32> to vector<2x64xf32>
    %329 = vector.extract_strided_slice %327 {offsets = [0, 0], sizes = [2, 64], strides = [1, 1]} : vector<2x96xf32> to vector<2x64xf32>
    %330 = arith.addf %328, %329 : vector<2x64xf32>
    %331 = arith.negf %330 : vector<2x64xf32>
    %332 = math.exp %331 : vector<2x64xf32>
    %cst_49 = arith.constant 1.000000e+00 : f32
    %333 = vector.broadcast %cst_49 : f32 to vector<2x64xf32>
    %334 = arith.addf %333, %332 : vector<2x64xf32>
    %335 = arith.divf %333, %334 : vector<2x64xf32>
    %336 = vector.extract_strided_slice %335 {offsets = [0, 0], sizes = [2, 32], strides = [1, 1]} : vector<2x64xf32> to vector<2x32xf32>
    %337 = vector.extract_strided_slice %335 {offsets = [0, 32], sizes = [2, 32], strides = [1, 1]} : vector<2x64xf32> to vector<2x32xf32>
    %338 = vector.extract_strided_slice %325 {offsets = [0, 64], sizes = [2, 32], strides = [1, 1]} : vector<2x96xf32> to vector<2x32xf32>
    %339 = vector.extract_strided_slice %327 {offsets = [0, 64], sizes = [2, 32], strides = [1, 1]} : vector<2x96xf32> to vector<2x32xf32>
    %340 = arith.mulf %336, %339 : vector<2x32xf32>
    %341 = arith.addf %338, %340 : vector<2x32xf32>
    %342 = math.tanh %341 : vector<2x32xf32>
    %cst_50 = arith.constant 1.000000e+00 : f32
    %343 = vector.broadcast %cst_50 : f32 to vector<2x32xf32>
    %344 = arith.subf %343, %337 : vector<2x32xf32>
    %345 = arith.mulf %344, %342 : vector<2x32xf32>
    %346 = arith.mulf %337, %322 : vector<2x32xf32>
    %347 = arith.addf %345, %346 : vector<2x32xf32>
    %348 = vector.extract_strided_slice %347 {offsets = [0, 0], sizes = [2, 16], strides = [1, 1]} : vector<2x32xf32> to vector<2x16xf32>
    %349 = vector.extract_strided_slice %347 {offsets = [0, 16], sizes = [2, 16], strides = [1, 1]} : vector<2x32xf32> to vector<2x16xf32>
    %350 = vector.extract_strided_slice %18 {offsets = [26, 0], sizes = [2, 96], strides = [1, 1]} : vector<48x96xf32> to vector<2x96xf32>
    %cst_51 = arith.constant dense<0.000000e+00> : vector<2x96xf32>
    %351 = tpu.matmul %347, %19, %cst_51 {dimension_numbers = #tpu.dot_dimension_numbers<[1], [0], [0], [1], [0, 0, 1, 1], [], []>} : vector<2x32xf32>, vector<32x96xf32>, vector<2x96xf32> -> vector<2x96xf32>
    %352 = arith.addf %351, %23 : vector<2x96xf32>
    %353 = vector.extract_strided_slice %350 {offsets = [0, 0], sizes = [2, 64], strides = [1, 1]} : vector<2x96xf32> to vector<2x64xf32>
    %354 = vector.extract_strided_slice %352 {offsets = [0, 0], sizes = [2, 64], strides = [1, 1]} : vector<2x96xf32> to vector<2x64xf32>
    %355 = arith.addf %353, %354 : vector<2x64xf32>
    %356 = arith.negf %355 : vector<2x64xf32>
    %357 = math.exp %356 : vector<2x64xf32>
    %cst_52 = arith.constant 1.000000e+00 : f32
    %358 = vector.broadcast %cst_52 : f32 to vector<2x64xf32>
    %359 = arith.addf %358, %357 : vector<2x64xf32>
    %360 = arith.divf %358, %359 : vector<2x64xf32>
    %361 = vector.extract_strided_slice %360 {offsets = [0, 0], sizes = [2, 32], strides = [1, 1]} : vector<2x64xf32> to vector<2x32xf32>
    %362 = vector.extract_strided_slice %360 {offsets = [0, 32], sizes = [2, 32], strides = [1, 1]} : vector<2x64xf32> to vector<2x32xf32>
    %363 = vector.extract_strided_slice %350 {offsets = [0, 64], sizes = [2, 32], strides = [1, 1]} : vector<2x96xf32> to vector<2x32xf32>
    %364 = vector.extract_strided_slice %352 {offsets = [0, 64], sizes = [2, 32], strides = [1, 1]} : vector<2x96xf32> to vector<2x32xf32>
    %365 = arith.mulf %361, %364 : vector<2x32xf32>
    %366 = arith.addf %363, %365 : vector<2x32xf32>
    %367 = math.tanh %366 : vector<2x32xf32>
    %cst_53 = arith.constant 1.000000e+00 : f32
    %368 = vector.broadcast %cst_53 : f32 to vector<2x32xf32>
    %369 = arith.subf %368, %362 : vector<2x32xf32>
    %370 = arith.mulf %369, %367 : vector<2x32xf32>
    %371 = arith.mulf %362, %347 : vector<2x32xf32>
    %372 = arith.addf %370, %371 : vector<2x32xf32>
    %373 = vector.extract_strided_slice %372 {offsets = [0, 0], sizes = [2, 16], strides = [1, 1]} : vector<2x32xf32> to vector<2x16xf32>
    %374 = vector.extract_strided_slice %372 {offsets = [0, 16], sizes = [2, 16], strides = [1, 1]} : vector<2x32xf32> to vector<2x16xf32>
    %375 = vector.extract_strided_slice %18 {offsets = [28, 0], sizes = [2, 96], strides = [1, 1]} : vector<48x96xf32> to vector<2x96xf32>
    %cst_54 = arith.constant dense<0.000000e+00> : vector<2x96xf32>
    %376 = tpu.matmul %372, %19, %cst_54 {dimension_numbers = #tpu.dot_dimension_numbers<[1], [0], [0], [1], [0, 0, 1, 1], [], []>} : vector<2x32xf32>, vector<32x96xf32>, vector<2x96xf32> -> vector<2x96xf32>
    %377 = arith.addf %376, %23 : vector<2x96xf32>
    %378 = vector.extract_strided_slice %375 {offsets = [0, 0], sizes = [2, 64], strides = [1, 1]} : vector<2x96xf32> to vector<2x64xf32>
    %379 = vector.extract_strided_slice %377 {offsets = [0, 0], sizes = [2, 64], strides = [1, 1]} : vector<2x96xf32> to vector<2x64xf32>
    %380 = arith.addf %378, %379 : vector<2x64xf32>
    %381 = arith.negf %380 : vector<2x64xf32>
    %382 = math.exp %381 : vector<2x64xf32>
    %cst_55 = arith.constant 1.000000e+00 : f32
    %383 = vector.broadcast %cst_55 : f32 to vector<2x64xf32>
    %384 = arith.addf %383, %382 : vector<2x64xf32>
    %385 = arith.divf %383, %384 : vector<2x64xf32>
    %386 = vector.extract_strided_slice %385 {offsets = [0, 0], sizes = [2, 32], strides = [1, 1]} : vector<2x64xf32> to vector<2x32xf32>
    %387 = vector.extract_strided_slice %385 {offsets = [0, 32], sizes = [2, 32], strides = [1, 1]} : vector<2x64xf32> to vector<2x32xf32>
    %388 = vector.extract_strided_slice %375 {offsets = [0, 64], sizes = [2, 32], strides = [1, 1]} : vector<2x96xf32> to vector<2x32xf32>
    %389 = vector.extract_strided_slice %377 {offsets = [0, 64], sizes = [2, 32], strides = [1, 1]} : vector<2x96xf32> to vector<2x32xf32>
    %390 = arith.mulf %386, %389 : vector<2x32xf32>
    %391 = arith.addf %388, %390 : vector<2x32xf32>
    %392 = math.tanh %391 : vector<2x32xf32>
    %cst_56 = arith.constant 1.000000e+00 : f32
    %393 = vector.broadcast %cst_56 : f32 to vector<2x32xf32>
    %394 = arith.subf %393, %387 : vector<2x32xf32>
    %395 = arith.mulf %394, %392 : vector<2x32xf32>
    %396 = arith.mulf %387, %372 : vector<2x32xf32>
    %397 = arith.addf %395, %396 : vector<2x32xf32>
    %398 = vector.extract_strided_slice %397 {offsets = [0, 0], sizes = [2, 16], strides = [1, 1]} : vector<2x32xf32> to vector<2x16xf32>
    %399 = vector.extract_strided_slice %397 {offsets = [0, 16], sizes = [2, 16], strides = [1, 1]} : vector<2x32xf32> to vector<2x16xf32>
    %400 = vector.extract_strided_slice %18 {offsets = [30, 0], sizes = [2, 96], strides = [1, 1]} : vector<48x96xf32> to vector<2x96xf32>
    %cst_57 = arith.constant dense<0.000000e+00> : vector<2x96xf32>
    %401 = tpu.matmul %397, %19, %cst_57 {dimension_numbers = #tpu.dot_dimension_numbers<[1], [0], [0], [1], [0, 0, 1, 1], [], []>} : vector<2x32xf32>, vector<32x96xf32>, vector<2x96xf32> -> vector<2x96xf32>
    %402 = arith.addf %401, %23 : vector<2x96xf32>
    %403 = vector.extract_strided_slice %400 {offsets = [0, 0], sizes = [2, 64], strides = [1, 1]} : vector<2x96xf32> to vector<2x64xf32>
    %404 = vector.extract_strided_slice %402 {offsets = [0, 0], sizes = [2, 64], strides = [1, 1]} : vector<2x96xf32> to vector<2x64xf32>
    %405 = arith.addf %403, %404 : vector<2x64xf32>
    %406 = arith.negf %405 : vector<2x64xf32>
    %407 = math.exp %406 : vector<2x64xf32>
    %cst_58 = arith.constant 1.000000e+00 : f32
    %408 = vector.broadcast %cst_58 : f32 to vector<2x64xf32>
    %409 = arith.addf %408, %407 : vector<2x64xf32>
    %410 = arith.divf %408, %409 : vector<2x64xf32>
    %411 = vector.extract_strided_slice %410 {offsets = [0, 0], sizes = [2, 32], strides = [1, 1]} : vector<2x64xf32> to vector<2x32xf32>
    %412 = vector.extract_strided_slice %410 {offsets = [0, 32], sizes = [2, 32], strides = [1, 1]} : vector<2x64xf32> to vector<2x32xf32>
    %413 = vector.extract_strided_slice %400 {offsets = [0, 64], sizes = [2, 32], strides = [1, 1]} : vector<2x96xf32> to vector<2x32xf32>
    %414 = vector.extract_strided_slice %402 {offsets = [0, 64], sizes = [2, 32], strides = [1, 1]} : vector<2x96xf32> to vector<2x32xf32>
    %415 = arith.mulf %411, %414 : vector<2x32xf32>
    %416 = arith.addf %413, %415 : vector<2x32xf32>
    %417 = math.tanh %416 : vector<2x32xf32>
    %cst_59 = arith.constant 1.000000e+00 : f32
    %418 = vector.broadcast %cst_59 : f32 to vector<2x32xf32>
    %419 = arith.subf %418, %412 : vector<2x32xf32>
    %420 = arith.mulf %419, %417 : vector<2x32xf32>
    %421 = arith.mulf %412, %397 : vector<2x32xf32>
    %422 = arith.addf %420, %421 : vector<2x32xf32>
    %423 = vector.extract_strided_slice %422 {offsets = [0, 0], sizes = [2, 16], strides = [1, 1]} : vector<2x32xf32> to vector<2x16xf32>
    %424 = vector.extract_strided_slice %422 {offsets = [0, 16], sizes = [2, 16], strides = [1, 1]} : vector<2x32xf32> to vector<2x16xf32>
    %425 = vector.extract_strided_slice %18 {offsets = [32, 0], sizes = [2, 96], strides = [1, 1]} : vector<48x96xf32> to vector<2x96xf32>
    %cst_60 = arith.constant dense<0.000000e+00> : vector<2x96xf32>
    %426 = tpu.matmul %422, %19, %cst_60 {dimension_numbers = #tpu.dot_dimension_numbers<[1], [0], [0], [1], [0, 0, 1, 1], [], []>} : vector<2x32xf32>, vector<32x96xf32>, vector<2x96xf32> -> vector<2x96xf32>
    %427 = arith.addf %426, %23 : vector<2x96xf32>
    %428 = vector.extract_strided_slice %425 {offsets = [0, 0], sizes = [2, 64], strides = [1, 1]} : vector<2x96xf32> to vector<2x64xf32>
    %429 = vector.extract_strided_slice %427 {offsets = [0, 0], sizes = [2, 64], strides = [1, 1]} : vector<2x96xf32> to vector<2x64xf32>
    %430 = arith.addf %428, %429 : vector<2x64xf32>
    %431 = arith.negf %430 : vector<2x64xf32>
    %432 = math.exp %431 : vector<2x64xf32>
    %cst_61 = arith.constant 1.000000e+00 : f32
    %433 = vector.broadcast %cst_61 : f32 to vector<2x64xf32>
    %434 = arith.addf %433, %432 : vector<2x64xf32>
    %435 = arith.divf %433, %434 : vector<2x64xf32>
    %436 = vector.extract_strided_slice %435 {offsets = [0, 0], sizes = [2, 32], strides = [1, 1]} : vector<2x64xf32> to vector<2x32xf32>
    %437 = vector.extract_strided_slice %435 {offsets = [0, 32], sizes = [2, 32], strides = [1, 1]} : vector<2x64xf32> to vector<2x32xf32>
    %438 = vector.extract_strided_slice %425 {offsets = [0, 64], sizes = [2, 32], strides = [1, 1]} : vector<2x96xf32> to vector<2x32xf32>
    %439 = vector.extract_strided_slice %427 {offsets = [0, 64], sizes = [2, 32], strides = [1, 1]} : vector<2x96xf32> to vector<2x32xf32>
    %440 = arith.mulf %436, %439 : vector<2x32xf32>
    %441 = arith.addf %438, %440 : vector<2x32xf32>
    %442 = math.tanh %441 : vector<2x32xf32>
    %cst_62 = arith.constant 1.000000e+00 : f32
    %443 = vector.broadcast %cst_62 : f32 to vector<2x32xf32>
    %444 = arith.subf %443, %437 : vector<2x32xf32>
    %445 = arith.mulf %444, %442 : vector<2x32xf32>
    %446 = arith.mulf %437, %422 : vector<2x32xf32>
    %447 = arith.addf %445, %446 : vector<2x32xf32>
    %448 = vector.extract_strided_slice %447 {offsets = [0, 0], sizes = [2, 16], strides = [1, 1]} : vector<2x32xf32> to vector<2x16xf32>
    %449 = vector.extract_strided_slice %447 {offsets = [0, 16], sizes = [2, 16], strides = [1, 1]} : vector<2x32xf32> to vector<2x16xf32>
    %450 = vector.extract_strided_slice %18 {offsets = [34, 0], sizes = [2, 96], strides = [1, 1]} : vector<48x96xf32> to vector<2x96xf32>
    %cst_63 = arith.constant dense<0.000000e+00> : vector<2x96xf32>
    %451 = tpu.matmul %447, %19, %cst_63 {dimension_numbers = #tpu.dot_dimension_numbers<[1], [0], [0], [1], [0, 0, 1, 1], [], []>} : vector<2x32xf32>, vector<32x96xf32>, vector<2x96xf32> -> vector<2x96xf32>
    %452 = arith.addf %451, %23 : vector<2x96xf32>
    %453 = vector.extract_strided_slice %450 {offsets = [0, 0], sizes = [2, 64], strides = [1, 1]} : vector<2x96xf32> to vector<2x64xf32>
    %454 = vector.extract_strided_slice %452 {offsets = [0, 0], sizes = [2, 64], strides = [1, 1]} : vector<2x96xf32> to vector<2x64xf32>
    %455 = arith.addf %453, %454 : vector<2x64xf32>
    %456 = arith.negf %455 : vector<2x64xf32>
    %457 = math.exp %456 : vector<2x64xf32>
    %cst_64 = arith.constant 1.000000e+00 : f32
    %458 = vector.broadcast %cst_64 : f32 to vector<2x64xf32>
    %459 = arith.addf %458, %457 : vector<2x64xf32>
    %460 = arith.divf %458, %459 : vector<2x64xf32>
    %461 = vector.extract_strided_slice %460 {offsets = [0, 0], sizes = [2, 32], strides = [1, 1]} : vector<2x64xf32> to vector<2x32xf32>
    %462 = vector.extract_strided_slice %460 {offsets = [0, 32], sizes = [2, 32], strides = [1, 1]} : vector<2x64xf32> to vector<2x32xf32>
    %463 = vector.extract_strided_slice %450 {offsets = [0, 64], sizes = [2, 32], strides = [1, 1]} : vector<2x96xf32> to vector<2x32xf32>
    %464 = vector.extract_strided_slice %452 {offsets = [0, 64], sizes = [2, 32], strides = [1, 1]} : vector<2x96xf32> to vector<2x32xf32>
    %465 = arith.mulf %461, %464 : vector<2x32xf32>
    %466 = arith.addf %463, %465 : vector<2x32xf32>
    %467 = math.tanh %466 : vector<2x32xf32>
    %cst_65 = arith.constant 1.000000e+00 : f32
    %468 = vector.broadcast %cst_65 : f32 to vector<2x32xf32>
    %469 = arith.subf %468, %462 : vector<2x32xf32>
    %470 = arith.mulf %469, %467 : vector<2x32xf32>
    %471 = arith.mulf %462, %447 : vector<2x32xf32>
    %472 = arith.addf %470, %471 : vector<2x32xf32>
    %473 = vector.extract_strided_slice %472 {offsets = [0, 0], sizes = [2, 16], strides = [1, 1]} : vector<2x32xf32> to vector<2x16xf32>
    %474 = vector.extract_strided_slice %472 {offsets = [0, 16], sizes = [2, 16], strides = [1, 1]} : vector<2x32xf32> to vector<2x16xf32>
    %475 = vector.extract_strided_slice %18 {offsets = [36, 0], sizes = [2, 96], strides = [1, 1]} : vector<48x96xf32> to vector<2x96xf32>
    %cst_66 = arith.constant dense<0.000000e+00> : vector<2x96xf32>
    %476 = tpu.matmul %472, %19, %cst_66 {dimension_numbers = #tpu.dot_dimension_numbers<[1], [0], [0], [1], [0, 0, 1, 1], [], []>} : vector<2x32xf32>, vector<32x96xf32>, vector<2x96xf32> -> vector<2x96xf32>
    %477 = arith.addf %476, %23 : vector<2x96xf32>
    %478 = vector.extract_strided_slice %475 {offsets = [0, 0], sizes = [2, 64], strides = [1, 1]} : vector<2x96xf32> to vector<2x64xf32>
    %479 = vector.extract_strided_slice %477 {offsets = [0, 0], sizes = [2, 64], strides = [1, 1]} : vector<2x96xf32> to vector<2x64xf32>
    %480 = arith.addf %478, %479 : vector<2x64xf32>
    %481 = arith.negf %480 : vector<2x64xf32>
    %482 = math.exp %481 : vector<2x64xf32>
    %cst_67 = arith.constant 1.000000e+00 : f32
    %483 = vector.broadcast %cst_67 : f32 to vector<2x64xf32>
    %484 = arith.addf %483, %482 : vector<2x64xf32>
    %485 = arith.divf %483, %484 : vector<2x64xf32>
    %486 = vector.extract_strided_slice %485 {offsets = [0, 0], sizes = [2, 32], strides = [1, 1]} : vector<2x64xf32> to vector<2x32xf32>
    %487 = vector.extract_strided_slice %485 {offsets = [0, 32], sizes = [2, 32], strides = [1, 1]} : vector<2x64xf32> to vector<2x32xf32>
    %488 = vector.extract_strided_slice %475 {offsets = [0, 64], sizes = [2, 32], strides = [1, 1]} : vector<2x96xf32> to vector<2x32xf32>
    %489 = vector.extract_strided_slice %477 {offsets = [0, 64], sizes = [2, 32], strides = [1, 1]} : vector<2x96xf32> to vector<2x32xf32>
    %490 = arith.mulf %486, %489 : vector<2x32xf32>
    %491 = arith.addf %488, %490 : vector<2x32xf32>
    %492 = math.tanh %491 : vector<2x32xf32>
    %cst_68 = arith.constant 1.000000e+00 : f32
    %493 = vector.broadcast %cst_68 : f32 to vector<2x32xf32>
    %494 = arith.subf %493, %487 : vector<2x32xf32>
    %495 = arith.mulf %494, %492 : vector<2x32xf32>
    %496 = arith.mulf %487, %472 : vector<2x32xf32>
    %497 = arith.addf %495, %496 : vector<2x32xf32>
    %498 = vector.extract_strided_slice %497 {offsets = [0, 0], sizes = [2, 16], strides = [1, 1]} : vector<2x32xf32> to vector<2x16xf32>
    %499 = vector.extract_strided_slice %497 {offsets = [0, 16], sizes = [2, 16], strides = [1, 1]} : vector<2x32xf32> to vector<2x16xf32>
    %500 = vector.extract_strided_slice %18 {offsets = [38, 0], sizes = [2, 96], strides = [1, 1]} : vector<48x96xf32> to vector<2x96xf32>
    %cst_69 = arith.constant dense<0.000000e+00> : vector<2x96xf32>
    %501 = tpu.matmul %497, %19, %cst_69 {dimension_numbers = #tpu.dot_dimension_numbers<[1], [0], [0], [1], [0, 0, 1, 1], [], []>} : vector<2x32xf32>, vector<32x96xf32>, vector<2x96xf32> -> vector<2x96xf32>
    %502 = arith.addf %501, %23 : vector<2x96xf32>
    %503 = vector.extract_strided_slice %500 {offsets = [0, 0], sizes = [2, 64], strides = [1, 1]} : vector<2x96xf32> to vector<2x64xf32>
    %504 = vector.extract_strided_slice %502 {offsets = [0, 0], sizes = [2, 64], strides = [1, 1]} : vector<2x96xf32> to vector<2x64xf32>
    %505 = arith.addf %503, %504 : vector<2x64xf32>
    %506 = arith.negf %505 : vector<2x64xf32>
    %507 = math.exp %506 : vector<2x64xf32>
    %cst_70 = arith.constant 1.000000e+00 : f32
    %508 = vector.broadcast %cst_70 : f32 to vector<2x64xf32>
    %509 = arith.addf %508, %507 : vector<2x64xf32>
    %510 = arith.divf %508, %509 : vector<2x64xf32>
    %511 = vector.extract_strided_slice %510 {offsets = [0, 0], sizes = [2, 32], strides = [1, 1]} : vector<2x64xf32> to vector<2x32xf32>
    %512 = vector.extract_strided_slice %510 {offsets = [0, 32], sizes = [2, 32], strides = [1, 1]} : vector<2x64xf32> to vector<2x32xf32>
    %513 = vector.extract_strided_slice %500 {offsets = [0, 64], sizes = [2, 32], strides = [1, 1]} : vector<2x96xf32> to vector<2x32xf32>
    %514 = vector.extract_strided_slice %502 {offsets = [0, 64], sizes = [2, 32], strides = [1, 1]} : vector<2x96xf32> to vector<2x32xf32>
    %515 = arith.mulf %511, %514 : vector<2x32xf32>
    %516 = arith.addf %513, %515 : vector<2x32xf32>
    %517 = math.tanh %516 : vector<2x32xf32>
    %cst_71 = arith.constant 1.000000e+00 : f32
    %518 = vector.broadcast %cst_71 : f32 to vector<2x32xf32>
    %519 = arith.subf %518, %512 : vector<2x32xf32>
    %520 = arith.mulf %519, %517 : vector<2x32xf32>
    %521 = arith.mulf %512, %497 : vector<2x32xf32>
    %522 = arith.addf %520, %521 : vector<2x32xf32>
    %523 = vector.extract_strided_slice %522 {offsets = [0, 0], sizes = [2, 16], strides = [1, 1]} : vector<2x32xf32> to vector<2x16xf32>
    %524 = vector.extract_strided_slice %522 {offsets = [0, 16], sizes = [2, 16], strides = [1, 1]} : vector<2x32xf32> to vector<2x16xf32>
    %525 = vector.extract_strided_slice %18 {offsets = [40, 0], sizes = [2, 96], strides = [1, 1]} : vector<48x96xf32> to vector<2x96xf32>
    %cst_72 = arith.constant dense<0.000000e+00> : vector<2x96xf32>
    %526 = tpu.matmul %522, %19, %cst_72 {dimension_numbers = #tpu.dot_dimension_numbers<[1], [0], [0], [1], [0, 0, 1, 1], [], []>} : vector<2x32xf32>, vector<32x96xf32>, vector<2x96xf32> -> vector<2x96xf32>
    %527 = arith.addf %526, %23 : vector<2x96xf32>
    %528 = vector.extract_strided_slice %525 {offsets = [0, 0], sizes = [2, 64], strides = [1, 1]} : vector<2x96xf32> to vector<2x64xf32>
    %529 = vector.extract_strided_slice %527 {offsets = [0, 0], sizes = [2, 64], strides = [1, 1]} : vector<2x96xf32> to vector<2x64xf32>
    %530 = arith.addf %528, %529 : vector<2x64xf32>
    %531 = arith.negf %530 : vector<2x64xf32>
    %532 = math.exp %531 : vector<2x64xf32>
    %cst_73 = arith.constant 1.000000e+00 : f32
    %533 = vector.broadcast %cst_73 : f32 to vector<2x64xf32>
    %534 = arith.addf %533, %532 : vector<2x64xf32>
    %535 = arith.divf %533, %534 : vector<2x64xf32>
    %536 = vector.extract_strided_slice %535 {offsets = [0, 0], sizes = [2, 32], strides = [1, 1]} : vector<2x64xf32> to vector<2x32xf32>
    %537 = vector.extract_strided_slice %535 {offsets = [0, 32], sizes = [2, 32], strides = [1, 1]} : vector<2x64xf32> to vector<2x32xf32>
    %538 = vector.extract_strided_slice %525 {offsets = [0, 64], sizes = [2, 32], strides = [1, 1]} : vector<2x96xf32> to vector<2x32xf32>
    %539 = vector.extract_strided_slice %527 {offsets = [0, 64], sizes = [2, 32], strides = [1, 1]} : vector<2x96xf32> to vector<2x32xf32>
    %540 = arith.mulf %536, %539 : vector<2x32xf32>
    %541 = arith.addf %538, %540 : vector<2x32xf32>
    %542 = math.tanh %541 : vector<2x32xf32>
    %cst_74 = arith.constant 1.000000e+00 : f32
    %543 = vector.broadcast %cst_74 : f32 to vector<2x32xf32>
    %544 = arith.subf %543, %537 : vector<2x32xf32>
    %545 = arith.mulf %544, %542 : vector<2x32xf32>
    %546 = arith.mulf %537, %522 : vector<2x32xf32>
    %547 = arith.addf %545, %546 : vector<2x32xf32>
    %548 = vector.extract_strided_slice %547 {offsets = [0, 0], sizes = [2, 16], strides = [1, 1]} : vector<2x32xf32> to vector<2x16xf32>
    %549 = vector.extract_strided_slice %547 {offsets = [0, 16], sizes = [2, 16], strides = [1, 1]} : vector<2x32xf32> to vector<2x16xf32>
    %550 = vector.extract_strided_slice %18 {offsets = [42, 0], sizes = [2, 96], strides = [1, 1]} : vector<48x96xf32> to vector<2x96xf32>
    %cst_75 = arith.constant dense<0.000000e+00> : vector<2x96xf32>
    %551 = tpu.matmul %547, %19, %cst_75 {dimension_numbers = #tpu.dot_dimension_numbers<[1], [0], [0], [1], [0, 0, 1, 1], [], []>} : vector<2x32xf32>, vector<32x96xf32>, vector<2x96xf32> -> vector<2x96xf32>
    %552 = arith.addf %551, %23 : vector<2x96xf32>
    %553 = vector.extract_strided_slice %550 {offsets = [0, 0], sizes = [2, 64], strides = [1, 1]} : vector<2x96xf32> to vector<2x64xf32>
    %554 = vector.extract_strided_slice %552 {offsets = [0, 0], sizes = [2, 64], strides = [1, 1]} : vector<2x96xf32> to vector<2x64xf32>
    %555 = arith.addf %553, %554 : vector<2x64xf32>
    %556 = arith.negf %555 : vector<2x64xf32>
    %557 = math.exp %556 : vector<2x64xf32>
    %cst_76 = arith.constant 1.000000e+00 : f32
    %558 = vector.broadcast %cst_76 : f32 to vector<2x64xf32>
    %559 = arith.addf %558, %557 : vector<2x64xf32>
    %560 = arith.divf %558, %559 : vector<2x64xf32>
    %561 = vector.extract_strided_slice %560 {offsets = [0, 0], sizes = [2, 32], strides = [1, 1]} : vector<2x64xf32> to vector<2x32xf32>
    %562 = vector.extract_strided_slice %560 {offsets = [0, 32], sizes = [2, 32], strides = [1, 1]} : vector<2x64xf32> to vector<2x32xf32>
    %563 = vector.extract_strided_slice %550 {offsets = [0, 64], sizes = [2, 32], strides = [1, 1]} : vector<2x96xf32> to vector<2x32xf32>
    %564 = vector.extract_strided_slice %552 {offsets = [0, 64], sizes = [2, 32], strides = [1, 1]} : vector<2x96xf32> to vector<2x32xf32>
    %565 = arith.mulf %561, %564 : vector<2x32xf32>
    %566 = arith.addf %563, %565 : vector<2x32xf32>
    %567 = math.tanh %566 : vector<2x32xf32>
    %cst_77 = arith.constant 1.000000e+00 : f32
    %568 = vector.broadcast %cst_77 : f32 to vector<2x32xf32>
    %569 = arith.subf %568, %562 : vector<2x32xf32>
    %570 = arith.mulf %569, %567 : vector<2x32xf32>
    %571 = arith.mulf %562, %547 : vector<2x32xf32>
    %572 = arith.addf %570, %571 : vector<2x32xf32>
    %573 = vector.extract_strided_slice %572 {offsets = [0, 0], sizes = [2, 16], strides = [1, 1]} : vector<2x32xf32> to vector<2x16xf32>
    %574 = vector.extract_strided_slice %572 {offsets = [0, 16], sizes = [2, 16], strides = [1, 1]} : vector<2x32xf32> to vector<2x16xf32>
    %575 = vector.extract_strided_slice %18 {offsets = [44, 0], sizes = [2, 96], strides = [1, 1]} : vector<48x96xf32> to vector<2x96xf32>
    %cst_78 = arith.constant dense<0.000000e+00> : vector<2x96xf32>
    %576 = tpu.matmul %572, %19, %cst_78 {dimension_numbers = #tpu.dot_dimension_numbers<[1], [0], [0], [1], [0, 0, 1, 1], [], []>} : vector<2x32xf32>, vector<32x96xf32>, vector<2x96xf32> -> vector<2x96xf32>
    %577 = arith.addf %576, %23 : vector<2x96xf32>
    %578 = vector.extract_strided_slice %575 {offsets = [0, 0], sizes = [2, 64], strides = [1, 1]} : vector<2x96xf32> to vector<2x64xf32>
    %579 = vector.extract_strided_slice %577 {offsets = [0, 0], sizes = [2, 64], strides = [1, 1]} : vector<2x96xf32> to vector<2x64xf32>
    %580 = arith.addf %578, %579 : vector<2x64xf32>
    %581 = arith.negf %580 : vector<2x64xf32>
    %582 = math.exp %581 : vector<2x64xf32>
    %cst_79 = arith.constant 1.000000e+00 : f32
    %583 = vector.broadcast %cst_79 : f32 to vector<2x64xf32>
    %584 = arith.addf %583, %582 : vector<2x64xf32>
    %585 = arith.divf %583, %584 : vector<2x64xf32>
    %586 = vector.extract_strided_slice %585 {offsets = [0, 0], sizes = [2, 32], strides = [1, 1]} : vector<2x64xf32> to vector<2x32xf32>
    %587 = vector.extract_strided_slice %585 {offsets = [0, 32], sizes = [2, 32], strides = [1, 1]} : vector<2x64xf32> to vector<2x32xf32>
    %588 = vector.extract_strided_slice %575 {offsets = [0, 64], sizes = [2, 32], strides = [1, 1]} : vector<2x96xf32> to vector<2x32xf32>
    %589 = vector.extract_strided_slice %577 {offsets = [0, 64], sizes = [2, 32], strides = [1, 1]} : vector<2x96xf32> to vector<2x32xf32>
    %590 = arith.mulf %586, %589 : vector<2x32xf32>
    %591 = arith.addf %588, %590 : vector<2x32xf32>
    %592 = math.tanh %591 : vector<2x32xf32>
    %cst_80 = arith.constant 1.000000e+00 : f32
    %593 = vector.broadcast %cst_80 : f32 to vector<2x32xf32>
    %594 = arith.subf %593, %587 : vector<2x32xf32>
    %595 = arith.mulf %594, %592 : vector<2x32xf32>
    %596 = arith.mulf %587, %572 : vector<2x32xf32>
    %597 = arith.addf %595, %596 : vector<2x32xf32>
    %598 = vector.extract_strided_slice %597 {offsets = [0, 0], sizes = [2, 16], strides = [1, 1]} : vector<2x32xf32> to vector<2x16xf32>
    %599 = vector.extract_strided_slice %597 {offsets = [0, 16], sizes = [2, 16], strides = [1, 1]} : vector<2x32xf32> to vector<2x16xf32>
    %600 = vector.extract_strided_slice %18 {offsets = [46, 0], sizes = [2, 96], strides = [1, 1]} : vector<48x96xf32> to vector<2x96xf32>
    %cst_81 = arith.constant dense<0.000000e+00> : vector<2x96xf32>
    %601 = tpu.matmul %597, %19, %cst_81 {dimension_numbers = #tpu.dot_dimension_numbers<[1], [0], [0], [1], [0, 0, 1, 1], [], []>} : vector<2x32xf32>, vector<32x96xf32>, vector<2x96xf32> -> vector<2x96xf32>
    %602 = arith.addf %601, %23 : vector<2x96xf32>
    %603 = vector.extract_strided_slice %600 {offsets = [0, 0], sizes = [2, 64], strides = [1, 1]} : vector<2x96xf32> to vector<2x64xf32>
    %604 = vector.extract_strided_slice %602 {offsets = [0, 0], sizes = [2, 64], strides = [1, 1]} : vector<2x96xf32> to vector<2x64xf32>
    %605 = arith.addf %603, %604 : vector<2x64xf32>
    %606 = arith.negf %605 : vector<2x64xf32>
    %607 = math.exp %606 : vector<2x64xf32>
    %cst_82 = arith.constant 1.000000e+00 : f32
    %608 = vector.broadcast %cst_82 : f32 to vector<2x64xf32>
    %609 = arith.addf %608, %607 : vector<2x64xf32>
    %610 = arith.divf %608, %609 : vector<2x64xf32>
    %611 = vector.extract_strided_slice %610 {offsets = [0, 0], sizes = [2, 32], strides = [1, 1]} : vector<2x64xf32> to vector<2x32xf32>
    %612 = vector.extract_strided_slice %610 {offsets = [0, 32], sizes = [2, 32], strides = [1, 1]} : vector<2x64xf32> to vector<2x32xf32>
    %613 = vector.extract_strided_slice %600 {offsets = [0, 64], sizes = [2, 32], strides = [1, 1]} : vector<2x96xf32> to vector<2x32xf32>
    %614 = vector.extract_strided_slice %602 {offsets = [0, 64], sizes = [2, 32], strides = [1, 1]} : vector<2x96xf32> to vector<2x32xf32>
    %615 = arith.mulf %611, %614 : vector<2x32xf32>
    %616 = arith.addf %613, %615 : vector<2x32xf32>
    %617 = math.tanh %616 : vector<2x32xf32>
    %cst_83 = arith.constant 1.000000e+00 : f32
    %618 = vector.broadcast %cst_83 : f32 to vector<2x32xf32>
    %619 = arith.subf %618, %612 : vector<2x32xf32>
    %620 = arith.mulf %619, %617 : vector<2x32xf32>
    %621 = arith.mulf %612, %597 : vector<2x32xf32>
    %622 = arith.addf %620, %621 : vector<2x32xf32>
    %623 = vector.extract_strided_slice %622 {offsets = [0, 0], sizes = [2, 16], strides = [1, 1]} : vector<2x32xf32> to vector<2x16xf32>
    %624 = vector.extract_strided_slice %622 {offsets = [0, 16], sizes = [2, 16], strides = [1, 1]} : vector<2x32xf32> to vector<2x16xf32>
    %625 = tpu.concatenate %48, %73, %98, %123, %148, %173, %198, %223, %248, %273, %298, %323, %348, %373, %398, %423 in 0 : vector<2x16xf32>, vector<2x16xf32>, vector<2x16xf32>, vector<2x16xf32>, vector<2x16xf32>, vector<2x16xf32>, vector<2x16xf32>, vector<2x16xf32>, vector<2x16xf32>, vector<2x16xf32>, vector<2x16xf32>, vector<2x16xf32>, vector<2x16xf32>, vector<2x16xf32>, vector<2x16xf32>, vector<2x16xf32> -> vector<32x16xf32>
    %626 = tpu.concatenate %448, %473, %498, %523, %548, %573, %598, %623 in 0 : vector<2x16xf32>, vector<2x16xf32>, vector<2x16xf32>, vector<2x16xf32>, vector<2x16xf32>, vector<2x16xf32>, vector<2x16xf32>, vector<2x16xf32> -> vector<16x16xf32>
    %627 = tpu.concatenate %625, %626 in 0 : vector<32x16xf32>, vector<16x16xf32> -> vector<48x16xf32>
    %628 = tpu.concatenate %174, %149, %124, %99, %74, %49, %324, %299, %274, %249, %224, %199, %474, %449, %424, %399 in 0 : vector<2x16xf32>, vector<2x16xf32>, vector<2x16xf32>, vector<2x16xf32>, vector<2x16xf32>, vector<2x16xf32>, vector<2x16xf32>, vector<2x16xf32>, vector<2x16xf32>, vector<2x16xf32>, vector<2x16xf32>, vector<2x16xf32>, vector<2x16xf32>, vector<2x16xf32>, vector<2x16xf32>, vector<2x16xf32> -> vector<32x16xf32>
    %629 = tpu.concatenate %374, %349, %624, %599, %574, %549, %524, %499 in 0 : vector<2x16xf32>, vector<2x16xf32>, vector<2x16xf32>, vector<2x16xf32>, vector<2x16xf32>, vector<2x16xf32>, vector<2x16xf32>, vector<2x16xf32> -> vector<16x16xf32>
    %630 = tpu.concatenate %628, %629 in 0 : vector<32x16xf32>, vector<16x16xf32> -> vector<48x16xf32>
    %c112 = arith.constant 112 : index
    %c0_84 = arith.constant 0 : index
    %631 = vector.load %arg2[%c112, %c0_84] : memref<168x96xf32, #tpu.memory_space<vmem>>, vector<32x96xf32>
    %632 = vector.extract_strided_slice %631 {offsets = [0, 0], sizes = [32, 32], strides = [1, 1]} : vector<32x96xf32> to vector<32x32xf32>
    %633 = vector.extract_strided_slice %632 {offsets = [0, 0], sizes = [16, 32], strides = [1, 1]} : vector<32x32xf32> to vector<16x32xf32>
    %cst_85 = arith.constant dense<0.000000e+00> : vector<48x32xf32>
    %634 = tpu.matmul %627, %633, %cst_85 {dimension_numbers = #tpu.dot_dimension_numbers<[1], [0], [0], [1], [0, 0, 1, 1], [], []>} : vector<48x16xf32>, vector<16x32xf32>, vector<48x32xf32> -> vector<48x32xf32>
    %635 = vector.extract_strided_slice %632 {offsets = [16, 0], sizes = [16, 32], strides = [1, 1]} : vector<32x32xf32> to vector<16x32xf32>
    %cst_86 = arith.constant dense<0.000000e+00> : vector<48x32xf32>
    %636 = tpu.matmul %630, %635, %cst_86 {dimension_numbers = #tpu.dot_dimension_numbers<[1], [0], [0], [1], [0, 0, 1, 1], [], []>} : vector<48x16xf32>, vector<16x32xf32>, vector<48x32xf32> -> vector<48x32xf32>
    %637 = arith.addf %634, %636 : vector<48x32xf32>
    %c144 = arith.constant 144 : index
    %c0_87 = arith.constant 0 : index
    %638 = vector.load %arg2[%c144, %c0_87] : memref<168x96xf32, #tpu.memory_space<vmem>>, vector<8x96xf32>
    %639 = vector.extract_strided_slice %638 {offsets = [0, 0], sizes = [1, 32], strides = [1, 1]} : vector<8x96xf32> to vector<1x32xf32>
    %640 = vector.broadcast %639 : vector<1x32xf32> to vector<48x32xf32>
    %641 = arith.addf %637, %640 : vector<48x32xf32>
    %642 = math.tanh %641 : vector<48x32xf32>
    %c152 = arith.constant 152 : index
    %c0_88 = arith.constant 0 : index
    %643 = vector.load %arg2[%c152, %c0_88] : memref<168x96xf32, #tpu.memory_space<vmem>>, vector<8x96xf32>
    %644 = vector.extract_strided_slice %643 {offsets = [0, 0], sizes = [1, 32], strides = [1, 1]} : vector<8x96xf32> to vector<1x32xf32>
    %645 = vector.broadcast %644 : vector<1x32xf32> to vector<48x32xf32>
    %646 = arith.mulf %642, %645 : vector<48x32xf32>
    %cst_89 = arith.constant dense<0.000000e+00> : vector<48xf32>
    %647 = vector.multi_reduction <add>, %646, %cst_89 [1] : vector<48x32xf32> to vector<48xf32>
    %648 = vector.shape_cast %647 : vector<48xf32> to vector<48x1xf32>
    %649 = math.tanh %648 : vector<48x1xf32>
    %650 = math.exp %649 : vector<48x1xf32>
    %651 = vector.broadcast %650 : vector<48x1xf32> to vector<48x16xf32>
    %652 = arith.mulf %627, %651 : vector<48x16xf32>
    %653 = vector.broadcast %650 : vector<48x1xf32> to vector<48x16xf32>
    %654 = arith.mulf %630, %653 : vector<48x16xf32>
    %655 = tpu.concatenate %652, %654, %650 in 1 : vector<48x16xf32>, vector<48x16xf32>, vector<48x1xf32> -> vector<48x33xf32>
    %c160 = arith.constant 160 : index
    %c0_90 = arith.constant 0 : index
    %656 = vector.load %arg2[%c160, %c0_90] : memref<168x96xf32, #tpu.memory_space<vmem>>, vector<8x96xf32>
    %657 = vector.extract_strided_slice %656 {offsets = [0, 0], sizes = [8, 48], strides = [1, 1]} : vector<8x96xf32> to vector<8x48xf32>
    %cst_91 = arith.constant dense<0.000000e+00> : vector<8x33xf32>
    %658 = tpu.matmul %657, %655, %cst_91 {dimension_numbers = #tpu.dot_dimension_numbers<[1], [0], [0], [1], [0, 0, 1, 1], [], []>} : vector<8x48xf32>, vector<48x33xf32>, vector<8x33xf32> -> vector<8x33xf32>
    %659 = vector.extract_strided_slice %658 {offsets = [0, 0], sizes = [8, 32], strides = [1, 1]} : vector<8x33xf32> to vector<8x32xf32>
    %660 = vector.extract_strided_slice %658 {offsets = [0, 32], sizes = [8, 1], strides = [1, 1]} : vector<8x33xf32> to vector<8x1xf32>
    %661 = tpu.reciprocal %660 {approx = true} : vector<8x1xf32> -> vector<8x1xf32>
    %662 = vector.broadcast %661 : vector<8x1xf32> to vector<8x32xf32>
    %663 = arith.mulf %659, %662 : vector<8x32xf32>
    %664 = vector.extract_strided_slice %663 {offsets = [6, 0], sizes = [2, 32], strides = [1, 1]} : vector<8x32xf32> to vector<2x32xf32>
    %665 = vector.extract_strided_slice %663 {offsets = [4, 0], sizes = [2, 32], strides = [1, 1]} : vector<8x32xf32> to vector<2x32xf32>
    %666 = vector.extract_strided_slice %663 {offsets = [2, 0], sizes = [2, 32], strides = [1, 1]} : vector<8x32xf32> to vector<2x32xf32>
    %667 = vector.extract_strided_slice %663 {offsets = [0, 0], sizes = [2, 32], strides = [1, 1]} : vector<8x32xf32> to vector<2x32xf32>
    %668 = tpu.concatenate %664, %665, %666, %667 in 0 : vector<2x32xf32>, vector<2x32xf32>, vector<2x32xf32>, vector<2x32xf32> -> vector<8x32xf32>
    %c0_92 = arith.constant 0 : index
    %c0_93 = arith.constant 0 : index
    %669 = vector.load %arg3[%c0_92, %c0_93] : memref<208x96xf32, #tpu.memory_space<vmem>>, vector<32x96xf32>
    %cst_94 = arith.constant dense<0.000000e+00> : vector<8x96xf32>
    %670 = tpu.matmul %663, %669, %cst_94 {dimension_numbers = #tpu.dot_dimension_numbers<[1], [0], [0], [1], [0, 0, 1, 1], [], []>} : vector<8x32xf32>, vector<32x96xf32>, vector<8x96xf32> -> vector<8x96xf32>
    %c32_95 = arith.constant 32 : index
    %c0_96 = arith.constant 0 : index
    %671 = vector.load %arg3[%c32_95, %c0_96] : memref<208x96xf32, #tpu.memory_space<vmem>>, vector<32x96xf32>
    %cst_97 = arith.constant dense<0.000000e+00> : vector<8x96xf32>
    %672 = tpu.matmul %668, %671, %cst_97 {dimension_numbers = #tpu.dot_dimension_numbers<[1], [0], [0], [1], [0, 0, 1, 1], [], []>} : vector<8x32xf32>, vector<32x96xf32>, vector<8x96xf32> -> vector<8x96xf32>
    %673 = arith.addf %670, %672 : vector<8x96xf32>
    %c96_98 = arith.constant 96 : index
    %c0_99 = arith.constant 0 : index
    %674 = vector.load %arg3[%c96_98, %c0_99] : memref<208x96xf32, #tpu.memory_space<vmem>>, vector<8x96xf32>
    %675 = vector.extract_strided_slice %674 {offsets = [0, 0], sizes = [1, 96], strides = [1, 1]} : vector<8x96xf32> to vector<1x96xf32>
    %676 = vector.broadcast %675 : vector<1x96xf32> to vector<8x96xf32>
    %677 = arith.addf %673, %676 : vector<8x96xf32>
    %c64_100 = arith.constant 64 : index
    %c0_101 = arith.constant 0 : index
    %678 = vector.load %arg3[%c64_100, %c0_101] : memref<208x96xf32, #tpu.memory_space<vmem>>, vector<32x96xf32>
    %c104_102 = arith.constant 104 : index
    %c0_103 = arith.constant 0 : index
    %679 = vector.load %arg3[%c104_102, %c0_103] : memref<208x96xf32, #tpu.memory_space<vmem>>, vector<8x96xf32>
    %680 = vector.extract_strided_slice %679 {offsets = [0, 0], sizes = [1, 96], strides = [1, 1]} : vector<8x96xf32> to vector<1x96xf32>
    %681 = vector.shape_cast %680 : vector<1x96xf32> to vector<1x96xf32>
    %682 = vector.broadcast %681 : vector<1x96xf32> to vector<2x96xf32>
    %cst_104 = arith.constant 0.000000e+00 : f32
    %683 = vector.broadcast %cst_104 : f32 to vector<2x32xf32>
    %684 = vector.extract_strided_slice %677 {offsets = [0, 0], sizes = [2, 96], strides = [1, 1]} : vector<8x96xf32> to vector<2x96xf32>
    %cst_105 = arith.constant dense<0.000000e+00> : vector<2x96xf32>
    %685 = tpu.matmul %683, %678, %cst_105 {dimension_numbers = #tpu.dot_dimension_numbers<[1], [0], [0], [1], [0, 0, 1, 1], [], []>} : vector<2x32xf32>, vector<32x96xf32>, vector<2x96xf32> -> vector<2x96xf32>
    %686 = arith.addf %685, %682 : vector<2x96xf32>
    %687 = vector.extract_strided_slice %684 {offsets = [0, 0], sizes = [2, 64], strides = [1, 1]} : vector<2x96xf32> to vector<2x64xf32>
    %688 = vector.extract_strided_slice %686 {offsets = [0, 0], sizes = [2, 64], strides = [1, 1]} : vector<2x96xf32> to vector<2x64xf32>
    %689 = arith.addf %687, %688 : vector<2x64xf32>
    %690 = arith.negf %689 : vector<2x64xf32>
    %691 = math.exp %690 : vector<2x64xf32>
    %cst_106 = arith.constant 1.000000e+00 : f32
    %692 = vector.broadcast %cst_106 : f32 to vector<2x64xf32>
    %693 = arith.addf %692, %691 : vector<2x64xf32>
    %694 = arith.divf %692, %693 : vector<2x64xf32>
    %695 = vector.extract_strided_slice %694 {offsets = [0, 0], sizes = [2, 32], strides = [1, 1]} : vector<2x64xf32> to vector<2x32xf32>
    %696 = vector.extract_strided_slice %694 {offsets = [0, 32], sizes = [2, 32], strides = [1, 1]} : vector<2x64xf32> to vector<2x32xf32>
    %697 = vector.extract_strided_slice %684 {offsets = [0, 64], sizes = [2, 32], strides = [1, 1]} : vector<2x96xf32> to vector<2x32xf32>
    %698 = vector.extract_strided_slice %686 {offsets = [0, 64], sizes = [2, 32], strides = [1, 1]} : vector<2x96xf32> to vector<2x32xf32>
    %699 = arith.mulf %695, %698 : vector<2x32xf32>
    %700 = arith.addf %697, %699 : vector<2x32xf32>
    %701 = math.tanh %700 : vector<2x32xf32>
    %cst_107 = arith.constant 1.000000e+00 : f32
    %702 = vector.broadcast %cst_107 : f32 to vector<2x32xf32>
    %703 = arith.subf %702, %696 : vector<2x32xf32>
    %704 = arith.mulf %703, %701 : vector<2x32xf32>
    %705 = arith.mulf %696, %683 : vector<2x32xf32>
    %706 = arith.addf %704, %705 : vector<2x32xf32>
    %707 = vector.extract_strided_slice %706 {offsets = [0, 0], sizes = [2, 16], strides = [1, 1]} : vector<2x32xf32> to vector<2x16xf32>
    %708 = vector.extract_strided_slice %706 {offsets = [0, 16], sizes = [2, 16], strides = [1, 1]} : vector<2x32xf32> to vector<2x16xf32>
    %709 = vector.extract_strided_slice %677 {offsets = [2, 0], sizes = [2, 96], strides = [1, 1]} : vector<8x96xf32> to vector<2x96xf32>
    %cst_108 = arith.constant dense<0.000000e+00> : vector<2x96xf32>
    %710 = tpu.matmul %706, %678, %cst_108 {dimension_numbers = #tpu.dot_dimension_numbers<[1], [0], [0], [1], [0, 0, 1, 1], [], []>} : vector<2x32xf32>, vector<32x96xf32>, vector<2x96xf32> -> vector<2x96xf32>
    %711 = arith.addf %710, %682 : vector<2x96xf32>
    %712 = vector.extract_strided_slice %709 {offsets = [0, 0], sizes = [2, 64], strides = [1, 1]} : vector<2x96xf32> to vector<2x64xf32>
    %713 = vector.extract_strided_slice %711 {offsets = [0, 0], sizes = [2, 64], strides = [1, 1]} : vector<2x96xf32> to vector<2x64xf32>
    %714 = arith.addf %712, %713 : vector<2x64xf32>
    %715 = arith.negf %714 : vector<2x64xf32>
    %716 = math.exp %715 : vector<2x64xf32>
    %cst_109 = arith.constant 1.000000e+00 : f32
    %717 = vector.broadcast %cst_109 : f32 to vector<2x64xf32>
    %718 = arith.addf %717, %716 : vector<2x64xf32>
    %719 = arith.divf %717, %718 : vector<2x64xf32>
    %720 = vector.extract_strided_slice %719 {offsets = [0, 0], sizes = [2, 32], strides = [1, 1]} : vector<2x64xf32> to vector<2x32xf32>
    %721 = vector.extract_strided_slice %719 {offsets = [0, 32], sizes = [2, 32], strides = [1, 1]} : vector<2x64xf32> to vector<2x32xf32>
    %722 = vector.extract_strided_slice %709 {offsets = [0, 64], sizes = [2, 32], strides = [1, 1]} : vector<2x96xf32> to vector<2x32xf32>
    %723 = vector.extract_strided_slice %711 {offsets = [0, 64], sizes = [2, 32], strides = [1, 1]} : vector<2x96xf32> to vector<2x32xf32>
    %724 = arith.mulf %720, %723 : vector<2x32xf32>
    %725 = arith.addf %722, %724 : vector<2x32xf32>
    %726 = math.tanh %725 : vector<2x32xf32>
    %cst_110 = arith.constant 1.000000e+00 : f32
    %727 = vector.broadcast %cst_110 : f32 to vector<2x32xf32>
    %728 = arith.subf %727, %721 : vector<2x32xf32>
    %729 = arith.mulf %728, %726 : vector<2x32xf32>
    %730 = arith.mulf %721, %706 : vector<2x32xf32>
    %731 = arith.addf %729, %730 : vector<2x32xf32>
    %732 = vector.extract_strided_slice %731 {offsets = [0, 0], sizes = [2, 16], strides = [1, 1]} : vector<2x32xf32> to vector<2x16xf32>
    %733 = vector.extract_strided_slice %731 {offsets = [0, 16], sizes = [2, 16], strides = [1, 1]} : vector<2x32xf32> to vector<2x16xf32>
    %734 = vector.extract_strided_slice %677 {offsets = [4, 0], sizes = [2, 96], strides = [1, 1]} : vector<8x96xf32> to vector<2x96xf32>
    %cst_111 = arith.constant dense<0.000000e+00> : vector<2x96xf32>
    %735 = tpu.matmul %731, %678, %cst_111 {dimension_numbers = #tpu.dot_dimension_numbers<[1], [0], [0], [1], [0, 0, 1, 1], [], []>} : vector<2x32xf32>, vector<32x96xf32>, vector<2x96xf32> -> vector<2x96xf32>
    %736 = arith.addf %735, %682 : vector<2x96xf32>
    %737 = vector.extract_strided_slice %734 {offsets = [0, 0], sizes = [2, 64], strides = [1, 1]} : vector<2x96xf32> to vector<2x64xf32>
    %738 = vector.extract_strided_slice %736 {offsets = [0, 0], sizes = [2, 64], strides = [1, 1]} : vector<2x96xf32> to vector<2x64xf32>
    %739 = arith.addf %737, %738 : vector<2x64xf32>
    %740 = arith.negf %739 : vector<2x64xf32>
    %741 = math.exp %740 : vector<2x64xf32>
    %cst_112 = arith.constant 1.000000e+00 : f32
    %742 = vector.broadcast %cst_112 : f32 to vector<2x64xf32>
    %743 = arith.addf %742, %741 : vector<2x64xf32>
    %744 = arith.divf %742, %743 : vector<2x64xf32>
    %745 = vector.extract_strided_slice %744 {offsets = [0, 0], sizes = [2, 32], strides = [1, 1]} : vector<2x64xf32> to vector<2x32xf32>
    %746 = vector.extract_strided_slice %744 {offsets = [0, 32], sizes = [2, 32], strides = [1, 1]} : vector<2x64xf32> to vector<2x32xf32>
    %747 = vector.extract_strided_slice %734 {offsets = [0, 64], sizes = [2, 32], strides = [1, 1]} : vector<2x96xf32> to vector<2x32xf32>
    %748 = vector.extract_strided_slice %736 {offsets = [0, 64], sizes = [2, 32], strides = [1, 1]} : vector<2x96xf32> to vector<2x32xf32>
    %749 = arith.mulf %745, %748 : vector<2x32xf32>
    %750 = arith.addf %747, %749 : vector<2x32xf32>
    %751 = math.tanh %750 : vector<2x32xf32>
    %cst_113 = arith.constant 1.000000e+00 : f32
    %752 = vector.broadcast %cst_113 : f32 to vector<2x32xf32>
    %753 = arith.subf %752, %746 : vector<2x32xf32>
    %754 = arith.mulf %753, %751 : vector<2x32xf32>
    %755 = arith.mulf %746, %731 : vector<2x32xf32>
    %756 = arith.addf %754, %755 : vector<2x32xf32>
    %757 = vector.extract_strided_slice %756 {offsets = [0, 0], sizes = [2, 16], strides = [1, 1]} : vector<2x32xf32> to vector<2x16xf32>
    %758 = vector.extract_strided_slice %756 {offsets = [0, 16], sizes = [2, 16], strides = [1, 1]} : vector<2x32xf32> to vector<2x16xf32>
    %759 = vector.extract_strided_slice %677 {offsets = [6, 0], sizes = [2, 96], strides = [1, 1]} : vector<8x96xf32> to vector<2x96xf32>
    %cst_114 = arith.constant dense<0.000000e+00> : vector<2x96xf32>
    %760 = tpu.matmul %756, %678, %cst_114 {dimension_numbers = #tpu.dot_dimension_numbers<[1], [0], [0], [1], [0, 0, 1, 1], [], []>} : vector<2x32xf32>, vector<32x96xf32>, vector<2x96xf32> -> vector<2x96xf32>
    %761 = arith.addf %760, %682 : vector<2x96xf32>
    %762 = vector.extract_strided_slice %759 {offsets = [0, 0], sizes = [2, 64], strides = [1, 1]} : vector<2x96xf32> to vector<2x64xf32>
    %763 = vector.extract_strided_slice %761 {offsets = [0, 0], sizes = [2, 64], strides = [1, 1]} : vector<2x96xf32> to vector<2x64xf32>
    %764 = arith.addf %762, %763 : vector<2x64xf32>
    %765 = arith.negf %764 : vector<2x64xf32>
    %766 = math.exp %765 : vector<2x64xf32>
    %cst_115 = arith.constant 1.000000e+00 : f32
    %767 = vector.broadcast %cst_115 : f32 to vector<2x64xf32>
    %768 = arith.addf %767, %766 : vector<2x64xf32>
    %769 = arith.divf %767, %768 : vector<2x64xf32>
    %770 = vector.extract_strided_slice %769 {offsets = [0, 0], sizes = [2, 32], strides = [1, 1]} : vector<2x64xf32> to vector<2x32xf32>
    %771 = vector.extract_strided_slice %769 {offsets = [0, 32], sizes = [2, 32], strides = [1, 1]} : vector<2x64xf32> to vector<2x32xf32>
    %772 = vector.extract_strided_slice %759 {offsets = [0, 64], sizes = [2, 32], strides = [1, 1]} : vector<2x96xf32> to vector<2x32xf32>
    %773 = vector.extract_strided_slice %761 {offsets = [0, 64], sizes = [2, 32], strides = [1, 1]} : vector<2x96xf32> to vector<2x32xf32>
    %774 = arith.mulf %770, %773 : vector<2x32xf32>
    %775 = arith.addf %772, %774 : vector<2x32xf32>
    %776 = math.tanh %775 : vector<2x32xf32>
    %cst_116 = arith.constant 1.000000e+00 : f32
    %777 = vector.broadcast %cst_116 : f32 to vector<2x32xf32>
    %778 = arith.subf %777, %771 : vector<2x32xf32>
    %779 = arith.mulf %778, %776 : vector<2x32xf32>
    %780 = arith.mulf %771, %756 : vector<2x32xf32>
    %781 = arith.addf %779, %780 : vector<2x32xf32>
    %782 = vector.extract_strided_slice %781 {offsets = [0, 0], sizes = [2, 16], strides = [1, 1]} : vector<2x32xf32> to vector<2x16xf32>
    %783 = vector.extract_strided_slice %781 {offsets = [0, 16], sizes = [2, 16], strides = [1, 1]} : vector<2x32xf32> to vector<2x16xf32>
    %784 = tpu.concatenate %707, %732, %757, %782 in 0 : vector<2x16xf32>, vector<2x16xf32>, vector<2x16xf32>, vector<2x16xf32> -> vector<8x16xf32>
    %785 = tpu.concatenate %783, %758, %733, %708 in 0 : vector<2x16xf32>, vector<2x16xf32>, vector<2x16xf32>, vector<2x16xf32> -> vector<8x16xf32>
    %c112_117 = arith.constant 112 : index
    %c0_118 = arith.constant 0 : index
    %786 = vector.load %arg3[%c112_117, %c0_118] : memref<208x96xf32, #tpu.memory_space<vmem>>, vector<32x96xf32>
    %787 = vector.extract_strided_slice %786 {offsets = [0, 0], sizes = [32, 32], strides = [1, 1]} : vector<32x96xf32> to vector<32x32xf32>
    %788 = vector.extract_strided_slice %787 {offsets = [0, 0], sizes = [16, 32], strides = [1, 1]} : vector<32x32xf32> to vector<16x32xf32>
    %cst_119 = arith.constant dense<0.000000e+00> : vector<8x32xf32>
    %789 = tpu.matmul %784, %788, %cst_119 {dimension_numbers = #tpu.dot_dimension_numbers<[1], [0], [0], [1], [0, 0, 1, 1], [], []>} : vector<8x16xf32>, vector<16x32xf32>, vector<8x32xf32> -> vector<8x32xf32>
    %790 = vector.extract_strided_slice %787 {offsets = [16, 0], sizes = [16, 32], strides = [1, 1]} : vector<32x32xf32> to vector<16x32xf32>
    %cst_120 = arith.constant dense<0.000000e+00> : vector<8x32xf32>
    %791 = tpu.matmul %785, %790, %cst_120 {dimension_numbers = #tpu.dot_dimension_numbers<[1], [0], [0], [1], [0, 0, 1, 1], [], []>} : vector<8x16xf32>, vector<16x32xf32>, vector<8x32xf32> -> vector<8x32xf32>
    %792 = arith.addf %789, %791 : vector<8x32xf32>
    %c144_121 = arith.constant 144 : index
    %c0_122 = arith.constant 0 : index
    %793 = vector.load %arg3[%c144_121, %c0_122] : memref<208x96xf32, #tpu.memory_space<vmem>>, vector<8x96xf32>
    %794 = vector.extract_strided_slice %793 {offsets = [0, 0], sizes = [1, 32], strides = [1, 1]} : vector<8x96xf32> to vector<1x32xf32>
    %795 = vector.broadcast %794 : vector<1x32xf32> to vector<8x32xf32>
    %796 = arith.addf %792, %795 : vector<8x32xf32>
    %797 = math.tanh %796 : vector<8x32xf32>
    %c152_123 = arith.constant 152 : index
    %c0_124 = arith.constant 0 : index
    %798 = vector.load %arg3[%c152_123, %c0_124] : memref<208x96xf32, #tpu.memory_space<vmem>>, vector<8x96xf32>
    %799 = vector.extract_strided_slice %798 {offsets = [0, 0], sizes = [1, 32], strides = [1, 1]} : vector<8x96xf32> to vector<1x32xf32>
    %800 = vector.broadcast %799 : vector<1x32xf32> to vector<8x32xf32>
    %801 = arith.mulf %797, %800 : vector<8x32xf32>
    %cst_125 = arith.constant dense<0.000000e+00> : vector<8xf32>
    %802 = vector.multi_reduction <add>, %801, %cst_125 [1] : vector<8x32xf32> to vector<8xf32>
    %803 = vector.shape_cast %802 : vector<8xf32> to vector<8x1xf32>
    %804 = math.tanh %803 : vector<8x1xf32>
    %805 = math.exp %804 : vector<8x1xf32>
    %806 = vector.broadcast %805 : vector<8x1xf32> to vector<8x16xf32>
    %807 = arith.mulf %784, %806 : vector<8x16xf32>
    %808 = vector.broadcast %805 : vector<8x1xf32> to vector<8x16xf32>
    %809 = arith.mulf %785, %808 : vector<8x16xf32>
    %810 = tpu.concatenate %807, %809, %805 in 1 : vector<8x16xf32>, vector<8x16xf32>, vector<8x1xf32> -> vector<8x33xf32>
    %c160_126 = arith.constant 160 : index
    %c0_127 = arith.constant 0 : index
    %811 = vector.load %arg3[%c160_126, %c0_127] : memref<208x96xf32, #tpu.memory_space<vmem>>, vector<8x96xf32>
    %812 = vector.extract_strided_slice %811 {offsets = [0, 0], sizes = [2, 8], strides = [1, 1]} : vector<8x96xf32> to vector<2x8xf32>
    %cst_128 = arith.constant dense<0.000000e+00> : vector<2x33xf32>
    %813 = tpu.matmul %812, %810, %cst_128 {dimension_numbers = #tpu.dot_dimension_numbers<[1], [0], [0], [1], [0, 0, 1, 1], [], []>} : vector<2x8xf32>, vector<8x33xf32>, vector<2x33xf32> -> vector<2x33xf32>
    %814 = vector.extract_strided_slice %813 {offsets = [0, 0], sizes = [2, 32], strides = [1, 1]} : vector<2x33xf32> to vector<2x32xf32>
    %815 = vector.extract_strided_slice %813 {offsets = [0, 32], sizes = [2, 1], strides = [1, 1]} : vector<2x33xf32> to vector<2x1xf32>
    %816 = tpu.reciprocal %815 {approx = true} : vector<2x1xf32> -> vector<2x1xf32>
    %817 = vector.broadcast %816 : vector<2x1xf32> to vector<2x32xf32>
    %818 = arith.mulf %814, %817 : vector<2x32xf32>
    %c168 = arith.constant 168 : index
    %c0_129 = arith.constant 0 : index
    %819 = vector.load %arg3[%c168, %c0_129] : memref<208x96xf32, #tpu.memory_space<vmem>>, vector<32x96xf32>
    %820 = vector.extract_strided_slice %819 {offsets = [0, 0], sizes = [32, 5], strides = [1, 1]} : vector<32x96xf32> to vector<32x5xf32>
    %cst_130 = arith.constant dense<0.000000e+00> : vector<2x5xf32>
    %821 = tpu.matmul %818, %820, %cst_130 {dimension_numbers = #tpu.dot_dimension_numbers<[1], [0], [0], [1], [0, 0, 1, 1], [], []>} : vector<2x32xf32>, vector<32x5xf32>, vector<2x5xf32> -> vector<2x5xf32>
    %c200 = arith.constant 200 : index
    %c0_131 = arith.constant 0 : index
    %822 = vector.load %arg3[%c200, %c0_131] : memref<208x96xf32, #tpu.memory_space<vmem>>, vector<8x96xf32>
    %823 = vector.extract_strided_slice %822 {offsets = [0, 0], sizes = [1, 5], strides = [1, 1]} : vector<8x96xf32> to vector<1x5xf32>
    %824 = vector.broadcast %823 : vector<1x5xf32> to vector<2x5xf32>
    %825 = arith.addf %821, %824 : vector<2x5xf32>
    %c0_132 = arith.constant 0 : index
    %c0_133 = arith.constant 0 : index
    %826 = vector.load %arg4[%c0_132, %c0_133] : memref<2x5xf32, #tpu.memory_space<vmem>>, vector<2x5xf32>
    tpu.vector_store %arg4[%c0_132, %c0_133], %825 {strides = array<i32>} : memref<2x5xf32, #tpu.memory_space<vmem>>, vector<2x5xf32>,
    return
  }
}

</mosaic_0001>

<bundles_post_ra>
// kernel: hier_att_net.1
= control target key start
LH: loop header
LB: loop body
LE: loop exit
PB: predicated region body
PF: predicated region fallthrough
CT: control target
= control target key end

     0   :  { %v5861_v2 = vmov 0   ;;  %s6889_s0 = inlined_call_operand.vmem [shape: s32[96,1], index: 0, kind: input, shape index: {}]   ;;  %s6890_s1 = inlined_call_operand.vmem [shape: f32[40,32], index: 1, kind: input, shape index: {}]   ;;  %s6891_s2 = inlined_call_operand.vmem [shape: f32[168,96], index: 2, kind: input, shape index: {}]   ;;  %s6892_s3 = inlined_call_operand.vmem [shape: f32[208,96], index: 3, kind: input, shape index: {}]   ;;  %s6893_s4 = inlined_call_operand.hbm [shape: f32[2,5], index: 4, kind: output, shape index: {}]  }
   0x1   :  { %v20_v0 = vld [vmem:[%s6889_s0 + $0x10] sm:$0xff]  ;;  %v18_v1 = vld [vmem:[%s6889_s0] sm:$0xff]  ;;  %5590 = vset.pattern.permute.xlu1 %v5861_v2  ;;  %5589 = vset.pattern.permute.xlu0 %v5861_v2  ;;  %v21_v3 = vld [vmem:[%s6889_s0 + $0x18] sm:$0xff] }
   0x2   :  { %39 = vperm.xlu1 %5590, %v20_v0   ;;  %33 = vperm.xlu0 %5589, %v18_v1   ;;  %v19_v4 = vld [vmem:[%s6889_s0 + $0x8] sm:$0xff]  ;;  %v104_v5 = vld [vmem:[%s6890_s1] sm:$0xff]  ;;  %v106_v7 = vld [vmem:[%s6890_s1 + $0x10] sm:$0xff] }
   0x3   :  { %v105_v6 = vld [vmem:[%s6890_s1 + $0x8] sm:$0xff]  ;;  %v107_v9 = vld [vmem:[%s6890_s1 + $0x18] sm:$0xff] }
   0x4   :  { %v5335_v8 = vpack.c.bf16 %v105_v6, %v104_v5 }
   0x5   :  { %9 = vsyncpa [#allocation3], 0  ;;  %v5339_v10 = vpack.c.bf16 %v107_v9, %v106_v7  ;;  %v23_v11 = vld [vmem:[%s6889_s0 + $0x28] sm:$0xff]  ;;  %v22_v12 = vld [vmem:[%s6889_s0 + $0x20] sm:$0xff]  ;;  %v30_v20 = vlaneseq  ;;  %vm109_vm0 = vcmask 326656   ;;  %v5862_v24 = vmov 0.0  }
   0x6   :  { %42 = vperm.xlu1 %5590, %v21_v3   ;;  %36 = vperm.xlu0 %5589, %v19_v4   ;;  %v108_v13 = vld [vmem:[%s6890_s1 + $0x20] sm:$0xff]  ;;  %v25_v14 = vld [vmem:[%s6889_s0 + $0x38] sm:$0xff]  ;;  %v24_v15 = vld [vmem:[%s6889_s0 + $0x30] sm:$0xff]  ;;  %v5863_v59 = vmov 0.0|0.0   ;;  %vm5864_vm13 = vmmov 0   ;;  %vm279_vm14 = vcmask 261120  }
   0x7   :  { %5336 = vmatprep.subr.bf16.mxu0 %v5335_v8  ;;  %v27_v16 = vld [vmem:[%s6889_s0 + $0x48] sm:$0xff]  ;;  %v26_v17 = vld [vmem:[%s6889_s0 + $0x40] sm:$0xff]  ;;  %v29_v18 = vld [vmem:[%s6889_s0 + $0x58] sm:$0xff]  ;;  %v31_v21 = vand.u32 127, %v30_v20  ;;  %s5866_s22 = smov 96   ;;  %vm3042_vm15 = vcmask 1041408  }
   0x8   :  { %5338 = vmatpush3.bf16.msra.mxu0 %v5335_v8  ;;  %v28_v19 = vld [vmem:[%s6889_s0 + $0x50] sm:$0xff]  ;;  %v275_v47 = vld [vmem:[%s6891_s2 + $0x20] sm:$0xff]  ;;  %v276_v48 = vld [vmem:[%s6891_s2 + $0x28] sm:$0xff]  ;;  %s5865_s0 = smov 64   ;;  %s5867_s23 = smov 80  }
   0x9   :  { %5340 = vmatprep.subr.bf16.mxu0 %v5339_v10  ;;  %v5343_v49 = vpack.c.bf16 %v276_v48, %v275_v47  ;;  %v277_v50 = vld [vmem:[%s6891_s2 + $0x30] sm:$0xff]  ;;  %v278_v51 = vld [vmem:[%s6891_s2 + $0x38] sm:$0xff]  ;;  %v271_v53 = vld [vmem:[%s6891_s2] sm:$0xff]  ;;  %s5869_s9 = smov [#allocation2]  }
   0xa   :  { %48 = vperm.xlu1 %5590, %v23_v11   ;;  %45 = vperm.xlu0 %5589, %v22_v12   ;;  %v5347_v52 = vpack.c.bf16 %v278_v51, %v277_v50  ;;  %v272_v54 = vld [vmem:[%s6891_s2 + $0x8] sm:$0xff]  ;;  %v517_v56 = vld [vmem:[%s6891_s2 + $0x40] sm:$0xff]  ;;  %v519_v60 = vld [vmem:[%s6891_s2 + $0x50] sm:$0xff]  ;;  %s4532_s10 = sshll.u32 %s5869_s9, 4  ;;  %s4533_s10 = int_to_ptr.vmem [resolvable:$true] %s4532_s10 }
   0xb   :  { %5344 = vmatprep.subr.bf16.mxu1 %v5343_v49  ;;  %v5351_v55 = vpack.c.bf16 %v272_v54, %v271_v53  ;;  %v518_v57 = vld [vmem:[%s6891_s2 + $0x48] sm:$0xff]  ;;  %v520_v61 = vld [vmem:[%s6891_s2 + $0x58] sm:$0xff]  ;;  %v273_v5 = vld [vmem:[%s6891_s2 + $0x10] sm:$0xff]  ;;  %s5837_s11 = scalar_lea.vmem %s4533_s10, 32  ;;  %p5842_p1 = scmp.lt.s32.totalorder %s4533_s10, %s4533_s10 }
   0xc   :  { %5342 = vmatpush3.bf16.msra.mxu0 %v5339_v10  ;;  %5346 = vmatpush3.bf16.msra.mxu1 %v5343_v49  ;;  %v5995_v58 = vpack.c.bf16 %v518_v57, %v517_v56  ;;  %v6006_v62 = vpack.c.bf16 %v520_v61, %v519_v60  ;;  %v274_v6 = vld [vmem:[%s6891_s2 + $0x18] sm:$0xff]  ;;  %p5838_p0 = scmp.ne.s32.totalorder %s4533_s10, %s5837_s11  ;;  %p5843_p2 = scmp.lt.s32.totalorder %s5837_s11, %s5837_s11 }
   0xd   :  { %4880 = vmatprep.subr.mxu0 %v108_v13  ;;  %5348 = vmatprep.subr.bf16.mxu1 %v5347_v52  ;;  %v5355_v9 = vpack.c.bf16 %v274_v6, %v273_v5 }
   0xe   :  { %54 = vperm.xlu1 %5590, %v25_v14   ;;  %51 = vperm.xlu0 %5589, %v24_v15   ;;  %v508_v14 = vshrl.u32 %v30_v20, 7  ;;  %v521_v20 = vld [vmem:[%s6891_s2 + $0x68] sm:$0xff]  ;;  %p5844_p3 = por %p5843_p2, %p5842_p1 }
  0x10   :  { %4881 = vmatpush3.msra.mxu0 %v108_v13  ;;  %5350 = vmatpush3.bf16.msra.mxu1 %v5347_v52  ;;  %v6045_v15 = vsub.s32 0, %v508_v14  ;;  %p5845_p4 = pnand %p5844_p3, %p5838_p0 }
  0x11   :  { %5352 = vmatprep.subr.bf16.mxu1 %v5351_v55  ;;  %5365 = vmatprep.subr.bf16.mxu0 %v5863_v59 }
  0x12   :  { %60 = vperm.xlu1 %5590, %v27_v16   ;;  %57 = vperm.xlu0 %5589, %v26_v17   ;;  %v506_v16 = vld [vmem:[%s6891_s2 + $0x60] sm:$0xff] }
  0x13   :  { %v510_v17 = vrot.slane %v506_v16, %v6045_v15 }
  0x16   :  { %66 = vperm.xlu1 %5590, %v29_v18   ;;  %63 = vperm.xlu0 %5589, %v28_v19  }
  0x81   :  { %v40_v22 = vpop.permute.xlu1 %39  ;;  %v34_v23 = vpop.permute.xlu0 %33 }
  0x82   :  { %vm68_vm1 = vcmp.eq.s32.totalorder %v34_v23, %v31_v21  ;;  %vm70_vm2 = vcmp.eq.s32.totalorder %v40_v22, %v31_v21 }
  0x83   :  { %v4540_v25 = vsel %vm68_vm1, 1.0, %v5862_v24  ;;  %v4542_v28 = vsel %vm70_vm2, 1.0, %v5862_v24  ;;  %vm3046_vm1 = vcmask 1045504   ;;  %vm3122_vm2 = vcmask 130048  }
  0x84   :  { %4882 = vmatprep.mubr.msk.f32.mxu0 %vm109_vm0, %v4540_v25 }
  0x85   :  { %v43_v26 = vpop.permute.xlu1 %42  ;;  %v37_v27 = vpop.permute.xlu0 %36 }
  0x86   :  { %vm69_vm3 = vcmp.eq.s32.totalorder %v37_v27, %v31_v21  ;;  %vm71_vm4 = vcmp.eq.s32.totalorder %v43_v26, %v31_v21 }
  0x87   :  { %v4541_v29 = vsel %vm69_vm3, 1.0, %v5862_v24  ;;  %v4543_v32 = vsel %vm71_vm4, 1.0, %v5862_v24  ;;  %vm3492_vm3 = vcmask 392192   ;;  %vm4361_vm4 = vcmask 64512  }
  0x88   :  { %4883 = vmatmul.mubr.msk.f32.vlgmr.msra.gmra.mrb[0].mxu0 %vm109_vm0, %v4541_v29 }
  0x89   :  { %v49_v30 = vpop.permute.xlu1 %48  ;;  %4885 = vmatprep.mubr.msk.f32.mxu0 %vm109_vm0, %v4542_v28  ;;  %v46_v31 = vpop.permute.xlu0 %45  ;;  %5367 = vmatpush3.bf16.msra.mxu0 %v5995_v58  ;;  %v6061_v28 = vrot.slane %v521_v20, %v6045_v15 }
  0x8a   :  { %vm72_vm5 = vcmp.eq.s32.totalorder %v46_v31, %v31_v21  ;;  %vm73_vm6 = vcmp.eq.s32.totalorder %v49_v30, %v31_v21  ;;  %5368 = vmatprep.subr.bf16.mxu0 %v5863_v59 }
  0x8b   :  { %v4544_v33 = vsel %vm72_vm5, 1.0, %v5862_v24  ;;  %v4545_v36 = vsel %vm73_vm6, 1.0, %v5862_v24  ;;  %vm4524_vm5 = vcmask 33792  }
  0x8c   :  { %4886 = vmatmul.mubr.msk.f32.gmra.mrb[2].mxu0 %vm109_vm0, %v4543_v32 }
  0x8d   :  { %v55_v34 = vpop.permute.xlu1 %54  ;;  %4888 = vmatprep.mubr.msk.f32.mxu0 %vm109_vm0, %v4544_v33  ;;  %v52_v35 = vpop.permute.xlu0 %51  ;;  %5370 = vmatpush3.bf16.msra.mxu0 %v6006_v62 }
  0x8e   :  { %vm74_vm7 = vcmp.eq.s32.totalorder %v52_v35, %v31_v21  ;;  %vm75_vm8 = vcmp.eq.s32.totalorder %v55_v34, %v31_v21  ;;  %5377 = vmatprep.subr.bf16.mxu0 %v5863_v59 }
  0x8f   :  { %v4546_v37 = vsel %vm74_vm7, 1.0, %v5862_v24  ;;  %v4547_v40 = vsel %vm75_vm8, 1.0, %v5862_v24 }
  0x90   :  { %4889 = vmatmul.mubr.msk.f32.gmra.mrb[4].mxu0 %vm109_vm0, %v4545_v36 }
  0x91   :  { %v61_v38 = vpop.permute.xlu1 %60  ;;  %4891 = vmatprep.mubr.msk.f32.mxu0 %vm109_vm0, %v4546_v37  ;;  %v58_v39 = vpop.permute.xlu0 %57 }
  0x92   :  { %vm76_vm9 = vcmp.eq.s32.totalorder %v58_v39, %v31_v21  ;;  %vm77_vm10 = vcmp.eq.s32.totalorder %v61_v38, %v31_v21 }
  0x93   :  { %v4548_v41 = vsel %vm76_vm9, 1.0, %v5862_v24  ;;  %v4549_v44 = vsel %vm77_vm10, 1.0, %v5862_v24 }
  0x94   :  { %4892 = vmatmul.mubr.msk.f32.gmra.mrb[6].mxu0 %vm109_vm0, %v4547_v40 }
  0x95   :  { %v67_v42 = vpop.permute.xlu1 %66  ;;  %4894 = vmatprep.mubr.msk.f32.mxu0 %vm109_vm0, %v4548_v41  ;;  %v64_v43 = vpop.permute.xlu0 %63 }
  0x96   :  { %vm78_vm11 = vcmp.eq.s32.totalorder %v64_v43, %v31_v21  ;;  %vm79_vm12 = vcmp.eq.s32.totalorder %v67_v42, %v31_v21 }
  0x97   :  { %v4550_v45 = vsel %vm78_vm11, 1.0, %v5862_v24  ;;  %v4551_v46 = vsel %vm79_vm12, 1.0, %v5862_v24 }
  0x98   :  { %4895 = vmatmul.mubr.msk.f32.gmra.mrb[8].mxu0 %vm109_vm0, %v4549_v44 }
  0x99   :  { %4897 = vmatprep.mubr.msk.f32.mxu0 %vm109_vm0, %v4550_v45 }
  0x9c   :  { %4898 = vmatmul.mubr.msk.f32.gmra.mrb[10].mxu0 %vm109_vm0, %v4551_v46  ;;  %vm3044_vm0 = vcmask 1043456  }
  0x9d   :  { %4953 = vmatprep.mubr.msk.f32.mxu0 %vm5864_vm13, %v5862_v24 }
 0x15b   :  { %v4884_v63 = vpop.f32.mrb[0].mxu0 }
 0x15c   :  { %v212_v0 = vpop.f32.mrb[1].mxu0 }
 0x15f   :  { %v4887_v1 = vpop.f32.mrb[2].mxu0 }
 0x160   :  { %v222_v2 = vpop.f32.mrb[3].mxu0 }
 0x163   :  { %v4890_v3 = vpop.f32.mrb[4].mxu0 }
 0x164   :  { %v232_v4 = vpop.f32.mrb[5].mxu0 }
 0x167   :  { %v4893_v7 = vpop.f32.mrb[6].mxu0 }
 0x168   :  { %v242_v8 = vpop.f32.mrb[7].mxu0 }
 0x169   :  { %4908 = vmatprep.mubr.msk.f32.mxu1 %vm279_vm14, %v242_v8 }
 0x16a   :  { %4909 = vmatmul.mubr.msk.f32.vlgmr.msra.gmra.mrb[0].mxu1 %vm279_vm14, %v4893_v7 }
 0x16b   :  { %v4896_v10 = vpop.f32.mrb[8].mxu0  ;;  %5354 = vmatpush3.bf16.msra.mxu1 %v5351_v55 }
 0x16c   :  { %v252_v11 = vpop.f32.mrb[9].mxu0  ;;  %5356 = vmatprep.subr.bf16.mxu1 %v5355_v9 }
 0x16d   :  { %4911 = vmatprep.mubr.msk.f32.mxu1 %vm279_vm14, %v252_v11 }
 0x16e   :  { %4912 = vmatmul.mubr.msk.f32.gmra.mrb[2].mxu1 %vm279_vm14, %v4896_v10 }
 0x16f   :  { %v4899_v12 = vpop.f32.mrb[10].mxu0  ;;  %5358 = vmatpush3.bf16.msra.mxu1 %v5355_v9 }
 0x170   :  { %v262_v13 = vpop.f32.mrb[11].mxu0  ;;  %5359 = vmatprep.subr.bf16.mxu1 %v5863_v59 }
 0x171   :  { %4914 = vmatprep.mubr.msk.f32.mxu1 %vm279_vm14, %v262_v13 }
 0x172   :  { %4915 = vmatmul.mubr.msk.f32.gmra.mrb[4].mxu1 %vm279_vm14, %v4899_v12 }
 0x173   :  { %4925 = vmatprep.mubr.msk.f32.mxu1 %vm279_vm14, %v212_v0 }
 0x176   :  { %4926 = vmatmul.mubr.msk.f32.vlgmr.msra.gmra.mrb[0].mxu1 %vm279_vm14, %v4884_v63 }
 0x177   :  { %4928 = vmatprep.mubr.msk.f32.mxu1 %vm279_vm14, %v222_v2  ;;  %5361 = vmatpush3.bf16.msra.mxu1 %v5995_v58 }
 0x178   :  { %5362 = vmatprep.subr.bf16.mxu1 %v5863_v59 }
 0x17a   :  { %4929 = vmatmul.mubr.msk.f32.gmra.mrb[2].mxu1 %vm279_vm14, %v4887_v1 }
 0x17b   :  { %4931 = vmatprep.mubr.msk.f32.mxu1 %vm279_vm14, %v232_v4  ;;  %5364 = vmatpush3.bf16.msra.mxu1 %v6006_v62 }
 0x17c   :  { %5371 = vmatprep.subr.bf16.mxu1 %v5863_v59 }
 0x17e   :  { %4932 = vmatmul.mubr.msk.f32.gmra.mrb[4].mxu1 %vm279_vm14, %v4890_v3 }
 0x17f   :  { %4942 = vmatprep.mubr.msk.f32.mxu1 %vm5864_vm13, %v5862_v24 }
 0x182   :  { %4943 = vmatmul.mubr.f32.vlgmr.msra.gmra.mrb[6].mxu1 %v5862_v24 }
 0x183   :  { %5373 = vmatpush3.bf16.msra.mxu1 %v5995_v58  ;;  %4964 = vmatprep.mubr.msk.f32.mxu1 %vm5864_vm13, %v5862_v24 }
 0x184   :  { %5374 = vmatprep.subr.bf16.mxu1 %v5863_v59 }
 0x187   :  { %5376 = vmatpush3.bf16.msra.mxu1 %v6006_v62 }
 0x188   :  { %5383 = vmatprep.subr.bf16.mxu1 %v5863_v59 }
 0x249   :  { %v4927_v18 = vpop.f32.mrb[0].mxu1 }
 0x24a   :  { %v6051_v19 = vadd.f32 %v4927_v18, %v510_v17  ;;  %v477_v21 = vpop.f32.mrb[1].mxu1 }
 0x24b   :  { %v6069_v35 = vadd.f32 %v510_v17, %v477_v21 }
 0x24d   :  { %v4930_v22 = vpop.f32.mrb[2].mxu1 }
 0x24e   :  { %v6053_v23 = vadd.f32 %v4930_v22, %v510_v17  ;;  %v487_v25 = vpop.f32.mrb[3].mxu1 }
 0x24f   :  { %v6058_v26 = vadd.f32 %v510_v17, %v487_v25 }
 0x251   :  { %v4933_v27 = vpop.f32.mrb[4].mxu1 }
 0x252   :  { %v6063_v29 = vadd.f32 %v4933_v27, %v510_v17  ;;  %v497_v30 = vpop.f32.mrb[5].mxu1 }
 0x253   :  { %v6065_v31 = vadd.f32 %v510_v17, %v497_v30 }
 0x255   :  { %v595_v32 = vpop.f32.mrb[6].mxu1 }
 0x256   :  { %v596_v33 = vadd.f32 %v595_v32, %v6061_v28  ;;  %v4944_v34 = vpop.f32.mrb[7].mxu1 }
 0x258   :  { %607 = vrot.lane.b32.xlu0 %v596_v33, %s5865_s0  ;;  %v599_v36 = vadd.f32 %v596_v33, %v6069_v35 }
 0x25a   :  { %v4576_v37 = vmul.f32 -1.442695, %v599_v36 }
 0x25c   :  { %5623 = vpow2.f32 %v4576_v37 }
 0x266   :  { %v5624_v38 = vpop.eup %5623 }
 0x267   :  { %v603_v39 = vadd.f32 1.0, %v5624_v38 }
 0x269   :  { %5625 = vrcp.f32 %v603_v39 }
 0x273   :  { %v5626_v40 = vpop.eup %5625 }
 0x274   :  { %v617_v46 = vsub.f32 1.0, %v5626_v40  ;;  %v623_v48 = vmul.f32 0.0, %v5626_v40 }
 0x2ca   :  { %v608_v41 = vpop.permute.xlu0 %607 }
 0x2cb   :  { %v610_v42 = vmul.f32 %v5626_v40, %v608_v41 }
 0x2cd   :  { %612 = vrot.lane.b32.xlu1 %v610_v42, %s5865_s0 }
 0x33f   :  { %v613_v43 = vpop.permute.xlu1 %612 }
 0x340   :  { %v615_v44 = vadd.f32 %v613_v43, %v6069_v35 }
 0x342   :  { %5627 = vtanh.f32 %v615_v44 }
 0x34c   :  { %v5628_v45 = vpop.eup %5627 }
 0x34d   :  { %619 = vrot.lane.b32.xlu0 %v5628_v45, %s5866_s22 }
 0x3bf   :  { %v620_v47 = vpop.permute.xlu0 %619 }
 0x3c0   :  { %v622_v49 = vmul.f32 %v620_v47, %v617_v46 }
 0x3c2   :  { %v6075_v50 = vadd.f32 %v623_v48, %v622_v49 }
 0x3c4   :  { %626 = vrot.lane.b32.xlu1 %v6075_v50, %s5866_s22  ;;  %v726_v6 = vrot.slane %v6075_v50, 6 }
 0x436   :  { %v627_v51 = vpop.permute.xlu1 %626 }
 0x437   :  { %4954 = vmatmul.mubr.msk.f32.vlgmr.msra.gmra.mrb[12].mxu0 %vm279_vm14, %v627_v51 }
 0x438   :  { %5379 = vmatpush3.bf16.msra.mxu0 %v5995_v58  ;;  %4975 = vmatprep.mubr.msk.f32.mxu0 %vm5864_vm13, %v5862_v24 }
 0x439   :  { %5380 = vmatprep.subr.bf16.mxu0 %v5863_v59 }
 0x43c   :  { %5382 = vmatpush3.bf16.msra.mxu0 %v6006_v62 }
 0x43d   :  { %5389 = vmatprep.subr.bf16.mxu0 %v5863_v59 }
 0x50a   :  { %v696_v52 = vpop.f32.mrb[12].mxu0 }
 0x50b   :  { %v697_v53 = vadd.f32 %v696_v52, %v6061_v28  ;;  %v4955_v54 = vpop.f32.mrb[13].mxu0 }
 0x50d   :  { %v701_v55 = vrot.slane %v697_v53, 6 }
 0x50f   :  { %710 = vrot.lane.b32.xlu0 %v701_v55, %s5865_s0  ;;  %v703_v56 = vadd.f32 %v701_v55, %v6069_v35 }
 0x511   :  { %v4578_v57 = vmul.f32 -1.442695, %v703_v56 }
 0x513   :  { %5629 = vpow2.f32 %v4578_v57 }
 0x51d   :  { %v5630_v60 = vpop.eup %5629 }
 0x51e   :  { %v707_v61 = vadd.f32 1.0, %v5630_v60 }
 0x520   :  { %5631 = vrcp.f32 %v707_v61 }
 0x52a   :  { %v5632_v63 = vpop.eup %5631 }
 0x52b   :  { %v720_v5 = vsub.f32 1.0, %v5632_v63  ;;  %v728_v9 = vmul.f32 %v5632_v63, %v726_v6 }
 0x581   :  { %v711_v0 = vpop.permute.xlu0 %710 }
 0x582   :  { %v713_v1 = vmul.f32 %v5632_v63, %v711_v0 }
 0x584   :  { %715 = vrot.lane.b32.xlu1 %v713_v1, %s5865_s0 }
 0x5f6   :  { %v716_v2 = vpop.permute.xlu1 %715 }
 0x5f7   :  { %v718_v3 = vadd.f32 %v716_v2, %v6069_v35 }
 0x5f9   :  { %5633 = vtanh.f32 %v718_v3 }
 0x603   :  { %v5634_v4 = vpop.eup %5633 }
 0x604   :  { %722 = vrot.lane.b32.xlu0 %v5634_v4, %s5866_s22 }
 0x676   :  { %v723_v7 = vpop.permute.xlu0 %722 }
 0x677   :  { %v725_v8 = vmul.f32 %v723_v7, %v720_v5 }
 0x679   :  { %v6095_v10 = vadd.f32 %v728_v9, %v725_v8 }
 0x67b   :  { %v731_v11 = vrot.slane %v6095_v10, 2  ;;  %v832_v37 = vrot.slane %v6095_v10, 6  ;;  %v3043_v42 = vsel %vm3042_vm15, %v6075_v50, %v6095_v10 }
 0x67d   :  { %732 = vrot.lane.b32.xlu1 %v731_v11, %s5866_s22 }
 0x6ef   :  { %v733_v12 = vpop.permute.xlu1 %732 }
 0x6f0   :  { %4965 = vmatmul.mubr.msk.f32.vlgmr.msra.gmra.mrb[8].mxu1 %vm279_vm14, %v733_v12 }
 0x6f1   :  { %5385 = vmatpush3.bf16.msra.mxu1 %v5995_v58  ;;  %4986 = vmatprep.mubr.msk.f32.mxu1 %vm5864_vm13, %v5862_v24 }
 0x6f2   :  { %5386 = vmatprep.subr.bf16.mxu1 %v5863_v59 }
 0x6f5   :  { %5388 = vmatpush3.bf16.msra.mxu1 %v6006_v62 }
 0x6f6   :  { %5395 = vmatprep.subr.bf16.mxu1 %v5863_v59 }
 0x7c3   :  { %v802_v13 = vpop.f32.mrb[8].mxu1 }
 0x7c4   :  { %v803_v14 = vadd.f32 %v802_v13, %v6061_v28  ;;  %v4966_v16 = vpop.f32.mrb[9].mxu1 }
 0x7c6   :  { %v807_v17 = vrot.slane %v803_v14, 4 }
 0x7c8   :  { %816 = vrot.lane.b32.xlu0 %v807_v17, %s5865_s0  ;;  %v809_v18 = vadd.f32 %v807_v17, %v6069_v35 }
 0x7ca   :  { %v4580_v21 = vmul.f32 -1.442695, %v809_v18 }
 0x7cc   :  { %5635 = vpow2.f32 %v4580_v21 }
 0x7d6   :  { %v5636_v22 = vpop.eup %5635 }
 0x7d7   :  { %v813_v25 = vadd.f32 1.0, %v5636_v22 }
 0x7d9   :  { %5637 = vrcp.f32 %v813_v25 }
 0x7e3   :  { %v5638_v20 = vpop.eup %5637 }
 0x7e4   :  { %v826_v36 = vsub.f32 1.0, %v5638_v20  ;;  %v834_v39 = vmul.f32 %v5638_v20, %v832_v37 }
 0x83a   :  { %v817_v27 = vpop.permute.xlu0 %816 }
 0x83b   :  { %v819_v30 = vmul.f32 %v5638_v20, %v817_v27 }
 0x83d   :  { %821 = vrot.lane.b32.xlu1 %v819_v30, %s5865_s0 }
 0x8af   :  { %v822_v32 = vpop.permute.xlu1 %821 }
 0x8b0   :  { %v824_v33 = vadd.f32 %v822_v32, %v6069_v35 }
 0x8b2   :  { %5639 = vtanh.f32 %v824_v33 }
 0x8bc   :  { %v5640_v34 = vpop.eup %5639 }
 0x8bd   :  { %828 = vrot.lane.b32.xlu0 %v5640_v34, %s5866_s22 }
 0x92f   :  { %v829_v38 = vpop.permute.xlu0 %828 }
 0x930   :  { %v831_v40 = vmul.f32 %v829_v38, %v826_v36 }
 0x932   :  { %v6115_v41 = vadd.f32 %v834_v39, %v831_v40 }
 0x934   :  { %v837_v43 = vrot.slane %v6115_v41, 4  ;;  %v3045_v44 = vsel %vm3044_vm0, %v3043_v42, %v6115_v41  ;;  %v938_v1 = vrot.slane %v6115_v41, 6  ;;  %v3102_v41 = vld [vmem:[%s6891_s2 + $0x80] sm:$0xff] }
 0x936   :  { %838 = vrot.lane.b32.xlu1 %v837_v43, %s5866_s22 }
 0x9a8   :  { %v839_v45 = vpop.permute.xlu1 %838 }
 0x9a9   :  { %4976 = vmatmul.mubr.msk.f32.vlgmr.msra.gmra.mrb[14].mxu0 %vm279_vm14, %v839_v45 }
 0x9aa   :  { %5391 = vmatpush3.bf16.msra.mxu0 %v5995_v58  ;;  %4997 = vmatprep.mubr.msk.f32.mxu0 %vm5864_vm13, %v5862_v24 }
 0x9ab   :  { %5392 = vmatprep.subr.bf16.mxu0 %v5863_v59 }
 0x9ae   :  { %5394 = vmatpush3.bf16.msra.mxu0 %v6006_v62 }
 0x9af   :  { %5401 = vmatprep.subr.bf16.mxu0 %v5863_v59 }
 0xa7c   :  { %v908_v46 = vpop.f32.mrb[14].mxu0 }
 0xa7d   :  { %v909_v47 = vadd.f32 %v908_v46, %v6061_v28  ;;  %v4977_v48 = vpop.f32.mrb[15].mxu0 }
 0xa7f   :  { %v913_v49 = vrot.slane %v909_v47, 2 }
 0xa81   :  { %922 = vrot.lane.b32.xlu0 %v913_v49, %s5865_s0  ;;  %v915_v51 = vadd.f32 %v913_v49, %v6069_v35 }
 0xa83   :  { %v4582_v52 = vmul.f32 -1.442695, %v915_v51 }
 0xa85   :  { %5641 = vpow2.f32 %v4582_v52 }
 0xa8f   :  { %v5642_v53 = vpop.eup %5641 }
 0xa90   :  { %v919_v54 = vadd.f32 1.0, %v5642_v53 }
 0xa92   :  { %5643 = vrcp.f32 %v919_v54 }
 0xa9c   :  { %v5644_v55 = vpop.eup %5643 }
 0xa9d   :  { %v932_v0 = vsub.f32 1.0, %v5644_v55  ;;  %v940_v3 = vmul.f32 %v5644_v55, %v938_v1 }
 0xaf3   :  { %v923_v56 = vpop.permute.xlu0 %922 }
 0xaf4   :  { %v925_v57 = vmul.f32 %v5644_v55, %v923_v56 }
 0xaf6   :  { %927 = vrot.lane.b32.xlu1 %v925_v57, %s5865_s0 }
 0xb68   :  { %v928_v60 = vpop.permute.xlu1 %927 }
 0xb69   :  { %v930_v61 = vadd.f32 %v928_v60, %v6069_v35 }
 0xb6b   :  { %5645 = vtanh.f32 %v930_v61 }
 0xb75   :  { %v5646_v63 = vpop.eup %5645 }
 0xb76   :  { %934 = vrot.lane.b32.xlu0 %v5646_v63, %s5866_s22 }
 0xbe8   :  { %v935_v2 = vpop.permute.xlu0 %934 }
 0xbe9   :  { %v937_v4 = vmul.f32 %v935_v2, %v932_v0 }
 0xbeb   :  { %v6140_v5 = vadd.f32 %v940_v3, %v937_v4 }
 0xbed   :  { %v943_v7 = vrot.slane %v6140_v5, 6  ;;  %v6145_v35 = vsel %vm3046_vm1, %v3045_v44, %v6140_v5  ;;  %v3064_v2 = vrot.slane %v6140_v5, 2 }
 0xbef   :  { %944 = vrot.lane.b32.xlu1 %v943_v7, %s5866_s22 }
 0xc61   :  { %v945_v8 = vpop.permute.xlu1 %944 }
 0xc62   :  { %4987 = vmatmul.mubr.msk.f32.vlgmr.msra.gmra.mrb[10].mxu1 %vm279_vm14, %v945_v8 }
 0xc63   :  { %5397 = vmatpush3.bf16.msra.mxu1 %v5995_v58  ;;  %5008 = vmatprep.mubr.msk.f32.mxu1 %vm5864_vm13, %v5862_v24 }
 0xc64   :  { %5398 = vmatprep.subr.bf16.mxu1 %v5863_v59 }
 0xc67   :  { %5400 = vmatpush3.bf16.msra.mxu1 %v6006_v62 }
 0xc68   :  { %5407 = vmatprep.subr.bf16.mxu1 %v5863_v59 }
 0xd35   :  { %v1014_v9 = vpop.f32.mrb[10].mxu1 }
 0xd36   :  { %v1015_v12 = vadd.f32 %v1014_v9, %v6061_v28  ;;  %v4988_v13 = vpop.f32.mrb[11].mxu1 }
 0xd38   :  { %1026 = vrot.lane.b32.xlu0 %v1015_v12, %s5865_s0  ;;  %v1018_v14 = vadd.f32 %v1015_v12, %v6051_v19 }
 0xd3a   :  { %v4584_v16 = vmul.f32 -1.442695, %v1018_v14 }
 0xd3c   :  { %5647 = vpow2.f32 %v4584_v16 }
 0xd46   :  { %v5648_v17 = vpop.eup %5647 }
 0xd47   :  { %v1022_v18 = vadd.f32 1.0, %v5648_v17 }
 0xd49   :  { %5649 = vrcp.f32 %v1022_v18 }
 0xd53   :  { %v5650_v21 = vpop.eup %5649 }
 0xd54   :  { %v1036_v32 = vsub.f32 1.0, %v5650_v21  ;;  %v1043_v34 = vmul.f32 %v5650_v21, %v943_v7 }
 0xdaa   :  { %v1027_v22 = vpop.permute.xlu0 %1026 }
 0xdab   :  { %v1029_v25 = vmul.f32 %v5650_v21, %v1027_v22 }
 0xdad   :  { %1031 = vrot.lane.b32.xlu1 %v1029_v25, %s5865_s0 }
 0xe1f   :  { %v1032_v20 = vpop.permute.xlu1 %1031 }
 0xe20   :  { %v1034_v27 = vadd.f32 %v1032_v20, %v6051_v19 }
 0xe22   :  { %5651 = vtanh.f32 %v1034_v27 }
 0xe2c   :  { %v5652_v30 = vpop.eup %5651 }
 0xe2d   :  { %1038 = vrot.lane.b32.xlu0 %v5652_v30, %s5866_s22 }
 0xe9f   :  { %v1039_v33 = vpop.permute.xlu0 %1038 }
 0xea0   :  { %v1041_v36 = vmul.f32 %v1039_v33, %v1036_v32 }
 0xea2   :  { %v6161_v37 = vadd.f32 %v1043_v34, %v1041_v36 }
 0xea4   :  { %1046 = vrot.lane.b32.xlu1 %v6161_v37, %s5866_s22  ;;  %v1146_v56 = vrot.slane %v6161_v37, 6 }
 0xf16   :  { %v1047_v38 = vpop.permute.xlu1 %1046 }
 0xf17   :  { %4998 = vmatmul.mubr.msk.f32.vlgmr.msra.gmra.mrb[16].mxu0 %vm279_vm14, %v1047_v38 }
 0xf18   :  { %5403 = vmatpush3.bf16.msra.mxu0 %v5995_v58  ;;  %5019 = vmatprep.mubr.msk.f32.mxu0 %vm5864_vm13, %v5862_v24 }
 0xf19   :  { %5404 = vmatprep.subr.bf16.mxu0 %v5863_v59 }
 0xf1c   :  { %5406 = vmatpush3.bf16.msra.mxu0 %v6006_v62 }
 0xf1d   :  { %5413 = vmatprep.subr.bf16.mxu0 %v5863_v59 }
 0xfea   :  { %v1116_v39 = vpop.f32.mrb[16].mxu0 }
 0xfeb   :  { %v1117_v40 = vadd.f32 %v1116_v39, %v6061_v28  ;;  %v4999_v42 = vpop.f32.mrb[17].mxu0 }
 0xfed   :  { %v1121_v43 = vrot.slane %v1117_v40, 6 }
 0xfef   :  { %1130 = vrot.lane.b32.xlu0 %v1121_v43, %s5865_s0  ;;  %v1123_v44 = vadd.f32 %v1121_v43, %v6051_v19 }
 0xff1   :  { %v4586_v45 = vmul.f32 -1.442695, %v1123_v44 }
 0xff3   :  { %5653 = vpow2.f32 %v4586_v45 }
 0xffd   :  { %v5654_v46 = vpop.eup %5653 }
 0xffe   :  { %v1127_v47 = vadd.f32 1.0, %v5654_v46 }
0x1000   :  { %5655 = vrcp.f32 %v1127_v47 }
0x100a   :  { %v5656_v48 = vpop.eup %5655 }
0x100b   :  { %v1140_v55 = vsub.f32 1.0, %v5656_v48  ;;  %v1148_v61 = vmul.f32 %v5656_v48, %v1146_v56 }
0x1061   :  { %v1131_v49 = vpop.permute.xlu0 %1130 }
0x1062   :  { %v1133_v51 = vmul.f32 %v5656_v48, %v1131_v49 }
0x1064   :  { %1135 = vrot.lane.b32.xlu1 %v1133_v51, %s5865_s0 }
0x10d6   :  { %v1136_v52 = vpop.permute.xlu1 %1135 }
0x10d7   :  { %v1138_v53 = vadd.f32 %v1136_v52, %v6051_v19 }
0x10d9   :  { %5657 = vtanh.f32 %v1138_v53 }
0x10e3   :  { %v5658_v54 = vpop.eup %5657 }
0x10e4   :  { %1142 = vrot.lane.b32.xlu0 %v5658_v54, %s5866_s22 }
0x1156   :  { %v1143_v57 = vpop.permute.xlu0 %1142 }
0x1157   :  { %v1145_v60 = vmul.f32 %v1143_v57, %v1140_v55 }
0x1159   :  { %v1149_v63 = vadd.f32 %v1148_v61, %v1145_v60 }
0x115b   :  { %v1151_v0 = vrot.slane %v1149_v63, 2  ;;  %v1252_v32 = vrot.slane %v1149_v63, 6  ;;  %v3048_v39 = vsel %vm3042_vm15, %v6161_v37, %v1149_v63 }
0x115d   :  { %1152 = vrot.lane.b32.xlu1 %v1151_v0, %s5866_s22  ;;  %v3075_v3 = vsel %vm3042_vm15, %v1151_v0, %v1146_v56 }
0x115e   :  { %v6183_v4 = vsel %vm3044_vm0, %v3075_v3, %v3064_v2 }
0x11cf   :  { %v1153_v7 = vpop.permute.xlu1 %1152 }
0x11d0   :  { %5009 = vmatmul.mubr.msk.f32.vlgmr.msra.gmra.mrb[12].mxu1 %vm279_vm14, %v1153_v7 }
0x11d1   :  { %5409 = vmatpush3.bf16.msra.mxu1 %v5995_v58  ;;  %5030 = vmatprep.mubr.msk.f32.mxu1 %vm5864_vm13, %v5862_v24 }
0x11d2   :  { %5410 = vmatprep.subr.bf16.mxu1 %v5863_v59 }
0x11d5   :  { %5412 = vmatpush3.bf16.msra.mxu1 %v6006_v62 }
0x11d6   :  { %5419 = vmatprep.subr.bf16.mxu1 %v5863_v59 }
0x12a3   :  { %v1222_v5 = vpop.f32.mrb[12].mxu1 }
0x12a4   :  { %v1223_v8 = vadd.f32 %v1222_v5, %v6061_v28  ;;  %v5010_v9 = vpop.f32.mrb[13].mxu1 }
0x12a6   :  { %v1227_v12 = vrot.slane %v1223_v8, 4 }
0x12a8   :  { %1236 = vrot.lane.b32.xlu0 %v1227_v12, %s5865_s0  ;;  %v1229_v13 = vadd.f32 %v1227_v12, %v6051_v19 }
0x12aa   :  { %v4588_v14 = vmul.f32 -1.442695, %v1229_v13 }
0x12ac   :  { %5659 = vpow2.f32 %v4588_v14 }
0x12b6   :  { %v5660_v16 = vpop.eup %5659 }
0x12b7   :  { %v1233_v17 = vadd.f32 1.0, %v5660_v16 }
0x12b9   :  { %5661 = vrcp.f32 %v1233_v17 }
0x12c3   :  { %v5662_v18 = vpop.eup %5661 }
0x12c4   :  { %v1246_v30 = vsub.f32 1.0, %v5662_v18  ;;  %v1254_v34 = vmul.f32 %v5662_v18, %v1252_v32 }
0x131a   :  { %v1237_v21 = vpop.permute.xlu0 %1236 }
0x131b   :  { %v1239_v22 = vmul.f32 %v5662_v18, %v1237_v21 }
0x131d   :  { %1241 = vrot.lane.b32.xlu1 %v1239_v22, %s5865_s0 }
0x138f   :  { %v1242_v25 = vpop.permute.xlu1 %1241 }
0x1390   :  { %v1244_v20 = vadd.f32 %v1242_v25, %v6051_v19 }
0x1392   :  { %5663 = vtanh.f32 %v1244_v20 }
0x139c   :  { %v5664_v27 = vpop.eup %5663 }
0x139d   :  { %1248 = vrot.lane.b32.xlu0 %v5664_v27, %s5866_s22 }
0x140f   :  { %v1249_v33 = vpop.permute.xlu0 %1248 }
0x1410   :  { %v1251_v36 = vmul.f32 %v1249_v33, %v1246_v30 }
0x1412   :  { %v6198_v38 = vadd.f32 %v1254_v34, %v1251_v36 }
0x1414   :  { %v1257_v40 = vrot.slane %v6198_v38, 4  ;;  %v3049_v42 = vsel %vm3044_vm0, %v3048_v39, %v6198_v38  ;;  %v1358_v61 = vrot.slane %v6198_v38, 6 }
0x1416   :  { %1258 = vrot.lane.b32.xlu1 %v1257_v40, %s5866_s22 }
0x1488   :  { %v1259_v43 = vpop.permute.xlu1 %1258 }
0x1489   :  { %5020 = vmatmul.mubr.msk.f32.vlgmr.msra.gmra.mrb[18].mxu0 %vm279_vm14, %v1259_v43 }
0x148a   :  { %5415 = vmatpush3.bf16.msra.mxu0 %v5995_v58  ;;  %5041 = vmatprep.mubr.msk.f32.mxu0 %vm5864_vm13, %v5862_v24 }
0x148b   :  { %5416 = vmatprep.subr.bf16.mxu0 %v5863_v59 }
0x148e   :  { %5418 = vmatpush3.bf16.msra.mxu0 %v6006_v62 }
0x148f   :  { %5425 = vmatprep.subr.bf16.mxu0 %v5863_v59 }
0x155c   :  { %v1328_v37 = vpop.f32.mrb[18].mxu0 }
0x155d   :  { %v1329_v44 = vadd.f32 %v1328_v37, %v6061_v28  ;;  %v5021_v45 = vpop.f32.mrb[19].mxu0 }
0x155f   :  { %v1333_v46 = vrot.slane %v1329_v44, 2 }
0x1561   :  { %1342 = vrot.lane.b32.xlu0 %v1333_v46, %s5865_s0  ;;  %v1335_v47 = vadd.f32 %v1333_v46, %v6051_v19 }
0x1563   :  { %v4590_v48 = vmul.f32 -1.442695, %v1335_v47 }
0x1565   :  { %5665 = vpow2.f32 %v4590_v48 }
0x156f   :  { %v5666_v49 = vpop.eup %5665 }
0x1570   :  { %v1339_v51 = vadd.f32 1.0, %v5666_v49 }
0x1572   :  { %5667 = vrcp.f32 %v1339_v51 }
0x157c   :  { %v5668_v52 = vpop.eup %5667 }
0x157d   :  { %v1352_v60 = vsub.f32 1.0, %v5668_v52  ;;  %v1360_v0 = vmul.f32 %v5668_v52, %v1358_v61 }
0x15d3   :  { %v1343_v53 = vpop.permute.xlu0 %1342 }
0x15d4   :  { %v1345_v54 = vmul.f32 %v5668_v52, %v1343_v53 }
0x15d6   :  { %1347 = vrot.lane.b32.xlu1 %v1345_v54, %s5865_s0 }
0x1648   :  { %v1348_v55 = vpop.permute.xlu1 %1347 }
0x1649   :  { %v1350_v56 = vadd.f32 %v1348_v55, %v6051_v19 }
0x164b   :  { %5669 = vtanh.f32 %v1350_v56 }
0x1655   :  { %v5670_v57 = vpop.eup %5669 }
0x1656   :  { %1354 = vrot.lane.b32.xlu0 %v5670_v57, %s5866_s22 }
0x16c8   :  { %v1355_v63 = vpop.permute.xlu0 %1354 }
0x16c9   :  { %v1357_v2 = vmul.f32 %v1355_v63, %v1352_v60 }
0x16cb   :  { %v6222_v3 = vadd.f32 %v1360_v0, %v1357_v2 }
0x16cd   :  { %v1363_v7 = vrot.slane %v6222_v3, 6  ;;  %v6227_v5 = vsel %vm3046_vm1, %v3049_v42, %v6222_v3 }
0x16cf   :  { %1364 = vrot.lane.b32.xlu1 %v1363_v7, %s5866_s22 }
0x1741   :  { %v1365_v19 = vpop.permute.xlu1 %1364 }
0x1742   :  { %5031 = vmatmul.mubr.msk.f32.vlgmr.msra.gmra.mrb[14].mxu1 %vm279_vm14, %v1365_v19 }
0x1743   :  { %5421 = vmatpush3.bf16.msra.mxu1 %v5995_v58  ;;  %5052 = vmatprep.mubr.msk.f32.mxu1 %vm5864_vm13, %v5862_v24 }
0x1744   :  { %5422 = vmatprep.subr.bf16.mxu1 %v5863_v59 }
0x1747   :  { %5424 = vmatpush3.bf16.msra.mxu1 %v6006_v62 }
0x1748   :  { %5431 = vmatprep.subr.bf16.mxu1 %v5863_v59 }
0x1815   :  { %v1434_v8 = vpop.f32.mrb[14].mxu1 }
0x1816   :  { %v1435_v9 = vadd.f32 %v1434_v8, %v6061_v28  ;;  %v5032_v12 = vpop.f32.mrb[15].mxu1 }
0x1818   :  { %1446 = vrot.lane.b32.xlu0 %v1435_v9, %s5865_s0  ;;  %v1438_v13 = vadd.f32 %v1435_v9, %v6058_v26 }
0x181a   :  { %v4592_v14 = vmul.f32 -1.442695, %v1438_v13 }
0x181c   :  { %5671 = vpow2.f32 %v4592_v14 }
0x1826   :  { %v5672_v16 = vpop.eup %5671 }
0x1827   :  { %v1442_v17 = vadd.f32 1.0, %v5672_v16 }
0x1829   :  { %5673 = vrcp.f32 %v1442_v17 }
0x1833   :  { %v5674_v18 = vpop.eup %5673 }
0x1834   :  { %v1456_v30 = vsub.f32 1.0, %v5674_v18  ;;  %v1463_v33 = vmul.f32 %v5674_v18, %v1363_v7  ;;  %v3070_v7 = vrot.slane %v6222_v3, 2 }
0x188a   :  { %v1447_v21 = vpop.permute.xlu0 %1446 }
0x188b   :  { %v1449_v22 = vmul.f32 %v5674_v18, %v1447_v21 }
0x188d   :  { %1451 = vrot.lane.b32.xlu1 %v1449_v22, %s5865_s0 }
0x18ff   :  { %v1452_v25 = vpop.permute.xlu1 %1451 }
0x1900   :  { %v1454_v20 = vadd.f32 %v1452_v25, %v6058_v26 }
0x1902   :  { %5675 = vtanh.f32 %v1454_v20 }
0x190c   :  { %v5676_v27 = vpop.eup %5675 }
0x190d   :  { %1458 = vrot.lane.b32.xlu0 %v5676_v27, %s5866_s22 }
0x197f   :  { %v1459_v32 = vpop.permute.xlu0 %1458 }
0x1980   :  { %v1461_v34 = vmul.f32 %v1459_v32, %v1456_v30 }
0x1982   :  { %v6243_v36 = vadd.f32 %v1463_v33, %v1461_v34 }
0x1984   :  { %1466 = vrot.lane.b32.xlu1 %v6243_v36, %s5866_s22  ;;  %v1566_v56 = vrot.slane %v6243_v36, 6 }
0x19f6   :  { %v1467_v39 = vpop.permute.xlu1 %1466 }
0x19f7   :  { %5042 = vmatmul.mubr.msk.f32.vlgmr.msra.gmra.mrb[20].mxu0 %vm279_vm14, %v1467_v39 }
0x19f8   :  { %5427 = vmatpush3.bf16.msra.mxu0 %v5995_v58  ;;  %5063 = vmatprep.mubr.msk.f32.mxu0 %vm5864_vm13, %v5862_v24 }
0x19f9   :  { %5428 = vmatprep.subr.bf16.mxu0 %v5863_v59 }
0x19fc   :  { %5430 = vmatpush3.bf16.msra.mxu0 %v6006_v62 }
0x19fd   :  { %5437 = vmatprep.subr.bf16.mxu0 %v5863_v59 }
0x1aca   :  { %v1536_v40 = vpop.f32.mrb[20].mxu0 }
0x1acb   :  { %v1537_v42 = vadd.f32 %v1536_v40, %v6061_v28  ;;  %v5043_v43 = vpop.f32.mrb[21].mxu0 }
0x1acd   :  { %v1541_v37 = vrot.slane %v1537_v42, 6 }
0x1acf   :  { %1550 = vrot.lane.b32.xlu0 %v1541_v37, %s5865_s0  ;;  %v1543_v44 = vadd.f32 %v1541_v37, %v6058_v26 }
0x1ad1   :  { %v4594_v45 = vmul.f32 -1.442695, %v1543_v44 }
0x1ad3   :  { %5677 = vpow2.f32 %v4594_v45 }
0x1add   :  { %v5678_v46 = vpop.eup %5677 }
0x1ade   :  { %v1547_v47 = vadd.f32 1.0, %v5678_v46 }
0x1ae0   :  { %5679 = vrcp.f32 %v1547_v47 }
0x1aea   :  { %v5680_v48 = vpop.eup %5679 }
0x1aeb   :  { %v1560_v55 = vsub.f32 1.0, %v5680_v48  ;;  %v1568_v63 = vmul.f32 %v5680_v48, %v1566_v56 }
0x1b41   :  { %v1551_v49 = vpop.permute.xlu0 %1550 }
0x1b42   :  { %v1553_v51 = vmul.f32 %v5680_v48, %v1551_v49 }
0x1b44   :  { %1555 = vrot.lane.b32.xlu1 %v1553_v51, %s5865_s0 }
0x1bb6   :  { %v1556_v52 = vpop.permute.xlu1 %1555 }
0x1bb7   :  { %v1558_v53 = vadd.f32 %v1556_v52, %v6058_v26 }
0x1bb9   :  { %5681 = vtanh.f32 %v1558_v53 }
0x1bc3   :  { %v5682_v54 = vpop.eup %5681 }
0x1bc4   :  { %1562 = vrot.lane.b32.xlu0 %v5682_v54, %s5866_s22 }
0x1c36   :  { %v1563_v57 = vpop.permute.xlu0 %1562 }
0x1c37   :  { %v1565_v60 = vmul.f32 %v1563_v57, %v1560_v55 }
0x1c39   :  { %v1569_v0 = vadd.f32 %v1568_v63, %v1565_v60 }
0x1c3b   :  { %v1571_v2 = vrot.slane %v1569_v0, 2  ;;  %v1672_v34 = vrot.slane %v1569_v0, 6  ;;  %v3051_v37 = vsel %vm3042_vm15, %v6243_v36, %v1569_v0 }
0x1c3d   :  { %1572 = vrot.lane.b32.xlu1 %v1571_v2, %s5866_s22  ;;  %v3081_v19 = vsel %vm3042_vm15, %v1571_v2, %v1566_v56 }
0x1c3e   :  { %v6265_v8 = vsel %vm3044_vm0, %v3081_v19, %v3070_v7 }
0x1caf   :  { %v1573_v9 = vpop.permute.xlu1 %1572 }
0x1cb0   :  { %5053 = vmatmul.mubr.msk.f32.vlgmr.msra.gmra.mrb[16].mxu1 %vm279_vm14, %v1573_v9 }
0x1cb1   :  { %5433 = vmatpush3.bf16.msra.mxu1 %v5995_v58  ;;  %5074 = vmatprep.mubr.msk.f32.mxu1 %vm5864_vm13, %v5862_v24 }
0x1cb2   :  { %5434 = vmatprep.subr.bf16.mxu1 %v5863_v59 }
0x1cb5   :  { %5436 = vmatpush3.bf16.msra.mxu1 %v6006_v62 }
0x1cb6   :  { %5443 = vmatprep.subr.bf16.mxu1 %v5863_v59 }
0x1d83   :  { %v1642_v3 = vpop.f32.mrb[16].mxu1 }
0x1d84   :  { %v1643_v12 = vadd.f32 %v1642_v3, %v6061_v28  ;;  %v5054_v13 = vpop.f32.mrb[17].mxu1 }
0x1d86   :  { %v1647_v14 = vrot.slane %v1643_v12, 4 }
0x1d88   :  { %1656 = vrot.lane.b32.xlu0 %v1647_v14, %s5865_s0  ;;  %v1649_v16 = vadd.f32 %v1647_v14, %v6058_v26 }
0x1d8a   :  { %v4596_v17 = vmul.f32 -1.442695, %v1649_v16 }
0x1d8c   :  { %5683 = vpow2.f32 %v4596_v17 }
0x1d96   :  { %v5684_v18 = vpop.eup %5683 }
0x1d97   :  { %v1653_v21 = vadd.f32 1.0, %v5684_v18 }
0x1d99   :  { %5685 = vrcp.f32 %v1653_v21 }
0x1da3   :  { %v5686_v22 = vpop.eup %5685 }
0x1da4   :  { %v1666_v33 = vsub.f32 1.0, %v5686_v22  ;;  %v1674_v40 = vmul.f32 %v5686_v22, %v1672_v34 }
0x1dfa   :  { %v1657_v25 = vpop.permute.xlu0 %1656 }
0x1dfb   :  { %v1659_v20 = vmul.f32 %v5686_v22, %v1657_v25 }
0x1dfd   :  { %1661 = vrot.lane.b32.xlu1 %v1659_v20, %s5865_s0 }
0x1e6f   :  { %v1662_v27 = vpop.permute.xlu1 %1661 }
0x1e70   :  { %v1664_v30 = vadd.f32 %v1662_v27, %v6058_v26 }
0x1e72   :  { %5687 = vtanh.f32 %v1664_v30 }
0x1e7c   :  { %v5688_v32 = vpop.eup %5687 }
0x1e7d   :  { %1668 = vrot.lane.b32.xlu0 %v5688_v32, %s5866_s22 }
0x1eef   :  { %v1669_v39 = vpop.permute.xlu0 %1668 }
0x1ef0   :  { %v1671_v42 = vmul.f32 %v1669_v39, %v1666_v33 }
0x1ef2   :  { %v6280_v43 = vadd.f32 %v1674_v40, %v1671_v42 }
0x1ef4   :  { %v1677_v44 = vrot.slane %v6280_v43, 4  ;;  %v3052_v45 = vsel %vm3044_vm0, %v3051_v37, %v6280_v43  ;;  %v1778_v7 = vrot.slane %v6280_v43, 6  ;;  %v3101_v43 = vld [vmem:[%s6891_s2 + $0x78] sm:$0xff] }
0x1ef6   :  { %1678 = vrot.lane.b32.xlu1 %v1677_v44, %s5866_s22 }
0x1f68   :  { %v1679_v46 = vpop.permute.xlu1 %1678 }
0x1f69   :  { %5064 = vmatmul.mubr.msk.f32.vlgmr.msra.gmra.mrb[22].mxu0 %vm279_vm14, %v1679_v46 }
0x1f6a   :  { %5439 = vmatpush3.bf16.msra.mxu0 %v5995_v58  ;;  %5085 = vmatprep.mubr.msk.f32.mxu0 %vm5864_vm13, %v5862_v24 }
0x1f6b   :  { %5440 = vmatprep.subr.bf16.mxu0 %v5863_v59 }
0x1f6e   :  { %5442 = vmatpush3.bf16.msra.mxu0 %v6006_v62 }
0x1f6f   :  { %5449 = vmatprep.subr.bf16.mxu0 %v5863_v59 }
0x203c   :  { %v1748_v36 = vpop.f32.mrb[22].mxu0 }
0x203d   :  { %v1749_v47 = vadd.f32 %v1748_v36, %v6061_v28  ;;  %v5065_v48 = vpop.f32.mrb[23].mxu0 }
0x203f   :  { %v1753_v49 = vrot.slane %v1749_v47, 2 }
0x2041   :  { %1762 = vrot.lane.b32.xlu0 %v1753_v49, %s5865_s0  ;;  %v1755_v51 = vadd.f32 %v1753_v49, %v6058_v26 }
0x2043   :  { %v4598_v52 = vmul.f32 -1.442695, %v1755_v51 }
0x2045   :  { %5689 = vpow2.f32 %v4598_v52 }
0x204f   :  { %v5690_v53 = vpop.eup %5689 }
0x2050   :  { %v1759_v54 = vadd.f32 1.0, %v5690_v53 }
0x2052   :  { %5691 = vrcp.f32 %v1759_v54 }
0x205c   :  { %v5692_v55 = vpop.eup %5691 }
0x205d   :  { %v1772_v2 = vsub.f32 1.0, %v5692_v55  ;;  %v1780_v9 = vmul.f32 %v5692_v55, %v1778_v7 }
0x20b3   :  { %v1763_v56 = vpop.permute.xlu0 %1762 }
0x20b4   :  { %v1765_v57 = vmul.f32 %v5692_v55, %v1763_v56 }
0x20b6   :  { %1767 = vrot.lane.b32.xlu1 %v1765_v57, %s5865_s0 }
0x2128   :  { %v1768_v60 = vpop.permute.xlu1 %1767 }
0x2129   :  { %v1770_v63 = vadd.f32 %v1768_v60, %v6058_v26  ;;  %v3078_v26 = vsel %vm3042_vm15, %v731_v11, %v726_v6 }
0x212b   :  { %5693 = vtanh.f32 %v1770_v63 }
0x2135   :  { %v5694_v0 = vpop.eup %5693 }
0x2136   :  { %1774 = vrot.lane.b32.xlu0 %v5694_v0, %s5866_s22 }
0x21a8   :  { %v1775_v19 = vpop.permute.xlu0 %1774 }
0x21a9   :  { %v1777_v3 = vmul.f32 %v1775_v19, %v1772_v2 }
0x21ab   :  { %v1781_v12 = vadd.f32 %v1780_v9, %v1777_v3 }
0x21ad   :  { %v3067_v13 = vrot.slane %v1781_v12, 2  ;;  %v1783_v14 = vrot.slane %v1781_v12, 6  ;;  %v6305_v16 = vsel %vm3046_vm1, %v3052_v45, %v1781_v12 }
0x21af   :  { %1784 = vrot.lane.b32.xlu1 %v1783_v14, %s5866_s22  ;;  %v6314_v17 = vsel %vm3044_vm0, %v3078_v26, %v3067_v13 }
0x2221   :  { %v1785_v18 = vpop.permute.xlu1 %1784 }
0x2222   :  { %5075 = vmatmul.mubr.msk.f32.vlgmr.msra.gmra.mrb[18].mxu1 %vm279_vm14, %v1785_v18 }
0x2223   :  { %5445 = vmatpush3.bf16.msra.mxu1 %v5995_v58  ;;  %5096 = vmatprep.mubr.msk.f32.mxu1 %vm5864_vm13, %v5862_v24 }
0x2224   :  { %5446 = vmatprep.subr.bf16.mxu1 %v5863_v59 }
0x2227   :  { %5448 = vmatpush3.bf16.msra.mxu1 %v6006_v62 }
0x2228   :  { %5455 = vmatprep.subr.bf16.mxu1 %v5863_v59 }
0x22f5   :  { %v1854_v50 = vpop.f32.mrb[18].mxu1 }
0x22f6   :  { %v1855_v6 = vadd.f32 %v1854_v50, %v6061_v28  ;;  %v5076_v10 = vpop.f32.mrb[19].mxu1 }
0x22f8   :  { %1866 = vrot.lane.b32.xlu0 %v1855_v6, %s5865_s0  ;;  %v1858_v11 = vadd.f32 %v1855_v6, %v6053_v23 }
0x22fa   :  { %v4600_v21 = vmul.f32 -1.442695, %v1858_v11 }
0x22fc   :  { %5695 = vpow2.f32 %v4600_v21 }
0x2306   :  { %v5696_v22 = vpop.eup %5695 }
0x2307   :  { %v1862_v25 = vadd.f32 1.0, %v5696_v22 }
0x2309   :  { %5697 = vrcp.f32 %v1862_v25 }
0x2313   :  { %v5698_v20 = vpop.eup %5697 }
0x2314   :  { %v1876_v39 = vsub.f32 1.0, %v5698_v20  ;;  %v1883_v42 = vmul.f32 %v5698_v20, %v1783_v14 }
0x236a   :  { %v1867_v27 = vpop.permute.xlu0 %1866 }
0x236b   :  { %v1869_v30 = vmul.f32 %v5698_v20, %v1867_v27 }
0x236d   :  { %1871 = vrot.lane.b32.xlu1 %v1869_v30, %s5865_s0 }
0x23df   :  { %v1872_v32 = vpop.permute.xlu1 %1871 }
0x23e0   :  { %v1874_v33 = vadd.f32 %v1872_v32, %v6053_v23 }
0x23e2   :  { %5699 = vtanh.f32 %v1874_v33 }
0x23ec   :  { %v5700_v34 = vpop.eup %5699 }
0x23ed   :  { %1878 = vrot.lane.b32.xlu0 %v5700_v34, %s5866_s22 }
0x245f   :  { %v1879_v40 = vpop.permute.xlu0 %1878 }
0x2460   :  { %v1881_v37 = vmul.f32 %v1879_v40, %v1876_v39 }
0x2462   :  { %v6329_v44 = vadd.f32 %v1883_v42, %v1881_v37 }
0x2464   :  { %1886 = vrot.lane.b32.xlu1 %v6329_v44, %s5866_s22  ;;  %v1986_v2 = vrot.slane %v6329_v44, 6 }
0x24d6   :  { %v1887_v45 = vpop.permute.xlu1 %1886 }
0x24d7   :  { %5086 = vmatmul.mubr.msk.f32.vlgmr.msra.gmra.mrb[24].mxu0 %vm279_vm14, %v1887_v45 }
0x24d8   :  { %5451 = vmatpush3.bf16.msra.mxu0 %v5995_v58  ;;  %5107 = vmatprep.mubr.msk.f32.mxu0 %vm5864_vm13, %v5862_v24 }
0x24d9   :  { %5452 = vmatprep.subr.bf16.mxu0 %v5863_v59 }
0x24dc   :  { %5454 = vmatpush3.bf16.msra.mxu0 %v6006_v62 }
0x24dd   :  { %5461 = vmatprep.subr.bf16.mxu0 %v5863_v59 }
0x25aa   :  { %v1956_v46 = vpop.f32.mrb[24].mxu0 }
0x25ab   :  { %v1957_v36 = vadd.f32 %v1956_v46, %v6061_v28  ;;  %v5087_v47 = vpop.f32.mrb[25].mxu0 }
0x25ad   :  { %v1961_v48 = vrot.slane %v1957_v36, 6 }
0x25af   :  { %1970 = vrot.lane.b32.xlu0 %v1961_v48, %s5865_s0  ;;  %v1963_v49 = vadd.f32 %v1961_v48, %v6053_v23 }
0x25b1   :  { %v4602_v51 = vmul.f32 -1.442695, %v1963_v49 }
0x25b3   :  { %5701 = vpow2.f32 %v4602_v51 }
0x25bd   :  { %v5702_v52 = vpop.eup %5701 }
0x25be   :  { %v1967_v53 = vadd.f32 1.0, %v5702_v52 }
0x25c0   :  { %5703 = vrcp.f32 %v1967_v53 }
0x25ca   :  { %v5704_v54 = vpop.eup %5703 }
0x25cb   :  { %v1980_v0 = vsub.f32 1.0, %v5704_v54  ;;  %v1988_v3 = vmul.f32 %v5704_v54, %v1986_v2 }
0x2621   :  { %v1971_v55 = vpop.permute.xlu0 %1970 }
0x2622   :  { %v1973_v56 = vmul.f32 %v5704_v54, %v1971_v55 }
0x2624   :  { %1975 = vrot.lane.b32.xlu1 %v1973_v56, %s5865_s0 }
0x2696   :  { %v1976_v57 = vpop.permute.xlu1 %1975 }
0x2697   :  { %v1978_v60 = vadd.f32 %v1976_v57, %v6053_v23 }
0x2699   :  { %5705 = vtanh.f32 %v1978_v60 }
0x26a3   :  { %v5706_v63 = vpop.eup %5705 }
0x26a4   :  { %1982 = vrot.lane.b32.xlu0 %v5706_v63, %s5866_s22 }
0x2716   :  { %v1983_v19 = vpop.permute.xlu0 %1982 }
0x2717   :  { %v1985_v9 = vmul.f32 %v1983_v19, %v1980_v0 }
0x2719   :  { %v6349_v12 = vadd.f32 %v1988_v3, %v1985_v9 }
0x271b   :  { %v1991_v13 = vrot.slane %v6349_v12, 2  ;;  %v2092_v39 = vrot.slane %v6349_v12, 6  ;;  %v3054_v46 = vsel %vm3042_vm15, %v6329_v44, %v6349_v12 }
0x271d   :  { %1992 = vrot.lane.b32.xlu1 %v1991_v13, %s5866_s22 }
0x278f   :  { %v1993_v14 = vpop.permute.xlu1 %1992 }
0x2790   :  { %5097 = vmatmul.mubr.msk.f32.vlgmr.msra.gmra.mrb[20].mxu1 %vm279_vm14, %v1993_v14 }
0x2791   :  { %5457 = vmatpush3.bf16.msra.mxu1 %v5995_v58  ;;  %5118 = vmatprep.mubr.msk.f32.mxu1 %vm5864_vm13, %v5862_v24 }
0x2792   :  { %5458 = vmatprep.subr.bf16.mxu1 %v5863_v59 }
0x2795   :  { %5460 = vmatpush3.bf16.msra.mxu1 %v6006_v62 }
0x2796   :  { %5467 = vmatprep.subr.bf16.mxu1 %v5863_v59 }
0x2863   :  { %v2062_v26 = vpop.f32.mrb[20].mxu1 }
0x2864   :  { %v2063_v18 = vadd.f32 %v2062_v26, %v6061_v28  ;;  %v5098_v50 = vpop.f32.mrb[21].mxu1 }
0x2866   :  { %v2067_v6 = vrot.slane %v2063_v18, 4 }
0x2868   :  { %2076 = vrot.lane.b32.xlu0 %v2067_v6, %s5865_s0  ;;  %v2069_v10 = vadd.f32 %v2067_v6, %v6053_v23 }
0x286a   :  { %v4604_v11 = vmul.f32 -1.442695, %v2069_v10 }
0x286c   :  { %5707 = vpow2.f32 %v4604_v11 }
0x2876   :  { %v5708_v21 = vpop.eup %5707 }
0x2877   :  { %v2073_v22 = vadd.f32 1.0, %v5708_v21 }
0x2879   :  { %5709 = vrcp.f32 %v2073_v22 }
0x2883   :  { %v5710_v25 = vpop.eup %5709 }
0x2884   :  { %v2086_v34 = vsub.f32 1.0, %v5710_v25  ;;  %v2094_v42 = vmul.f32 %v5710_v25, %v2092_v39 }
0x28da   :  { %v2077_v20 = vpop.permute.xlu0 %2076 }
0x28db   :  { %v2079_v27 = vmul.f32 %v5710_v25, %v2077_v20 }
0x28dd   :  { %2081 = vrot.lane.b32.xlu1 %v2079_v27, %s5865_s0 }
0x294f   :  { %v2082_v30 = vpop.permute.xlu1 %2081 }
0x2950   :  { %v2084_v32 = vadd.f32 %v2082_v30, %v6053_v23 }
0x2952   :  { %5711 = vtanh.f32 %v2084_v32 }
0x295c   :  { %v5712_v33 = vpop.eup %5711 }
0x295d   :  { %2088 = vrot.lane.b32.xlu0 %v5712_v33, %s5866_s22 }
0x29cf   :  { %v2089_v40 = vpop.permute.xlu0 %2088 }
0x29d0   :  { %v2091_v37 = vmul.f32 %v2089_v40, %v2086_v34 }
0x29d2   :  { %v6369_v45 = vadd.f32 %v2094_v42, %v2091_v37 }
0x29d4   :  { %v2097_v36 = vrot.slane %v6369_v45, 4  ;;  %v3055_v47 = vsel %vm3044_vm0, %v3054_v46, %v6369_v45  ;;  %v2198_v26 = vrot.slane %v6369_v45, 6 }
0x29d6   :  { %2098 = vrot.lane.b32.xlu1 %v2097_v36, %s5866_s22 }
0x2a48   :  { %v2099_v48 = vpop.permute.xlu1 %2098 }
0x2a49   :  { %5108 = vmatmul.mubr.msk.f32.vlgmr.msra.gmra.mrb[26].mxu0 %vm279_vm14, %v2099_v48 }
0x2a4a   :  { %5463 = vmatpush3.bf16.msra.mxu0 %v5995_v58  ;;  %5129 = vmatprep.mubr.msk.f32.mxu0 %vm5864_vm13, %v5862_v24 }
0x2a4b   :  { %5464 = vmatprep.subr.bf16.mxu0 %v5863_v59 }
0x2a4e   :  { %5466 = vmatpush3.bf16.msra.mxu0 %v6006_v62 }
0x2a4f   :  { %5473 = vmatprep.subr.bf16.mxu0 %v5863_v59 }
0x2b1c   :  { %v2168_v49 = vpop.f32.mrb[26].mxu0 }
0x2b1d   :  { %v2169_v51 = vadd.f32 %v2168_v49, %v6061_v28  ;;  %v5109_v52 = vpop.f32.mrb[27].mxu0 }
0x2b1f   :  { %v2173_v53 = vrot.slane %v2169_v51, 2 }
0x2b21   :  { %2182 = vrot.lane.b32.xlu0 %v2173_v53, %s5865_s0  ;;  %v2175_v54 = vadd.f32 %v2173_v53, %v6053_v23 }
0x2b23   :  { %v4606_v55 = vmul.f32 -1.442695, %v2175_v54 }
0x2b25   :  { %5713 = vpow2.f32 %v4606_v55 }
0x2b2f   :  { %v5714_v56 = vpop.eup %5713 }
0x2b30   :  { %v2179_v57 = vadd.f32 1.0, %v5714_v56 }
0x2b32   :  { %5715 = vrcp.f32 %v2179_v57 }
0x2b3c   :  { %v5716_v60 = vpop.eup %5715 }
0x2b3d   :  { %v2192_v14 = vsub.f32 1.0, %v5716_v60  ;;  %v2200_v50 = vmul.f32 %v5716_v60, %v2198_v26 }
0x2b93   :  { %v2183_v63 = vpop.permute.xlu0 %2182 }
0x2b94   :  { %v2185_v0 = vmul.f32 %v5716_v60, %v2183_v63 }
0x2b96   :  { %2187 = vrot.lane.b32.xlu1 %v2185_v0, %s5865_s0 }
0x2c08   :  { %v2188_v19 = vpop.permute.xlu1 %2187 }
0x2c09   :  { %v2190_v9 = vadd.f32 %v2188_v19, %v6053_v23 }
0x2c0b   :  { %5717 = vtanh.f32 %v2190_v9 }
0x2c15   :  { %v5718_v3 = vpop.eup %5717 }
0x2c16   :  { %2194 = vrot.lane.b32.xlu0 %v5718_v3, %s5866_s22 }
0x2c88   :  { %v2195_v18 = vpop.permute.xlu0 %2194 }
0x2c89   :  { %v2197_v6 = vmul.f32 %v2195_v18, %v2192_v14 }
0x2c8b   :  { %v6394_v10 = vadd.f32 %v2200_v50, %v2197_v6 }
0x2c8d   :  { %v2203_v11 = vrot.slane %v6394_v10, 6  ;;  %v6399_v21 = vsel %vm3046_vm1, %v3055_v47, %v6394_v10 }
0x2c8f   :  { %2204 = vrot.lane.b32.xlu1 %v2203_v11, %s5866_s22 }
0x2d01   :  { %v2205_v23 = vpop.permute.xlu1 %2204 }
0x2d02   :  { %5119 = vmatmul.mubr.msk.f32.vlgmr.msra.gmra.mrb[22].mxu1 %vm279_vm14, %v2205_v23 }
0x2d03   :  { %5469 = vmatpush3.bf16.msra.mxu1 %v5995_v58  ;;  %5140 = vmatprep.mubr.msk.f32.mxu1 %vm5864_vm13, %v5862_v24 }
0x2d04   :  { %5470 = vmatprep.subr.bf16.mxu1 %v5863_v59 }
0x2d07   :  { %5472 = vmatpush3.bf16.msra.mxu1 %v6006_v62 }
0x2d08   :  { %5479 = vmatprep.subr.bf16.mxu1 %v5863_v59 }
0x2dd5   :  { %v2274_v22 = vpop.f32.mrb[22].mxu1 }
0x2dd6   :  { %v2275_v25 = vadd.f32 %v2274_v22, %v6061_v28  ;;  %v5120_v20 = vpop.f32.mrb[23].mxu1 }
0x2dd8   :  { %2286 = vrot.lane.b32.xlu0 %v2275_v25, %s5865_s0  ;;  %v2278_v27 = vadd.f32 %v2275_v25, %v6065_v31 }
0x2dda   :  { %v4608_v30 = vmul.f32 -1.442695, %v2278_v27 }
0x2ddc   :  { %5719 = vpow2.f32 %v4608_v30  ;;  %v3073_v30 = vrot.slane %v6394_v10, 2 }
0x2de6   :  { %v5720_v32 = vpop.eup %5719 }
0x2de7   :  { %v2282_v33 = vadd.f32 1.0, %v5720_v32 }
0x2de9   :  { %5721 = vrcp.f32 %v2282_v33 }
0x2df3   :  { %v5722_v34 = vpop.eup %5721 }
0x2df4   :  { %v2296_v36 = vsub.f32 1.0, %v5722_v34  ;;  %v2303_v48 = vmul.f32 %v5722_v34, %v2203_v11 }
0x2e4a   :  { %v2287_v39 = vpop.permute.xlu0 %2286 }
0x2e4b   :  { %v2289_v40 = vmul.f32 %v5722_v34, %v2287_v39 }
0x2e4d   :  { %2291 = vrot.lane.b32.xlu1 %v2289_v40, %s5865_s0 }
0x2ebf   :  { %v2292_v42 = vpop.permute.xlu1 %2291 }
0x2ec0   :  { %v2294_v37 = vadd.f32 %v2292_v42, %v6065_v31 }
0x2ec2   :  { %5723 = vtanh.f32 %v2294_v37 }
0x2ecc   :  { %v5724_v46 = vpop.eup %5723 }
0x2ecd   :  { %2298 = vrot.lane.b32.xlu0 %v5724_v46, %s5866_s22 }
0x2f3f   :  { %v2299_v47 = vpop.permute.xlu0 %2298 }
0x2f40   :  { %v2301_v49 = vmul.f32 %v2299_v47, %v2296_v36 }
0x2f42   :  { %v6415_v51 = vadd.f32 %v2303_v48, %v2301_v49 }
0x2f44   :  { %2306 = vrot.lane.b32.xlu1 %v6415_v51, %s5866_s22  ;;  %v2406_v11 = vrot.slane %v6415_v51, 6 }
0x2fb6   :  { %v2307_v52 = vpop.permute.xlu1 %2306 }
0x2fb7   :  { %5130 = vmatmul.mubr.msk.f32.vlgmr.msra.gmra.mrb[28].mxu0 %vm279_vm14, %v2307_v52 }
0x2fb8   :  { %5475 = vmatpush3.bf16.msra.mxu0 %v5995_v58  ;;  %5151 = vmatprep.mubr.msk.f32.mxu0 %vm5864_vm13, %v5862_v24 }
0x2fb9   :  { %5476 = vmatprep.subr.bf16.mxu0 %v5863_v59 }
0x2fbc   :  { %5478 = vmatpush3.bf16.msra.mxu0 %v6006_v62 }
0x2fbd   :  { %5485 = vmatprep.subr.bf16.mxu0 %v5863_v59 }
0x308a   :  { %v2376_v53 = vpop.f32.mrb[28].mxu0 }
0x308b   :  { %v2377_v54 = vadd.f32 %v2376_v53, %v6061_v28  ;;  %v5131_v55 = vpop.f32.mrb[29].mxu0 }
0x308d   :  { %v2381_v56 = vrot.slane %v2377_v54, 6 }
0x308f   :  { %2390 = vrot.lane.b32.xlu0 %v2381_v56, %s5865_s0  ;;  %v2383_v57 = vadd.f32 %v2381_v56, %v6065_v31 }
0x3091   :  { %v4610_v60 = vmul.f32 -1.442695, %v2383_v57 }
0x3093   :  { %5725 = vpow2.f32 %v4610_v60 }
0x309d   :  { %v5726_v63 = vpop.eup %5725 }
0x309e   :  { %v2387_v0 = vadd.f32 1.0, %v5726_v63 }
0x30a0   :  { %5727 = vrcp.f32 %v2387_v0 }
0x30aa   :  { %v5728_v19 = vpop.eup %5727 }
0x30ab   :  { %v2400_v6 = vsub.f32 1.0, %v5728_v19  ;;  %v2408_v25 = vmul.f32 %v5728_v19, %v2406_v11 }
0x3101   :  { %v2391_v9 = vpop.permute.xlu0 %2390 }
0x3102   :  { %v2393_v3 = vmul.f32 %v5728_v19, %v2391_v9 }
0x3104   :  { %2395 = vrot.lane.b32.xlu1 %v2393_v3, %s5865_s0 }
0x3176   :  { %v2396_v14 = vpop.permute.xlu1 %2395 }
0x3177   :  { %v2398_v18 = vadd.f32 %v2396_v14, %v6065_v31 }
0x3179   :  { %5729 = vtanh.f32 %v2398_v18 }
0x3183   :  { %v5730_v50 = vpop.eup %5729 }
0x3184   :  { %2402 = vrot.lane.b32.xlu0 %v5730_v50, %s5866_s22 }
0x31f6   :  { %v2403_v23 = vpop.permute.xlu0 %2402 }
0x31f7   :  { %v2405_v22 = vmul.f32 %v2403_v23, %v2400_v6 }
0x31f9   :  { %v2409_v20 = vadd.f32 %v2408_v25, %v2405_v22 }
0x31fb   :  { %v2411_v27 = vrot.slane %v2409_v20, 2  ;;  %v2512_v57 = vrot.slane %v2409_v20, 6  ;;  %v3057_v9 = vsel %vm3042_vm15, %v6415_v51, %v2409_v20 }
0x31fd   :  { %2412 = vrot.lane.b32.xlu1 %v2411_v27, %s5866_s22  ;;  %v3084_v32 = vsel %vm3042_vm15, %v2411_v27, %v2406_v11 }
0x31fe   :  { %v6437_v33 = vsel %vm3044_vm0, %v3084_v32, %v3073_v30 }
0x326f   :  { %v2413_v34 = vpop.permute.xlu1 %2412 }
0x3270   :  { %5141 = vmatmul.mubr.msk.f32.vlgmr.msra.gmra.mrb[24].mxu1 %vm279_vm14, %v2413_v34 }
0x3271   :  { %5481 = vmatpush3.bf16.msra.mxu1 %v5995_v58  ;;  %5162 = vmatprep.mubr.msk.f32.mxu1 %vm5864_vm13, %v5862_v24 }
0x3272   :  { %5482 = vmatprep.subr.bf16.mxu1 %v5863_v59 }
0x3275   :  { %5484 = vmatpush3.bf16.msra.mxu1 %v6006_v62 }
0x3276   :  { %5491 = vmatprep.subr.bf16.mxu1 %v5863_v59 }
0x3343   :  { %v2482_v10 = vpop.f32.mrb[24].mxu1 }
0x3344   :  { %v2483_v39 = vadd.f32 %v2482_v10, %v6061_v28  ;;  %v5142_v40 = vpop.f32.mrb[25].mxu1 }
0x3346   :  { %v2487_v42 = vrot.slane %v2483_v39, 4 }
0x3348   :  { %2496 = vrot.lane.b32.xlu0 %v2487_v42, %s5865_s0  ;;  %v2489_v37 = vadd.f32 %v2487_v42, %v6065_v31 }
0x334a   :  { %v4612_v46 = vmul.f32 -1.442695, %v2489_v37 }
0x334c   :  { %5731 = vpow2.f32 %v4612_v46 }
0x3356   :  { %v5732_v36 = vpop.eup %5731 }
0x3357   :  { %v2493_v47 = vadd.f32 1.0, %v5732_v36 }
0x3359   :  { %5733 = vrcp.f32 %v2493_v47 }
0x3363   :  { %v5734_v48 = vpop.eup %5733 }
0x3364   :  { %v2506_v56 = vsub.f32 1.0, %v5734_v48  ;;  %v2514_v63 = vmul.f32 %v5734_v48, %v2512_v57 }
0x33ba   :  { %v2497_v49 = vpop.permute.xlu0 %2496 }
0x33bb   :  { %v2499_v52 = vmul.f32 %v5734_v48, %v2497_v49 }
0x33bd   :  { %2501 = vrot.lane.b32.xlu1 %v2499_v52, %s5865_s0 }
0x342f   :  { %v2502_v53 = vpop.permute.xlu1 %2501 }
0x3430   :  { %v2504_v54 = vadd.f32 %v2502_v53, %v6065_v31 }
0x3432   :  { %5735 = vtanh.f32 %v2504_v54 }
0x343c   :  { %v5736_v55 = vpop.eup %5735 }
0x343d   :  { %2508 = vrot.lane.b32.xlu0 %v5736_v55, %s5866_s22 }
0x34af   :  { %v2509_v60 = vpop.permute.xlu0 %2508 }
0x34b0   :  { %v2511_v0 = vmul.f32 %v2509_v60, %v2506_v56 }
0x34b2   :  { %v6452_v19 = vadd.f32 %v2514_v63, %v2511_v0 }
0x34b4   :  { %v2517_v3 = vrot.slane %v6452_v19, 4  ;;  %v3058_v14 = vsel %vm3044_vm0, %v3057_v9, %v6452_v19  ;;  %v2618_v42 = vrot.slane %v6452_v19, 6 }
0x34b6   :  { %2518 = vrot.lane.b32.xlu1 %v2517_v3, %s5866_s22 }
0x3528   :  { %v2519_v18 = vpop.permute.xlu1 %2518 }
0x3529   :  { %5152 = vmatmul.mubr.msk.f32.vlgmr.msra.gmra.mrb[30].mxu0 %vm279_vm14, %v2519_v18 }
0x352a   :  { %5487 = vmatpush3.bf16.msra.mxu0 %v5995_v58  ;;  %5173 = vmatprep.mubr.msk.f32.mxu0 %vm5864_vm13, %v5862_v24 }
0x352b   :  { %5488 = vmatprep.subr.bf16.mxu0 %v5863_v59 }
0x352e   :  { %5490 = vmatpush3.bf16.msra.mxu0 %v6006_v62 }
0x352f   :  { %5497 = vmatprep.subr.bf16.mxu0 %v5863_v59 }
0x35fc   :  { %v2588_v51 = vpop.f32.mrb[30].mxu0 }
0x35fd   :  { %v2589_v50 = vadd.f32 %v2588_v51, %v6061_v28  ;;  %v5153_v6 = vpop.f32.mrb[31].mxu0 }
0x35ff   :  { %v2593_v11 = vrot.slane %v2589_v50, 2 }
0x3601   :  { %2602 = vrot.lane.b32.xlu0 %v2593_v11, %s5865_s0  ;;  %v2595_v23 = vadd.f32 %v2593_v11, %v6065_v31 }
0x3603   :  { %v4614_v22 = vmul.f32 -1.442695, %v2595_v23 }
0x3605   :  { %5737 = vpow2.f32 %v4614_v22 }
0x360f   :  { %v5738_v25 = vpop.eup %5737 }
0x3610   :  { %v2599_v20 = vadd.f32 1.0, %v5738_v25 }
0x3612   :  { %5739 = vrcp.f32 %v2599_v20 }
0x361c   :  { %v5740_v27 = vpop.eup %5739 }
0x361d   :  { %v2612_v40 = vsub.f32 1.0, %v5740_v27  ;;  %v2620_v46 = vmul.f32 %v5740_v27, %v2618_v42 }
0x3673   :  { %v2603_v30 = vpop.permute.xlu0 %2602 }
0x3674   :  { %v2605_v32 = vmul.f32 %v5740_v27, %v2603_v30 }
0x3676   :  { %2607 = vrot.lane.b32.xlu1 %v2605_v32, %s5865_s0 }
0x36e8   :  { %v2608_v34 = vpop.permute.xlu1 %2607 }
0x36e9   :  { %v2610_v10 = vadd.f32 %v2608_v34, %v6065_v31 }
0x36eb   :  { %5741 = vtanh.f32 %v2610_v10 }
0x36f5   :  { %v5742_v39 = vpop.eup %5741 }
0x36f6   :  { %2614 = vrot.lane.b32.xlu0 %v5742_v39, %s5866_s22 }
0x3768   :  { %v2615_v37 = vpop.permute.xlu0 %2614 }
0x3769   :  { %v2617_v36 = vmul.f32 %v2615_v37, %v2612_v40 }
0x376b   :  { %v6476_v47 = vadd.f32 %v2620_v46, %v2617_v36 }
0x376d   :  { %v2623_v48 = vrot.slane %v6476_v47, 6  ;;  %v6481_v49 = vsel %vm3046_vm1, %v3058_v14, %v6476_v47 }
0x376f   :  { %2624 = vrot.lane.b32.xlu1 %v2623_v48, %s5866_s22 }
0x37e1   :  { %v2625_v31 = vpop.permute.xlu1 %2624 }
0x37e2   :  { %5163 = vmatmul.mubr.msk.f32.vlgmr.msra.gmra.mrb[26].mxu1 %vm279_vm14, %v2625_v31 }
0x37e3   :  { %5493 = vmatpush3.bf16.msra.mxu1 %v5995_v58  ;;  %5184 = vmatprep.mubr.msk.f32.mxu1 %vm5864_vm13, %v5862_v24 }
0x37e4   :  { %5494 = vmatprep.subr.bf16.mxu1 %v5863_v59 }
0x37e7   :  { %5496 = vmatpush3.bf16.msra.mxu1 %v6006_v62 }
0x38b5   :  { %v2694_v52 = vpop.f32.mrb[26].mxu1 }
0x38b6   :  { %v2695_v53 = vadd.f32 %v2694_v52, %v6061_v28  ;;  %v5164_v54 = vpop.f32.mrb[27].mxu1 }
0x38b8   :  { %2706 = vrot.lane.b32.xlu0 %v2695_v53, %s5865_s0  ;;  %v2698_v55 = vadd.f32 %v2695_v53, %v6063_v29 }
0x38ba   :  { %v4616_v56 = vmul.f32 -1.442695, %v2698_v55 }
0x38bc   :  { %5743 = vpow2.f32 %v4616_v56 }
0x38c6   :  { %v5744_v57 = vpop.eup %5743 }
0x38c7   :  { %v2702_v60 = vadd.f32 1.0, %v5744_v57  ;;  %v3092_v57 = vrot.slane %v6476_v47, 2 }
0x38c9   :  { %5745 = vrcp.f32 %v2702_v60 }
0x38d3   :  { %v5746_v63 = vpop.eup %5745 }
0x38d4   :  { %v2716_v51 = vsub.f32 1.0, %v5746_v63  ;;  %v2723_v6 = vmul.f32 %v5746_v63, %v2623_v48 }
0x392a   :  { %v2707_v0 = vpop.permute.xlu0 %2706 }
0x392b   :  { %v2709_v9 = vmul.f32 %v5746_v63, %v2707_v0 }
0x392d   :  { %2711 = vrot.lane.b32.xlu1 %v2709_v9, %s5865_s0 }
0x399f   :  { %v2712_v3 = vpop.permute.xlu1 %2711 }
0x39a0   :  { %v2714_v14 = vadd.f32 %v2712_v3, %v6063_v29 }
0x39a2   :  { %5747 = vtanh.f32 %v2714_v14 }
0x39ac   :  { %v5748_v18 = vpop.eup %5747 }
0x39ad   :  { %2718 = vrot.lane.b32.xlu0 %v5748_v18, %s5866_s22 }
0x3a1f   :  { %v2719_v50 = vpop.permute.xlu0 %2718 }
0x3a20   :  { %v2721_v11 = vmul.f32 %v2719_v50, %v2716_v51 }
0x3a22   :  { %v6496_v23 = vadd.f32 %v2723_v6, %v2721_v11 }
0x3a24   :  { %2726 = vrot.lane.b32.xlu1 %v6496_v23, %s5866_s22  ;;  %v2826_v31 = vrot.slane %v6496_v23, 6 }
0x3a96   :  { %v2727_v22 = vpop.permute.xlu1 %2726 }
0x3a97   :  { %5174 = vmatmul.mubr.msk.f32.vlgmr.msra.gmra.mrb[32].mxu0 %vm279_vm14, %v2727_v22 }
0x3a98   :  { %5499 = vmatpush3.bf16.msra.mxu0 %v5995_v58  ;;  %5195 = vmatprep.mubr.msk.f32.mxu0 %vm5864_vm13, %v5862_v24 }
0x3a99   :  { %5500 = vmatprep.subr.bf16.mxu0 %v5863_v59 }
0x3a9c   :  { %5502 = vmatpush3.bf16.msra.mxu0 %v6006_v62 }
0x3a9d   :  { %5511 = vmatprep.subr.bf16.mxu0 %v5863_v59 }
0x3b6a   :  { %v2796_v25 = vpop.f32.mrb[32].mxu0 }
0x3b6b   :  { %v2797_v20 = vadd.f32 %v2796_v25, %v6061_v28  ;;  %v5175_v27 = vpop.f32.mrb[33].mxu0 }
0x3b6d   :  { %v2801_v30 = vrot.slane %v2797_v20, 6 }
0x3b6f   :  { %2810 = vrot.lane.b32.xlu0 %v2801_v30, %s5865_s0  ;;  %v2803_v32 = vadd.f32 %v2801_v30, %v6063_v29 }
0x3b71   :  { %v4618_v34 = vmul.f32 -1.442695, %v2803_v32 }
0x3b73   :  { %5749 = vpow2.f32 %v4618_v34 }
0x3b7d   :  { %v5750_v58 = vpop.eup %5749 }
0x3b7e   :  { %v2807_v10 = vadd.f32 1.0, %v5750_v58 }
0x3b80   :  { %5751 = vrcp.f32 %v2807_v10 }
0x3b8a   :  { %v5752_v39 = vpop.eup %5751 }
0x3b8b   :  { %v2820_v48 = vsub.f32 1.0, %v5752_v39  ;;  %v2828_v54 = vmul.f32 %v5752_v39, %v2826_v31 }
0x3be1   :  { %v2811_v40 = vpop.permute.xlu0 %2810 }
0x3be2   :  { %v2813_v37 = vmul.f32 %v5752_v39, %v2811_v40 }
0x3be4   :  { %2815 = vrot.lane.b32.xlu1 %v2813_v37, %s5865_s0 }
0x3c56   :  { %v2816_v62 = vpop.permute.xlu1 %2815 }
0x3c57   :  { %v2818_v46 = vadd.f32 %v2816_v62, %v6063_v29 }
0x3c59   :  { %5753 = vtanh.f32 %v2818_v46 }
0x3c63   :  { %v5754_v36 = vpop.eup %5753 }
0x3c64   :  { %2822 = vrot.lane.b32.xlu0 %v5754_v36, %s5866_s22 }
0x3cd6   :  { %v2823_v52 = vpop.permute.xlu0 %2822 }
0x3cd7   :  { %v2825_v53 = vmul.f32 %v2823_v52, %v2820_v48 }
0x3cd9   :  { %v2829_v55 = vadd.f32 %v2828_v54, %v2825_v53 }
0x3cdb   :  { %v2831_v56 = vrot.slane %v2829_v55, 2  ;;  %v2932_v34 = vrot.slane %v2829_v55, 6  ;;  %v3060_v37 = vsel %vm3042_vm15, %v6496_v23, %v2829_v55 }
0x3cdd   :  { %2832 = vrot.lane.b32.xlu1 %v2831_v56, %s5866_s22  ;;  %v3097_v60 = vsel %vm3042_vm15, %v2831_v56, %v2826_v31 }
0x3cde   :  { %v6518_v63 = vsel %vm3044_vm0, %v3097_v60, %v3092_v57 }
0x3d4f   :  { %v2833_v0 = vpop.permute.xlu1 %2832 }
0x3d50   :  { %5185 = vmatmul.mubr.msk.f32.vlgmr.msra.gmra.mrb[28].mxu1 %vm279_vm14, %v2833_v0 }
0x3e23   :  { %v2902_v9 = vpop.f32.mrb[28].mxu1 }
0x3e24   :  { %v2903_v3 = vadd.f32 %v2902_v9, %v6061_v28  ;;  %v5186_v14 = vpop.f32.mrb[29].mxu1  ;;  %v6554_v9 = vsel %vm3046_vm1, %v6265_v8, %v1358_v61  ;;  %v6571_v8 = vsel %vm3046_vm1, %v6314_v17, %v1778_v7  ;;  %v6593_v17 = vsel %vm3046_vm1, %v6518_v63, %v2618_v42 }
0x3e26   :  { %v2907_v18 = vrot.slane %v2903_v3, 4 }
0x3e28   :  { %2916 = vrot.lane.b32.xlu0 %v2907_v18, %s5865_s0  ;;  %v2909_v51 = vadd.f32 %v2907_v18, %v6063_v29  ;;  %v3100_v18 = vld [vmem:[%s6891_s2 + $0x70] sm:$0xff] }
0x3e29   :  { %v5507_v7 = vpack.c.bf16 %v3101_v43, %v3100_v18 }
0x3e2a   :  { %v4620_v47 = vmul.f32 -1.442695, %v2909_v51 }
0x3e2c   :  { %5755 = vpow2.f32 %v4620_v47 }
0x3e36   :  { %v5756_v50 = vpop.eup %5755 }
0x3e37   :  { %v2913_v6 = vadd.f32 1.0, %v5756_v50 }
0x3e39   :  { %5757 = vrcp.f32 %v2913_v6 }
0x3e43   :  { %v5758_v11 = vpop.eup %5757 }
0x3e44   :  { %v2926_v32 = vsub.f32 1.0, %v5758_v11  ;;  %v2934_v10 = vmul.f32 %v5758_v11, %v2932_v34 }
0x3e9a   :  { %v2917_v22 = vpop.permute.xlu0 %2916 }
0x3e9b   :  { %v2919_v25 = vmul.f32 %v5758_v11, %v2917_v22  ;;  %v3094_v11 = vsel %vm3042_vm15, %v1991_v13, %v1986_v2 }
0x3e9d   :  { %2921 = vrot.lane.b32.xlu1 %v2919_v25, %s5865_s0 }
0x3f0f   :  { %v2922_v20 = vpop.permute.xlu1 %2921 }
0x3f10   :  { %v2924_v27 = vadd.f32 %v2922_v20, %v6063_v29 }
0x3f12   :  { %5759 = vtanh.f32 %v2924_v27 }
0x3f1c   :  { %v5760_v30 = vpop.eup %5759 }
0x3f1d   :  { %2928 = vrot.lane.b32.xlu0 %v5760_v30, %s5866_s22 }
0x3f8f   :  { %v2929_v58 = vpop.permute.xlu0 %2928 }
0x3f90   :  { %v2931_v39 = vmul.f32 %v2929_v58, %v2926_v32  ;;  %v3355_v58 = vld [vmem:[%s6891_s2 + $0x90] sm:$0xff] }
0x3f92   :  { %v6527_v40 = vadd.f32 %v2934_v10, %v2931_v39  ;;  %v3359_v10 = vrot.slane %v3355_v58, %v6045_v15 }
0x3f94   :  { %v2937_v62 = vrot.slane %v6527_v40, 4  ;;  %v3061_v46 = vsel %vm3044_vm0, %v3060_v37, %v6527_v40 }
0x3f96   :  { %2938 = vrot.lane.b32.xlu1 %v2937_v62, %s5866_s22 }
0x4008   :  { %v2939_v36 = vpop.permute.xlu1 %2938 }
0x4009   :  { %5196 = vmatmul.mubr.msk.f32.vlgmr.msra.gmra.mrb[34].mxu0 %vm279_vm14, %v2939_v36 }
0x400a   :  { %5236 = vmatprep.mubr.msk.f32.mxu0 %vm5864_vm13, %v5862_v24 }
0x40dc   :  { %v3008_v48 = vpop.f32.mrb[34].mxu0 }
0x40dd   :  { %v3009_v31 = vadd.f32 %v3008_v48, %v6061_v28  ;;  %v5197_v52 = vpop.f32.mrb[35].mxu0  ;;  %v6546_v28 = vsel %vm3046_vm1, %v6183_v4, %v938_v1  ;;  %v3103_v1 = vld [vmem:[%s6891_s2 + $0x88] sm:$0xff] }
0x40de   :  { %v5503_v4 = vpack.c.bf16 %v3103_v1, %v3102_v41  ;;  %v3372_v52 = vld [vmem:[%s6891_s2 + $0x98] sm:$0xff] }
0x40df   :  { %v3013_v53 = vrot.slane %v3009_v31, 2 }
0x40e0   :  { %5504 = vmatprep.subr.bf16.mxu1 %v5503_v4 }
0x40e1   :  { %3022 = vrot.lane.b32.xlu0 %v3013_v53, %s5865_s0  ;;  %v3015_v23 = vadd.f32 %v3013_v53, %v6063_v29  ;;  %5506 = vmatpush3.bf16.msra.mxu1 %v5503_v4 }
0x40e2   :  { %5508 = vmatprep.subr.bf16.mxu1 %v5507_v7 }
0x40e3   :  { %v4622_v54 = vmul.f32 -1.442695, %v3015_v23 }
0x40e5   :  { %5761 = vpow2.f32 %v4622_v54 }
0x40ef   :  { %v5762_v55 = vpop.eup %5761 }
0x40f0   :  { %v3019_v56 = vadd.f32 1.0, %v5762_v55 }
0x40f2   :  { %5763 = vrcp.f32 %v3019_v56  ;;  %v3376_v56 = vrot.slane %v3372_v52, %v6045_v15 }
0x40fc   :  { %v5764_v57 = vpop.eup %5763 }
0x40fd   :  { %v3032_v45 = vsub.f32 1.0, %v5764_v57 }
0x4153   :  { %v3023_v60 = vpop.permute.xlu0 %3022 }
0x4154   :  { %v3025_v0 = vmul.f32 %v5764_v57, %v3023_v60 }
0x4156   :  { %3027 = vrot.lane.b32.xlu1 %v3025_v0, %s5865_s0 }
0x415a   :  { %3110 = vrot.lane.b32.xlu1 %v6546_v28, %s5867_s23 }
0x415e   :  { %3114 = vrot.lane.b32.xlu1 %v6554_v9, %s5867_s23 }
0x41c8   :  { %v3028_v3 = vpop.permute.xlu1 %3027 }
0x41c9   :  { %v3030_v14 = vadd.f32 %v3028_v3, %v6063_v29  ;;  %v6579_v29 = vsel %vm3046_vm1, %v6437_v33, %v2198_v26  ;;  %v3038_v26 = vrot.slane %v6527_v40, 6 }
0x41cb   :  { %5765 = vtanh.f32 %v3030_v14  ;;  %v3040_v51 = vmul.f32 %v5764_v57, %v3038_v26 }
0x41cc   :  { %v3111_v38 = vpop.permute.xlu1 %3110 }
0x41cd   :  { %5202 = vmatprep.mubr.msk.f32.mxu1 %vm3122_vm2, %v3111_v38 }
0x41d0   :  { %v3115_v6 = vpop.permute.xlu1 %3114 }
0x41d5   :  { %v5766_v61 = vpop.eup %5765 }
0x41d6   :  { %3034 = vrot.lane.b32.xlu0 %v5766_v61, %s5866_s22 }
0x41da   :  { %3112 = vrot.lane.b32.xlu0 %v6571_v8, %s5867_s23 }
0x41de   :  { %3116 = vrot.lane.b32.xlu0 %v6579_v29, %s5867_s23 }
0x41e2   :  { %3120 = vrot.lane.b32.xlu0 %v6593_v17, %s5867_s23 }
0x41e6   :  { %3238 = vrot.lane.b32.xlu0 %v6227_v5, %s5866_s22 }
0x41ea   :  { %3242 = vrot.lane.b32.xlu0 %v6399_v21, %s5866_s22 }
0x4248   :  { %v3035_v33 = vpop.permute.xlu0 %3034 }
0x4249   :  { %v3037_v47 = vmul.f32 %v3035_v33, %v3032_v45 }
0x424b   :  { %v3041_v19 = vadd.f32 %v3040_v51, %v3037_v47 }
0x424c   :  { %v3113_v50 = vpop.permute.xlu0 %3112 }
0x424d   :  { %v3089_v42 = vrot.slane %v3041_v19, 2  ;;  %5203 = vmatmul.mubr.msk.f32.vlgmr.msra.gmra.mrb[30].mxu1 %vm3122_vm2, %v3113_v50  ;;  %v6604_v63 = vsel %vm3046_vm1, %v3061_v46, %v3041_v19 }
0x424e   :  { %5205 = vmatprep.mubr.msk.f32.mxu1 %vm3122_vm2, %v3115_v6  ;;  %3246 = vrot.lane.b32.xlu0 %v6604_v63, %s5866_s22 }
0x424f   :  { %v3095_v22 = vsel %vm3044_vm0, %v3094_v11, %v3089_v42  ;;  %5510 = vmatpush3.bf16.msra.mxu1 %v5507_v7 }
0x4250   :  { %v3117_v25 = vpop.permute.xlu0 %3116  ;;  %v6616_v20 = vsel %vm3046_vm1, %v3095_v22, %v3038_v26  ;;  %5526 = vmatprep.subr.bf16.mxu1 %v5863_v59 }
0x4251   :  { %3118 = vrot.lane.b32.xlu1 %v6616_v20, %s5867_s23  ;;  %5206 = vmatmul.mubr.msk.f32.gmra.mrb[32].mxu1 %vm3122_vm2, %v3117_v25 }
0x4254   :  { %v3121_v44 = vpop.permute.xlu0 %3120 }
0x4255   :  { %3236 = vrot.lane.b32.xlu1 %v6145_v35, %s5866_s22 }
0x4258   :  { %v3239_v12 = vpop.permute.xlu0 %3238 }
0x4259   :  { %3240 = vrot.lane.b32.xlu1 %v6305_v16, %s5866_s22 }
0x425c   :  { %v3243_v30 = vpop.permute.xlu0 %3242 }
0x425d   :  { %3244 = vrot.lane.b32.xlu1 %v6481_v49, %s5866_s22 }
0x42c0   :  { %v3247_v34 = vpop.permute.xlu0 %3246 }
0x42c3   :  { %v3119_v2 = vpop.permute.xlu1 %3118 }
0x42c4   :  { %5208 = vmatprep.mubr.msk.f32.mxu1 %vm3122_vm2, %v3119_v2 }
0x42c5   :  { %5209 = vmatmul.mubr.msk.f32.gmra.mrb[34].mxu1 %vm3122_vm2, %v3121_v44 }
0x42c7   :  { %v3237_v13 = vpop.permute.xlu1 %3236 }
0x42c8   :  { %5215 = vmatprep.mubr.msk.f32.mxu1 %vm3122_vm2, %v3237_v13 }
0x42c9   :  { %5216 = vmatmul.mubr.msk.f32.vlgmr.msra.gmra.mrb[30].mxu1 %vm3122_vm2, %v3239_v12 }
0x42cb   :  { %v3241_v27 = vpop.permute.xlu1 %3240 }
0x42cc   :  { %5218 = vmatprep.mubr.msk.f32.mxu1 %vm3122_vm2, %v3241_v27 }
0x42cd   :  { %5219 = vmatmul.mubr.msk.f32.gmra.mrb[32].mxu1 %vm3122_vm2, %v3243_v30 }
0x42cf   :  { %v3245_v32 = vpop.permute.xlu1 %3244 }
0x42d0   :  { %5221 = vmatprep.mubr.msk.f32.mxu1 %vm3122_vm2, %v3245_v32 }
0x42d1   :  { %5222 = vmatmul.mubr.msk.f32.gmra.mrb[34].mxu1 %vm3122_vm2, %v3247_v34 }
0x42d2   :  { %5258 = vmatprep.mubr.msk.f32.mxu1 %vm5864_vm13, %v5862_v24 }
0x439c   :  { %v5217_v39 = vpop.f32.mrb[30].mxu1 }
0x439d   :  { %v3361_v40 = vadd.f32 %v5217_v39, %v3359_v10  ;;  %v3326_v37 = vpop.f32.mrb[31].mxu1 }
0x439e   :  { %v3360_v62 = vadd.f32 %v3359_v10, %v3326_v37 }
0x439f   :  { %5767 = vtanh.f32 %v3361_v40 }
0x43a0   :  { %5769 = vtanh.f32 %v3360_v62  ;;  %v5220_v46 = vpop.f32.mrb[32].mxu1 }
0x43a1   :  { %v3363_v36 = vadd.f32 %v5220_v46, %v3359_v10  ;;  %v3336_v48 = vpop.f32.mrb[33].mxu1 }
0x43a2   :  { %v3362_v31 = vadd.f32 %v3359_v10, %v3336_v48 }
0x43a3   :  { %5771 = vtanh.f32 %v3363_v36 }
0x43a4   :  { %5773 = vtanh.f32 %v3362_v31  ;;  %v5223_v53 = vpop.f32.mrb[34].mxu1 }
0x43a5   :  { %v3365_v23 = vadd.f32 %v5223_v53, %v3359_v10  ;;  %v3346_v54 = vpop.f32.mrb[35].mxu1 }
0x43a6   :  { %v3364_v55 = vadd.f32 %v3359_v10, %v3346_v54 }
0x43a7   :  { %5775 = vtanh.f32 %v3365_v23 }
0x43a8   :  { %5777 = vtanh.f32 %v3364_v55 }
0x43a9   :  { %v5768_v57 = vpop.eup %5767 }
0x43aa   :  { %v5770_v60 = vpop.eup %5769  ;;  %v3378_v0 = vmul.f32 %v5768_v57, %v3376_v56 }
0x43ab   :  { %v3377_v41 = vmul.f32 %v5770_v60, %v3376_v56 }
0x43ac   :  { %v3386_v1 = vsel %vm279_vm14, %v3378_v0, 0.0 }
0x43ad   :  { %v5772_v4 = vpop.eup %5771  ;;  %3387 = vadd.xlane.f32.xlu0 %v3386_v1  ;;  %v3383_v3 = vsel %vm279_vm14, %v3377_v41, 0.0 }
0x43ae   :  { %v5774_v14 = vpop.eup %5773  ;;  %3384 = vadd.xlane.f32.xlu1 %v3383_v3  ;;  %v3380_v38 = vmul.f32 %v5772_v4, %v3376_v56 }
0x43af   :  { %v3379_v61 = vmul.f32 %v5774_v14, %v3376_v56 }
0x43b0   :  { %v3392_v18 = vsel %vm279_vm14, %v3380_v38, 0.0 }
0x43b1   :  { %v5776_v43 = vpop.eup %5775  ;;  %v3389_v7 = vsel %vm279_vm14, %v3379_v61, 0.0 }
0x43b2   :  { %v5778_v45 = vpop.eup %5777  ;;  %3393 = vadd.xlane.f32.xlu1 %v3392_v18  ;;  %3390 = vadd.xlane.f32.xlu0 %v3389_v7  ;;  %v3382_v26 = vmul.f32 %v5776_v43, %v3376_v56 }
0x43b3   :  { %v3381_v33 = vmul.f32 %v5778_v45, %v3376_v56 }
0x43b4   :  { %v3398_v51 = vsel %vm279_vm14, %v3382_v26, 0.0 }
0x43b5   :  { %v3395_v47 = vsel %vm279_vm14, %v3381_v33, 0.0 }
0x43b6   :  { %3399 = vadd.xlane.f32.xlu1 %v3398_v51  ;;  %3396 = vadd.xlane.f32.xlu0 %v3395_v47 }
0x443a   :  { %v3388_v19 = vpop.xlane.xlu0 %3387 }
0x443b   :  { %5779 = vtanh.f32 %v3388_v19  ;;  %v3385_v50 = vpop.xlane.xlu1 %3384 }
0x443c   :  { %5781 = vtanh.f32 %v3385_v50 }
0x443f   :  { %v3394_v6 = vpop.xlane.xlu1 %3393  ;;  %v3391_v42 = vpop.xlane.xlu0 %3390 }
0x4440   :  { %5783 = vtanh.f32 %v3394_v6 }
0x4441   :  { %5785 = vtanh.f32 %v3391_v42 }
0x4443   :  { %v3400_v11 = vpop.xlane.xlu1 %3399  ;;  %v3397_v22 = vpop.xlane.xlu0 %3396 }
0x4444   :  { %5787 = vtanh.f32 %v3400_v11 }
0x4445   :  { %v5780_v25 = vpop.eup %5779  ;;  %5789 = vtanh.f32 %v3397_v22 }
0x4446   :  { %v5782_v44 = vpop.eup %5781  ;;  %v3409_v2 = vmul.f32 1.442695, %v5780_v25 }
0x4447   :  { %v3407_v12 = vmul.f32 1.442695, %v5782_v44 }
0x4448   :  { %5791 = vpow2.f32 %v3409_v2 }
0x4449   :  { %5793 = vpow2.f32 %v3407_v12 }
0x444a   :  { %v5784_v13 = vpop.eup %5783 }
0x444b   :  { %v5786_v27 = vpop.eup %5785  ;;  %v3413_v30 = vmul.f32 1.442695, %v5784_v13 }
0x444c   :  { %v3411_v32 = vmul.f32 1.442695, %v5786_v27 }
0x444d   :  { %5795 = vpow2.f32 %v3413_v30 }
0x444e   :  { %v5788_v34 = vpop.eup %5787  ;;  %5797 = vpow2.f32 %v3411_v32 }
0x444f   :  { %v5790_v58 = vpop.eup %5789  ;;  %v3417_v10 = vmul.f32 1.442695, %v5788_v34  ;;  %v3491_v34 = vld [vmem:[%s6891_s2 + $0xa0] sm:$0xff] }
0x4450   :  { %v3415_v39 = vmul.f32 1.442695, %v5790_v58  ;;  %v5868_v58 = vmov 32  }
0x4451   :  { %5799 = vpow2.f32 %v3417_v10  ;;  %5621 = vset.pattern.permute.xlu1 %v5868_v58  ;;  %5622 = vset.pattern.permute.xlu0 %v5868_v58  ;;  %v3581_v10 = vld [vmem:[%s6892_s3] sm:$0xff] }
0x4452   :  { %v5792_v40 = vpop.eup %5791  ;;  %5801 = vpow2.f32 %v3415_v39  ;;  %v3582_v39 = vld [vmem:[%s6892_s3 + $0x8] sm:$0xff] }
0x4453   :  { %v5794_v37 = vpop.eup %5793  ;;  %v3426_v62 = vmul.f32 %v5792_v40, %v6571_v8  ;;  %v3420_v46 = vmul.f32 %v5792_v40, %v6227_v5 }
0x4454   :  { %v3425_v36 = vmul.f32 %v5794_v37, %v6546_v28  ;;  %v3419_v48 = vmul.f32 %v5794_v37, %v6145_v35 }
0x4456   :  { %v5596_v31 = vpack.i.bf16 %v3426_v62, %v3425_v36  ;;  %v5591_v52 = vpack.i.bf16 %v3420_v46, %v3419_v48  ;;  %v3586_v62 = vld [vmem:[%s6892_s3 + $0x28] sm:$0xff]  ;;  %v3583_v46 = vld [vmem:[%s6892_s3 + $0x10] sm:$0xff]  ;;  %v3584_v36 = vld [vmem:[%s6892_s3 + $0x18] sm:$0xff] }
0x4457   :  { %v5796_v53 = vpop.eup %5795 }
0x4458   :  { %v5798_v23 = vpop.eup %5797  ;;  %5597 = vrot.lane.b32.xlu1 %v5596_v31, %s5866_s22  ;;  %5592 = vrot.lane.b32.xlu0 %v5591_v52, %s5866_s22  ;;  %v3428_v54 = vmul.f32 %v5796_v53, %v6579_v29  ;;  %v3422_v55 = vmul.f32 %v5796_v53, %v6399_v21  ;;  %v5530_v31 = vpack.c.bf16 %v3584_v36, %v3583_v46 }
0x4459   :  { %v3427_v8 = vmul.f32 %v5798_v23, %v6554_v9  ;;  %v3421_v5 = vmul.f32 %v5798_v23, %v6305_v16 }
0x445b   :  { %v5800_v56 = vpop.eup %5799  ;;  %v5606_v28 = vpack.i.bf16 %v3428_v54, %v3427_v8  ;;  %v5601_v57 = vpack.i.bf16 %v3422_v55, %v3421_v5  ;;  %v3587_v54 = vld [vmem:[%s6892_s3 + $0x30] sm:$0xff]  ;;  %v3588_v55 = vld [vmem:[%s6892_s3 + $0x38] sm:$0xff]  ;;  %v3740_v5 = vld [vmem:[%s6892_s3 + $0x40] sm:$0xff] }
0x445c   :  { %v5802_v35 = vpop.eup %5801  ;;  %v3430_v60 = vmul.f32 %v5800_v56, %v6593_v17  ;;  %v3424_v0 = vmul.f32 %v5800_v56, %v6604_v63  ;;  %v5524_v8 = vpack.c.bf16 %v3588_v55, %v3587_v54 }
0x445d   :  { %5607 = vrot.lane.b32.xlu0 %v5606_v28, %s5866_s22  ;;  %5602 = vrot.lane.b32.xlu1 %v5601_v57, %s5866_s22  ;;  %v3429_v29 = vmul.f32 %v5802_v35, %v6616_v20  ;;  %v3423_v21 = vmul.f32 %v5802_v35, %v6481_v49 }
0x445f   :  { %v5616_v41 = vpack.i.bf16 %v3430_v60, %v3429_v29  ;;  %v5611_v9 = vpack.i.bf16 %v3424_v0, %v3423_v21  ;;  %v3742_v29 = vld [vmem:[%s6892_s3 + $0x50] sm:$0xff]  ;;  %v3743_v21 = vld [vmem:[%s6892_s3 + $0x58] sm:$0xff] }
0x4461   :  { %5617 = vrot.lane.b32.xlu0 %v5616_v41, %s5866_s22  ;;  %5612 = vrot.lane.b32.xlu1 %v5611_v9, %s5866_s22 }
0x44ca   :  { %v5598_v16 = vpop.permute.xlu1 %5597  ;;  %v5593_v1 = vpop.permute.xlu0 %5592 }
0x44cb   :  { %v5600_v4 = vunpack.i.h.bf16 %v5598_v16  ;;  %v5599_v17 = vunpack.i.l.bf16 %v5598_v16  ;;  %v5595_v3 = vunpack.i.h.bf16 %v5593_v1  ;;  %v5594_v63 = vunpack.i.l.bf16 %v5593_v1 }
0x44cc   :  { %v5536_v16 = vpack.c.bf16 %v3743_v21, %v3742_v29 }
0x44cd   :  { %v3480_v14 = vsel %vm3122_vm2, %v5595_v3, %v5600_v4  ;;  %v3479_v38 = vsel %vm3122_vm2, %v5594_v63, %v5599_v17 }
0x44ce   :  { %v3485_v20 = vsel %vm279_vm14, %v3479_v38, %v5794_v37  ;;  %v3486_v49 = vsel %vm279_vm14, %v3480_v14, %v5792_v40  ;;  %v3585_v40 = vld [vmem:[%s6892_s3 + $0x20] sm:$0xff]  ;;  %v5527_v37 = vpack.c.bf16 %v3582_v39, %v3581_v10  ;;  %v3744_v38 = vld [vmem:[%s6892_s3 + $0x68] sm:$0xff] }
0x44cf   :  { %v5603_v61 = vpop.permute.xlu1 %5602  ;;  %v5608_v18 = vpop.permute.xlu0 %5607  ;;  %v5512_v43 = vpack.c.bf16 %v3486_v49, %v3485_v20  ;;  %v5521_v48 = vpack.c.bf16 %v3586_v62, %v3585_v40  ;;  %v6757_v20 = vrot.slane %v3744_v38, %v6045_v15 }
0x44d0   :  { %v5605_v7 = vunpack.i.h.bf16 %v5603_v61  ;;  %v5604_v45 = vunpack.i.l.bf16 %v5603_v61  ;;  %v5610_v26 = vunpack.i.h.bf16 %v5608_v18  ;;  %v5609_v33 = vunpack.i.l.bf16 %v5608_v18  ;;  %5528 = vmatpush3.bf16.msra.mxu1 %v5527_v37 }
0x44d1   :  { %5513 = vmatpush3.bf16.msra.mxu0 %v5512_v43  ;;  %5529 = vmatprep.subr.bf16.mxu1 %v5863_v59  ;;  %v3734_v43 = vld [vmem:[%s6892_s3 + $0x60] sm:$0xff] }
0x44d2   :  { %v3482_v51 = vsel %vm3122_vm2, %v5605_v7, %v5610_v26  ;;  %v3481_v47 = vsel %vm3122_vm2, %v5604_v45, %v5609_v33  ;;  %5514 = vmatprep.subr.bf16.mxu0 %v5863_v59  ;;  %v3738_v7 = vrot.slane %v3734_v43, %v6045_v15 }
0x44d3   :  { %v5613_v19 = vpop.permute.xlu1 %5612  ;;  %v5618_v50 = vpop.permute.xlu0 %5617  ;;  %v3487_v6 = vsel %vm279_vm14, %v3481_v47, %v5798_v23  ;;  %v3488_v42 = vsel %vm279_vm14, %v3482_v51, %v5796_v53 }
0x44d4   :  { %v5615_v11 = vunpack.i.h.bf16 %v5613_v19  ;;  %v5614_v22 = vunpack.i.l.bf16 %v5613_v19  ;;  %v5620_v25 = vunpack.i.h.bf16 %v5618_v50  ;;  %v5619_v44 = vunpack.i.l.bf16 %v5618_v50  ;;  %5531 = vmatpush3.bf16.msra.mxu1 %v5530_v31 }
0x44d5   :  { %v5515_v2 = vpack.c.bf16 %v3488_v42, %v3487_v6  ;;  %5538 = vmatprep.subr.bf16.mxu1 %v5863_v59 }
0x44d6   :  { %v3484_v12 = vsel %vm3122_vm2, %v5615_v11, %v5620_v25  ;;  %v3483_v13 = vsel %vm3122_vm2, %v5614_v22, %v5619_v44 }
0x44d7   :  { %5516 = vmatpush3.bf16.msra.mxu0 %v5515_v2  ;;  %v3489_v27 = vsel %vm279_vm14, %v3483_v13, %v5802_v35  ;;  %v3490_v30 = vsel %vm279_vm14, %v3484_v12, %v5800_v56  ;;  %v3741_v56 = vld [vmem:[%s6892_s3 + $0x48] sm:$0xff] }
0x44d8   :  { %5517 = vmatprep.subr.bf16.mxu0 %v5863_v59  ;;  %v5518_v32 = vpack.c.bf16 %v3490_v30, %v3489_v27  ;;  %v6724_v35 = vpack.c.bf16 %v3741_v56, %v3740_v5 }
0x44db   :  { %5519 = vmatpush3.bf16.msra.mxu0 %v5518_v32 }
0x44dc   :  { %5520 = vmatprep.subr.bf16.mxu0 %v5863_v59 }
0x44de   :  { %5237 = vmatmul.mubr.msk.f32.vlgmr.msra.gmra.mrb[36].mxu0 %vm3492_vm3, %v3491_v34 }
0x44df   :  { %5247 = vmatprep.mubr.msk.f32.mxu0 %vm5864_vm13, %v5862_v24  ;;  %5522 = vmatpush3.bf16.msra.mxu0 %v5521_v48 }
0x44e0   :  { %5523 = vmatprep.subr.bf16.mxu0 %v5863_v59 }
0x44e3   :  { %5525 = vmatpush3.bf16.msra.mxu0 %v5524_v8 }
0x44e4   :  { %5532 = vmatprep.subr.bf16.mxu0 %v5863_v59 }
0x45b1   :  { %v3562_v52 = vpop.f32.mrb[36].mxu0 }
0x45b2   :  { %5803 = vrcp.f32 %v3562_v52  ;;  %v5238_v53 = vpop.f32.mrb[37].mxu0 }
0x45bc   :  { %v5804_v23 = vpop.eup %5803 }
0x45bd   :  { %3569 = vperm.xlu1 %5621, %v5804_v23  }
0x463c   :  { %v3570_v28 = vpop.permute.xlu1 %3569 }
0x463d   :  { %v3572_v57 = vmul.f32 %v3570_v28, %v3562_v52 }
0x463f   :  { %v3574_v60 = vrot.slane %v3572_v57, 6  ;;  %v3576_v0 = vrot.slane %v3572_v57, 2  ;;  %5259 = vmatmul.mubr.msk.f32.vlgmr.msra.gmra.mrb[36].mxu1 %vm279_vm14, %v3572_v57 }
0x4640   :  { %5540 = vmatpush3.bf16.msra.mxu1 %v6724_v35  ;;  %5280 = vmatprep.mubr.msk.f32.mxu1 %vm5864_vm13, %v5862_v24 }
0x4641   :  { %v3578_v41 = vsel %vm3042_vm15, %v3574_v60, %v3576_v0  ;;  %5541 = vmatprep.subr.bf16.mxu1 %v5863_v59 }
0x4642   :  { %v3579_v9 = vsel %vm3044_vm0, %v3578_v41, %v3574_v60 }
0x4643   :  { %v3580_v1 = vsel %vm3046_vm1, %v3579_v9, %v3576_v0 }
0x4644   :  { %5248 = vmatmul.mubr.msk.f32.vlgmr.msra.gmra.mrb[38].mxu0 %vm279_vm14, %v3580_v1  ;;  %5543 = vmatpush3.bf16.msra.mxu1 %v5536_v16 }
0x4645   :  { %5534 = vmatpush3.bf16.msra.mxu0 %v6724_v35  ;;  %5269 = vmatprep.mubr.msk.f32.mxu0 %vm5864_vm13, %v5862_v24 }
0x4646   :  { %5535 = vmatprep.subr.bf16.mxu0 %v5863_v59  ;;  %5550 = vmatprep.subr.bf16.mxu1 %v5863_v59 }
0x4649   :  { %5537 = vmatpush3.bf16.msra.mxu0 %v5536_v16 }
0x464a   :  { %5544 = vmatprep.subr.bf16.mxu0 %v5863_v59 }
0x464c   :  { %5270 = vmatmul.mubr.f32.vlgmr.msra.gmra.mrb[40].mxu0 %v5862_v24 }
0x464d   :  { %5546 = vmatpush3.bf16.msra.mxu0 %v6724_v35  ;;  %5291 = vmatprep.mubr.msk.f32.mxu0 %vm5864_vm13, %v5862_v24 }
0x464e   :  { %5547 = vmatprep.subr.bf16.mxu0 %v5863_v59 }
0x4651   :  { %5549 = vmatpush3.bf16.msra.mxu0 %v5536_v16 }
0x4652   :  { %5559 = vmatprep.subr.bf16.mxu0 %v5863_v59 }
0x4712   :  { %v3730_v4 = vpop.f32.mrb[36].mxu1 }
0x4713   :  { %v5260_v17 = vpop.f32.mrb[37].mxu1 }
0x4717   :  { %v3658_v3 = vpop.f32.mrb[38].mxu0 }
0x4718   :  { %v3731_v63 = vadd.f32 %v3730_v4, %v3658_v3  ;;  %v5249_v14 = vpop.f32.mrb[39].mxu0 }
0x471a   :  { %v6765_v45 = vadd.f32 %v3738_v7, %v3731_v63 }
0x471f   :  { %v3815_v49 = vpop.f32.mrb[40].mxu0 }
0x4720   :  { %v3816_v61 = vadd.f32 %v3815_v49, %v6757_v20  ;;  %v5271_v18 = vpop.f32.mrb[41].mxu0 }
0x4722   :  { %3827 = vrot.lane.b32.xlu0 %v3816_v61, %s5865_s0  ;;  %v3819_v26 = vadd.f32 %v3816_v61, %v6765_v45 }
0x4724   :  { %v4638_v33 = vmul.f32 -1.442695, %v3819_v26 }
0x4726   :  { %5805 = vpow2.f32 %v4638_v33 }
0x4730   :  { %v5806_v51 = vpop.eup %5805 }
0x4731   :  { %v3823_v47 = vadd.f32 1.0, %v5806_v51 }
0x4733   :  { %5807 = vrcp.f32 %v3823_v47 }
0x473d   :  { %v5808_v19 = vpop.eup %5807 }
0x473e   :  { %v3837_v25 = vsub.f32 1.0, %v5808_v19  ;;  %v3843_v2 = vmul.f32 0.0, %v5808_v19 }
0x4794   :  { %v3828_v50 = vpop.permute.xlu0 %3827 }
0x4795   :  { %v3830_v6 = vmul.f32 %v5808_v19, %v3828_v50 }
0x4797   :  { %3832 = vrot.lane.b32.xlu1 %v3830_v6, %s5865_s0 }
0x4809   :  { %v3833_v42 = vpop.permute.xlu1 %3832 }
0x480a   :  { %v3835_v11 = vadd.f32 %v3833_v42, %v6765_v45 }
0x480c   :  { %5809 = vtanh.f32 %v3835_v11 }
0x4816   :  { %v5810_v22 = vpop.eup %5809 }
0x4817   :  { %3839 = vrot.lane.b32.xlu0 %v5810_v22, %s5866_s22 }
0x4889   :  { %v3840_v44 = vpop.permute.xlu0 %3839 }
0x488a   :  { %v3842_v12 = vmul.f32 %v3840_v44, %v3837_v25 }
0x488c   :  { %v6771_v13 = vadd.f32 %v3843_v2, %v3842_v12 }
0x488e   :  { %3846 = vrot.lane.b32.xlu1 %v6771_v13, %s5866_s22  ;;  %v3946_v23 = vrot.slane %v6771_v13, 6 }
0x4900   :  { %v3847_v27 = vpop.permute.xlu1 %3846 }
0x4901   :  { %5281 = vmatmul.mubr.msk.f32.vlgmr.msra.gmra.mrb[38].mxu1 %vm279_vm14, %v3847_v27 }
0x4902   :  { %5552 = vmatpush3.bf16.msra.mxu1 %v6724_v35  ;;  %5302 = vmatprep.mubr.msk.f32.mxu1 %vm5864_vm13, %v5862_v24 }
0x4903   :  { %5553 = vmatprep.subr.bf16.mxu1 %v5863_v59 }
0x4906   :  { %5555 = vmatpush3.bf16.msra.mxu1 %v5536_v16 }
0x4907   :  { %5556 = vmatprep.subr.bf16.mxu1 %v5863_v59 }
0x49d4   :  { %v3916_v30 = vpop.f32.mrb[38].mxu1 }
0x49d5   :  { %v3917_v32 = vadd.f32 %v3916_v30, %v6757_v20  ;;  %v5282_v34 = vpop.f32.mrb[39].mxu1 }
0x49d7   :  { %v3921_v58 = vrot.slane %v3917_v32, 6  ;;  %v4176_v32 = vld [vmem:[%s6892_s3 + $0x78] sm:$0xff] }
0x49d9   :  { %3930 = vrot.lane.b32.xlu0 %v3921_v58, %s5865_s0  ;;  %v3923_v10 = vadd.f32 %v3921_v58, %v6765_v45 }
0x49db   :  { %v4640_v39 = vmul.f32 -1.442695, %v3923_v10  ;;  %v4178_v10 = vld [vmem:[%s6892_s3 + $0x88] sm:$0xff] }
0x49dd   :  { %5811 = vpow2.f32 %v4640_v39 }
0x49e7   :  { %v5812_v40 = vpop.eup %5811 }
0x49e8   :  { %v3927_v37 = vadd.f32 1.0, %v5812_v40 }
0x49ea   :  { %5813 = vrcp.f32 %v3927_v37 }
0x49f4   :  { %v5814_v62 = vpop.eup %5813 }
0x49f5   :  { %v3940_v53 = vsub.f32 1.0, %v5814_v62  ;;  %v3948_v8 = vmul.f32 %v5814_v62, %v3946_v23  ;;  %v4170_v23 = vrot.slane %v6771_v13, 2 }
0x4a4b   :  { %v3931_v46 = vpop.permute.xlu0 %3930 }
0x4a4c   :  { %v3933_v36 = vmul.f32 %v5814_v62, %v3931_v46 }
0x4a4e   :  { %3935 = vrot.lane.b32.xlu1 %v3933_v36, %s5865_s0 }
0x4ac0   :  { %v3936_v48 = vpop.permute.xlu1 %3935 }
0x4ac1   :  { %v3938_v31 = vadd.f32 %v3936_v48, %v6765_v45 }
0x4ac3   :  { %5815 = vtanh.f32 %v3938_v31 }
0x4acd   :  { %v5816_v52 = vpop.eup %5815 }
0x4ace   :  { %3942 = vrot.lane.b32.xlu0 %v5816_v52, %s5866_s22 }
0x4b40   :  { %v3943_v54 = vpop.permute.xlu0 %3942 }
0x4b41   :  { %v3945_v55 = vmul.f32 %v3943_v54, %v3940_v53 }
0x4b43   :  { %v6788_v5 = vadd.f32 %v3948_v8, %v3945_v55 }
0x4b45   :  { %v3951_v56 = vrot.slane %v6788_v5, 2  ;;  %v4052_v38 = vrot.slane %v6788_v5, 6  ;;  %v4162_v7 = vsel %vm3042_vm15, %v6771_v13, %v6788_v5 }
0x4b47   :  { %3952 = vrot.lane.b32.xlu1 %v3951_v56, %s5866_s22 }
0x4bb9   :  { %v3953_v28 = vpop.permute.xlu1 %3952 }
0x4bba   :  { %5292 = vmatmul.mubr.msk.f32.vlgmr.msra.gmra.mrb[42].mxu0 %vm279_vm14, %v3953_v28  ;;  %v4329_v28 = vld [vmem:[%s6892_s3 + $0x90] sm:$0xff] }
0x4bbb   :  { %5316 = vmatprep.mubr.msk.f32.mxu0 %vm5864_vm13, %v5862_v24 }
0x4c8d   :  { %v4022_v57 = vpop.f32.mrb[42].mxu0 }
0x4c8e   :  { %v4023_v35 = vadd.f32 %v4022_v57, %v6757_v20  ;;  %v5293_v60 = vpop.f32.mrb[43].mxu0 }
0x4c90   :  { %v4027_v0 = vrot.slane %v4023_v35, 4  ;;  %v4333_v35 = vrot.slane %v4329_v28, %v6045_v15 }
0x4c92   :  { %4036 = vrot.lane.b32.xlu0 %v4027_v0, %s5865_s0  ;;  %v4029_v29 = vadd.f32 %v4027_v0, %v6765_v45 }
0x4c94   :  { %v4642_v21 = vmul.f32 -1.442695, %v4029_v29 }
0x4c96   :  { %5817 = vpow2.f32 %v4642_v21 }
0x4ca0   :  { %v5818_v41 = vpop.eup %5817 }
0x4ca1   :  { %v4033_v9 = vadd.f32 1.0, %v5818_v41  ;;  %v4336_v41 = vld [vmem:[%s6892_s3 + $0x98] sm:$0xff] }
0x4ca3   :  { %5819 = vrcp.f32 %v4033_v9  ;;  %v4340_v9 = vrot.slane %v4336_v41, %v6045_v15 }
0x4cad   :  { %v5820_v16 = vpop.eup %5819 }
0x4cae   :  { %v4046_v14 = vsub.f32 1.0, %v5820_v16  ;;  %v4054_v61 = vmul.f32 %v5820_v16, %v4052_v38 }
0x4d04   :  { %v4037_v1 = vpop.permute.xlu0 %4036 }
0x4d05   :  { %v4039_v4 = vmul.f32 %v5820_v16, %v4037_v1 }
0x4d07   :  { %4041 = vrot.lane.b32.xlu1 %v4039_v4, %s5865_s0 }
0x4d79   :  { %v4042_v17 = vpop.permute.xlu1 %4041 }
0x4d7a   :  { %v4044_v3 = vadd.f32 %v4042_v17, %v6765_v45 }
0x4d7c   :  { %5821 = vtanh.f32 %v4044_v3 }
0x4d86   :  { %v5822_v63 = vpop.eup %5821 }
0x4d87   :  { %4048 = vrot.lane.b32.xlu0 %v5822_v63, %s5866_s22 }
0x4df9   :  { %v4049_v49 = vpop.permute.xlu0 %4048 }
0x4dfa   :  { %v4051_v18 = vmul.f32 %v4049_v49, %v4046_v14 }
0x4dfc   :  { %v4055_v43 = vadd.f32 %v4054_v61, %v4051_v18 }
0x4dfe   :  { %v4057_v26 = vrot.slane %v4055_v43, 4  ;;  %v4163_v33 = vsel %vm3044_vm0, %v4162_v7, %v4055_v43  ;;  %v4158_v37 = vrot.slane %v4055_v43, 6  ;;  %v4168_v31 = vrot.slane %v4055_v43, 2  ;;  %v4360_v43 = vld [vmem:[%s6892_s3 + $0xa0] sm:$0xff] }
0x4e00   :  { %4058 = vrot.lane.b32.xlu1 %v4057_v26, %s5866_s22  ;;  %v4442_v26 = vld [vmem:[%s6892_s3 + $0xa8] sm:$0xff] }
0x4e72   :  { %v4059_v51 = vpop.permute.xlu1 %4058 }
0x4e73   :  { %5303 = vmatmul.mubr.msk.f32.vlgmr.msra.gmra.mrb[40].mxu1 %vm279_vm14, %v4059_v51  ;;  %v4444_v51 = vld [vmem:[%s6892_s3 + $0xb8] sm:$0xff] }
0x4e74   :  { %5309 = vmatprep.mubr.msk.f32.mxu1 %vm5864_vm13, %v5862_v24 }
0x4f46   :  { %v4128_v47 = vpop.f32.mrb[40].mxu1 }
0x4f47   :  { %v4129_v19 = vadd.f32 %v4128_v47, %v6757_v20  ;;  %v5304_v50 = vpop.f32.mrb[41].mxu1  ;;  %v4175_v20 = vld [vmem:[%s6892_s3 + $0x70] sm:$0xff] }
0x4f48   :  { %v5560_v34 = vpack.c.bf16 %v4176_v32, %v4175_v20 }
0x4f49   :  { %v4133_v6 = vrot.slane %v4129_v19, 2  ;;  %v4445_v19 = vld [vmem:[%s6892_s3 + $0xc0] sm:$0xff] }
0x4f4a   :  { %5561 = vmatpush3.bf16.msra.mxu0 %v5560_v34  ;;  %v5566_v50 = vpack.c.bf16 %v4445_v19, %v4444_v51 }
0x4f4b   :  { %4142 = vrot.lane.b32.xlu0 %v4133_v6, %s5865_s0  ;;  %v4135_v42 = vadd.f32 %v4133_v6, %v6765_v45  ;;  %5562 = vmatprep.subr.bf16.mxu0 %v5863_v59 }
0x4f4d   :  { %v4644_v11 = vmul.f32 -1.442695, %v4135_v42 }
0x4f4f   :  { %5823 = vpow2.f32 %v4644_v11 }
0x4f59   :  { %v5824_v22 = vpop.eup %5823 }
0x4f5a   :  { %v4139_v25 = vadd.f32 1.0, %v5824_v22 }
0x4f5c   :  { %5825 = vrcp.f32 %v4139_v25 }
0x4f66   :  { %v5826_v44 = vpop.eup %5825 }
0x4f67   :  { %v4152_v40 = vsub.f32 1.0, %v5826_v44  ;;  %v4160_v46 = vmul.f32 %v5826_v44, %v4158_v37 }
0x4fbd   :  { %v4143_v2 = vpop.permute.xlu0 %4142 }
0x4fbe   :  { %v4145_v12 = vmul.f32 %v5826_v44, %v4143_v2  ;;  %v4446_v44 = vld [vmem:[%s6892_s3 + $0xc8] sm:$0xff] }
0x4fbf   :  { %v4450_v2 = vrot.slane %v4446_v44, %v6045_v15 }
0x4fc0   :  { %4147 = vrot.lane.b32.xlu1 %v4145_v12, %s5865_s0 }
0x5032   :  { %v4148_v27 = vpop.permute.xlu1 %4147 }
0x5033   :  { %v4150_v30 = vadd.f32 %v4148_v27, %v6765_v45  ;;  %v4177_v45 = vld [vmem:[%s6892_s3 + $0x80] sm:$0xff] }
0x5034   :  { %v5557_v39 = vpack.c.bf16 %v4178_v10, %v4177_v45 }
0x5035   :  { %5827 = vtanh.f32 %v4150_v30 }
0x5036   :  { %5558 = vmatpush3.bf16.msra.mxu1 %v5557_v39 }
0x5037   :  { %5319 = vmatprep.subr.mxu1 %v5862_v24 }
0x503f   :  { %v5828_v58 = vpop.eup %5827 }
0x5040   :  { %4154 = vrot.lane.b32.xlu0 %v5828_v58, %s5866_s22 }
0x50b2   :  { %v4155_v62 = vpop.permute.xlu0 %4154 }
0x50b3   :  { %v4157_v36 = vmul.f32 %v4155_v62, %v4152_v40 }
0x50b5   :  { %v4161_v48 = vadd.f32 %v4160_v46, %v4157_v36 }
0x50b7   :  { %v4166_v52 = vrot.slane %v4161_v48, 6  ;;  %v4164_v53 = vsel %vm3046_vm1, %v4163_v33, %v4161_v48  ;;  %v4443_v33 = vld [vmem:[%s6892_s3 + $0xb0] sm:$0xff] }
0x50b8   :  { %4255 = vrot.lane.b32.xlu0 %v4164_v53, %s5866_s22  ;;  %v5563_v47 = vpack.c.bf16 %v4443_v33, %v4442_v26 }
0x50b9   :  { %v4172_v54 = vsel %vm3042_vm15, %v4166_v52, %v4168_v31 }
0x50ba   :  { %v4173_v55 = vsel %vm3044_vm0, %v4172_v54, %v4052_v38 }
0x50bb   :  { %v4174_v8 = vsel %vm3046_vm1, %v4173_v55, %v4170_v23 }
0x50bc   :  { %4180 = vrot.lane.b32.xlu1 %v4174_v8, %s5867_s23 }
0x512a   :  { %v4256_v5 = vpop.permute.xlu0 %4255 }
0x512b   :  { %5317 = vmatmul.mubr.msk.f32.vlgmr.msra.gmra.mrb[44].mxu0 %vm3122_vm2, %v4256_v5 }
0x512c   :  { %5332 = vmatprep.mubr.msk.f32.mxu0 %vm5864_vm13, %v5862_v24  ;;  %5564 = vmatpush3.bf16.msra.mxu0 %v5563_v47 }
0x512d   :  { %5565 = vmatprep.subr.bf16.mxu0 %v5863_v59 }
0x512e   :  { %v4181_v56 = vpop.permute.xlu1 %4180 }
0x512f   :  { %5310 = vmatmul.mubr.msk.f32.vlgmr.msra.gmra.mrb[42].mxu1 %vm3122_vm2, %v4181_v56 }
0x5130   :  { %5321 = vmatprep.mubr.msk.f32.mxu1 %vm5864_vm13, %v5862_v24  ;;  %5567 = vmatpush3.bf16.msra.mxu0 %v5566_v50 }
0x51fe   :  { %v4325_v13 = vpop.f32.mrb[44].mxu0 }
0x51ff   :  { %v5318_v57 = vpop.f32.mrb[45].mxu0 }
0x5202   :  { %v4250_v60 = vpop.f32.mrb[42].mxu1 }
0x5203   :  { %v4326_v0 = vadd.f32 %v4325_v13, %v4250_v60  ;;  %v5311_v29 = vpop.f32.mrb[43].mxu1 }
0x5205   :  { %v4334_v21 = vadd.f32 %v4333_v35, %v4326_v0 }
0x5207   :  { %5829 = vtanh.f32 %v4334_v21 }
0x5211   :  { %v5830_v24 = vpop.eup %5829 }
0x5212   :  { %v4341_v16 = vmul.f32 %v5830_v24, %v4340_v9 }
0x5214   :  { %v4342_v1 = vsel %vm279_vm14, %v4341_v16, 0.0 }
0x5215   :  { %4343 = vadd.xlane.f32.xlu1 %v4342_v1 }
0x52a2   :  { %v4344_v4 = vpop.xlane.xlu1 %4343 }
0x52a3   :  { %5831 = vtanh.f32 %v4344_v4 }
0x52ad   :  { %v5832_v17 = vpop.eup %5831 }
0x52ae   :  { %v4346_v3 = vmul.f32 1.442695, %v5832_v17 }
0x52b0   :  { %5833 = vpow2.f32 %v4346_v3 }
0x52ba   :  { %v5834_v63 = vpop.eup %5833 }
0x52bb   :  { %v4348_v14 = vmul.f32 %v5834_v63, %v4164_v53  ;;  %v4349_v38 = vmul.f32 %v5834_v63, %v4174_v8 }
0x52bd   :  { %4351 = vrot.lane.b32.xlu0 %v4348_v14, %s5866_s22 }
0x52c1   :  { %4355 = vrot.lane.b32.xlu0 %v4349_v38, %s5866_s22 }
0x532f   :  { %v4352_v49 = vpop.permute.xlu0 %4351 }
0x5333   :  { %v4356_v61 = vpop.permute.xlu0 %4355 }
0x5334   :  { %v4358_v18 = vsel %vm3122_vm2, %v4352_v49, %v4356_v61 }
0x5335   :  { %v4359_v7 = vsel %vm279_vm14, %v4358_v18, %v5834_v63 }
0x5336   :  { %5320 = vmatpush3.msra.mxu1 %v4359_v7 }
0x5337   :  { %5322 = vmatmul.mubr.msk.f32.vlgmr.msra.gmra.mrb[44].mxu1 %vm4361_vm4, %v4360_v43 }
0x540a   :  { %v4431_v6 = vpop.f32.mrb[44].mxu1 }
0x540b   :  { %5835 = vrcp.f32 %v4431_v6  ;;  %v5323_v42 = vpop.f32.mrb[45].mxu1 }
0x5415   :  { %v5836_v11 = vpop.eup %5835 }
0x5416   :  { %4438 = vperm.xlu0 %5622, %v5836_v11  }
0x5495   :  { %v4439_v22 = vpop.permute.xlu0 %4438 }
0x5496   :  { %v4441_v25 = vmul.f32 %v4439_v22, %v4431_v6 }
0x5498   :  { %5333 = vmatmul.mubr.msk.f32.vlgmr.msra.gmra.mrb[46].mxu0 %vm279_vm14, %v4441_v25 }
0x556b   :  { %v4520_v12 = vpop.f32.mrb[46].mxu0 }
0x556c   :  { %v4521_v59 = vadd.f32 %v4520_v12, %v4450_v2  ;;  %v5334_v27 = vpop.f32.mrb[47].mxu0 }
0x556e   :  { %4525 = vst.msk [vmem:[#allocation2] sm:$0x3] %vm4524_vm5, %v4521_v59 }
0x556f   :  { %5848 = shalt.err (!%p5845_p4)
}
0x5570   :  { %s5849_s3 = scalar_lea.hbm %s6893_s4, 32 }
0x5571   :  { %p5850_p5 = scmp.ne.s32.totalorder %s6893_s4, %s5849_s3  ;;  %p5853_p6 = scmp.lt.u32.totalorder %s5849_s3, %s6893_s4 }
0x5573   :  { %p5855_p7 = pnand %p5853_p6, %p5850_p5 }
0x5575   :  { %5858 = shalt.err (!%p5855_p7)
}
0x5576   :  { %4535 = dma.vmem_to_hbm [thread:$0]  %s4533_s10, 32, %s6893_s4, [#allocation3]  }
0x5577   :  { %5859 = dma.done.wait [#allocation3], 32  }
0x5578   :  { %5860 = vsyncadd [#allocation3], 4294967264 }
0x5579   :  { %4539 = vsyncpa [#allocation3], 1 }

</bundles_post_ra>
